<compile_context>
chip_gen: v5e
topology: v5e:2x2
jax: 0.10.0
libtpu: 0.0.40
codegen_flags: <defaults>
</compile_context>

<pallas_src>
import math
from functools import partial

import jax
import jax.numpy as jnp
from jax import lax
from jax.experimental import pallas as pl
from jax.experimental.pallas import tpu as pltpu


# MXU operand dtype (accumulation is always f32 via preferred_element_type).
MXU_INPUT_DTYPE = jnp.bfloat16


def _mm(a, b):
    """a @ b on the MXU with f32 accumulation."""
    return jnp.dot(a.astype(MXU_INPUT_DTYPE), b.astype(MXU_INPUT_DTYPE),
                   preferred_element_type=jnp.float32)


def _mm_t(a, b):
    """a @ b.T without materializing a transpose (contract last dims of both)."""
    return lax.dot_general(a.astype(MXU_INPUT_DTYPE), b.astype(MXU_INPUT_DTYPE),
                           dimension_numbers=(((1,), (1,)), ((), ())),
                           preferred_element_type=jnp.float32)


def _layernorm(x, gb):
    # gb: (2, D) -> row 0 = gamma, row 1 = beta ; eps matches PyTorch (1e-5)
    g = gb[0:1, :]
    b = gb[1:2, :]
    mu = jnp.mean(x, axis=-1, keepdims=True)
    var = jnp.mean((x - mu) ** 2, axis=-1, keepdims=True)
    return (x - mu) * lax.rsqrt(var + 1e-5) * g + b


def _softmax_rows(s):
    s = s - jnp.max(s, axis=-1, keepdims=True)
    p = jnp.exp(s)
    return p / jnp.sum(p, axis=-1, keepdims=True)   # exact divide (parity w/ reference)


# ----------------------------- fused kernel ----------------------------------

def operation_kernel(latent_ref, x_ref,
                     c_ln_q1_ref, c_ln_kv_ref, c_wq_ref, c_wkv_ref,
                     c_wo_ref, c_ln_q2_ref, c_w2_ref,
                     s_ln1_ref, s_wqkv_ref, s_wo_ref, s_ln2_ref, s_w2_ref,
                     out_ref, *, heads, repeat, d_model, latent_len, batch_block):
    f32 = jnp.float32
    D = d_model
    L = latent_len
    Dh = D // heads

    # Block-diagonal per-head mask, built ONCE (hoisted out of all loops):
    # head_mask[h*L + i, d] == 1  iff  feature d belongs to head h.
    cols = lax.broadcasted_iota(jnp.int32, (L, D), 1)
    head_mask = jnp.concatenate(
        [((cols >= h * Dh) & (cols < (h + 1) * Dh)).astype(f32) for h in range(heads)],
        axis=0)                                                    # (heads*L, D)

    for bi in range(batch_block):          # static loop over batches in this block
        latent = latent_ref[bi].astype(f32)    # (L, D)
        x = x_ref[bi].astype(f32)              # (S, D)

        # -------------------- CrossTransformer (1 head) --------------------
        q = _layernorm(latent, c_ln_q1_ref[...])
        kv = _layernorm(x, c_ln_kv_ref[...])

        qp = _mm(q, c_wq_ref[...])             # (L, D)  (1/sqrt(D) folded into wq)
        kvp = _mm(kv, c_wkv_ref[...])          # (S, 2D) packed K|V projection
        kp = kvp[:, :D]
        vp = kvp[:, D:]

        p = _softmax_rows(_mm_t(qp, kp))       # (L, S) -- no transpose materialized
        attn = _mm(_mm(p, vp), c_wo_ref[...])  # (L, D)
        q_mid = attn + latent
        h2 = _layernorm(q_mid, c_ln_q2_ref[...])
        h2 = h2 * jax.nn.sigmoid(h2)           # nn.SiLU (module attr named "gelu")
        # TODO(synk): dropout omitted (eval-mode / p=0 identity); training-mode RNG dropout not implemented.
        bott = _mm(h2, c_w2_ref[...]) + q_mid  # (L, D)

        # ------------- SelfTransformer x repeat (static unroll) -------------
        # TODO(synk): for production-scale repeat/D switch to lax.fori_loop to bound live ranges.
        for r in range(repeat):
            xi = bott
            xn = _layernorm(xi, s_ln1_ref[r])
            qkv = _mm(xn, s_wqkv_ref[r])       # (L, 3D) packed Q|K|V, Q pre-scaled
            qh = qkv[:, :D]
            kh = qkv[:, D:2 * D]
            vh = qkv[:, 2 * D:]

            # All-head scores as one matmul: rows are (head, query) pairs.
            q_big = jnp.concatenate([qh] * heads, axis=0) * head_mask   # (heads*L, D)
            scores = _mm_t(q_big, kh)                                   # (heads*L, L)
            p = _softmax_rows(scores)            # one softmax for all heads
            pv = _mm(p, vh) * head_mask          # (heads*L, D): head h keeps its Dh cols
            t = _mm(pv, s_wo_ref[r])             # (heads*L, D): per-head W_o contributions

            attn = t[0:L, :]                     # init with head 0 (no zeros + add)
            for h in range(1, heads):
                attn = attn + t[h * L:(h + 1) * L, :]

            q_mid = attn + xi
            h2 = _layernorm(q_mid, s_ln2_ref[r])
            h2 = h2 * jax.nn.sigmoid(h2)
            bott = _mm(h2, s_w2_ref[r]) + q_mid

        out_ref[bi] = bott.astype(out_ref.dtype)


# ------------------------------- wrapper --------------------------------------

def operation_forward(x, latent, params, heads, repeat, num_batch_blocks=None):
    """Operation.forward(x, latent). x: (B, S, D), latent: (B, L, D) -> (B, L, D)."""
    B, S, D = x.shape
    L = latent.shape[1]

    if num_batch_blocks is None:
        # Small B: single grid step (grid-step overhead dominates on single-TC v5e/v6e).
        # Larger even B: two "parallel" blocks so v7x's two TensorCores both get work.
        num_batch_blocks = 2 if (B >= 4 and B % 2 == 0) else 1
    assert B % num_batch_blocks == 0, "B must be divisible by num_batch_blocks"
    bb = B // num_batch_blocks

    def const_spec(shape):
        # full-array block, constant index -> stays resident in VMEM across the grid
        n = len(shape)
        return pl.BlockSpec(shape, lambda b, _n=n: (0,) * _n)

    c = params["cross"]
    s = params["selfs"]
    w = lambda a: a.astype(MXU_INPUT_DTYPE)   # pre-cast matmul weights once (bf16)

    kernel = partial(operation_kernel, heads=heads, repeat=repeat, d_model=D,
                     latent_len=L, batch_block=bb)
    return pl.pallas_call(
        kernel,
        out_shape=jax.ShapeDtypeStruct((B, L, D), latent.dtype),
        grid=(num_batch_blocks,),
        in_specs=[
            pl.BlockSpec((bb, L, D), lambda b: (b, 0, 0)),   # latent
            pl.BlockSpec((bb, S, D), lambda b: (b, 0, 0)),   # x
            const_spec((2, D)),                 # cross ln_q1 (f32)
            const_spec((2, D)),                 # cross ln_kv (f32)
            const_spec((D, D)),                 # cross wq (scale folded, bf16)
            const_spec((D, 2 * D)),             # cross wkv packed (bf16)
            const_spec((D, D)),                 # cross wo (bf16)
            const_spec((2, D)),                 # cross ln_q2 (f32)
            const_spec((D, D)),                 # cross w2 (bf16)
            const_spec((repeat, 2, D)),         # self ln1 stacked (f32)
            const_spec((repeat, D, 3 * D)),     # self wqkv packed stacked (bf16)
            const_spec((repeat, D, D)),         # self wo stacked (bf16)
            const_spec((repeat, 2, D)),         # self ln2 stacked (f32)
            const_spec((repeat, D, D)),         # self w2 stacked (bf16)
        ],
        out_specs=pl.BlockSpec((bb, L, D), lambda b: (b, 0, 0)),
        compiler_params=pltpu.CompilerParams(
            dimension_semantics=("parallel",),
            vmem_limit_bytes=32 * 1024 * 1024),
    )(latent, x,
      c["ln_q1"], c["ln_kv"], w(c["wq"]), w(c["wkv"]), w(c["wo"]),
      c["ln_q2"], w(c["w2"]),
      s["ln1"], w(s["wqkv"]), w(s["wo"]), s["ln2"], w(s["w2"]))


# ------------------------ deterministic parameter init ------------------------

def _ln_params(d_model):
    # PyTorch LayerNorm init: gamma = 1, beta = 0
    return jnp.concatenate([jnp.ones((1, d_model), jnp.float32),
                            jnp.zeros((1, d_model), jnp.float32)], axis=0)


def make_operation_params(key, d_model, heads, repeat):
    """All projection weights stored pre-transposed (in, out): y = x @ W. f32 masters."""
    D = d_model
    init_scale = 1.0 / math.sqrt(D)

    def rand(k, shape):
        return jax.random.normal(k, shape, jnp.float32) * init_scale

    k_cross, k_self = jax.random.split(key)

    # Cross block has a single head -> head_dim = D; fold 1/sqrt(D) into wq.
    kc = jax.random.split(k_cross, 5)
    cross = {
        "ln_q1": _ln_params(D),
        "ln_kv": _ln_params(D),
        "wq": rand(kc[0], (D, D)) * (1.0 / math.sqrt(D)),
        "wkv": jnp.concatenate([rand(kc[1], (D, D)), rand(kc[2], (D, D))], axis=1),
        "wo": rand(kc[3], (D, D)),
        "ln_q2": _ln_params(D),
        "w2": rand(kc[4], (D, D)),
    }

    # Self blocks: head_dim = D / heads; fold 1/sqrt(head_dim) into the Q weights.
    Dh = D // heads
    ks = jax.random.split(k_self, repeat)
    ln1, wqkv, wo, ln2, w2 = [], [], [], [], []
    for r in range(repeat):
        kr = jax.random.split(ks[r], 5)
        wq_r = rand(kr[0], (D, D)) * (1.0 / math.sqrt(Dh))
        wk_r = rand(kr[1], (D, D))
        wv_r = rand(kr[2], (D, D))
        ln1.append(_ln_params(D))
        wqkv.append(jnp.concatenate([wq_r, wk_r, wv_r], axis=1))
        wo.append(rand(kr[3], (D, D)))
        ln2.append(_ln_params(D))
        w2.append(rand(kr[4], (D, D)))

    selfs = {
        "ln1": jnp.stack(ln1),
        "wqkv": jnp.stack(wqkv),
        "wo": jnp.stack(wo),
        "ln2": jnp.stack(ln2),
        "w2": jnp.stack(w2),
    }
    return {"cross": cross, "selfs": selfs}


# --------------------------------- main ----------------------------------------

if __name__ == "__main__":
    d_model = 32
    heads = 4
    repeat = 2
    # dropout = 0.0 -> identity (eval mode)

    B = 2          # batch
    S_x = 16       # x sequence length
    L_latent = 8   # latent sequence length

    root = jax.random.PRNGKey(0)
    k_x, k_lat, k_par = jax.random.split(root, 3)

    x = jax.random.normal(k_x, (B, S_x, d_model), jnp.float32)
    latent = jax.random.normal(k_lat, (B, L_latent, d_model), jnp.float32)
    params = make_operation_params(k_par, d_model, heads, repeat)

    out = operation_forward(x, latent, params, heads, repeat)
    out = jax.block_until_ready(out)
    assert out.shape == (B, L_latent, d_model), out.shape
    assert bool(jnp.all(jnp.isfinite(out)))
    print("KERNEL_OK")
</pallas_src>

<mosaic_0001>
module attributes {stable_mosaic.version = 11 : i64} {
  func.func @operation_kernel(%arg0: i32, %arg1: memref<2x8x32xf32, #tpu.memory_space<vmem>>, %arg2: memref<2x16x32xf32, #tpu.memory_space<vmem>>, %arg3: memref<2x32xf32, #tpu.memory_space<vmem>>, %arg4: memref<2x32xf32, #tpu.memory_space<vmem>>, %arg5: memref<32x32xbf16, #tpu.memory_space<vmem>>, %arg6: memref<32x64xbf16, #tpu.memory_space<vmem>>, %arg7: memref<32x32xbf16, #tpu.memory_space<vmem>>, %arg8: memref<2x32xf32, #tpu.memory_space<vmem>>, %arg9: memref<32x32xbf16, #tpu.memory_space<vmem>>, %arg10: memref<2x2x32xf32, #tpu.memory_space<vmem>>, %arg11: memref<2x32x96xbf16, #tpu.memory_space<vmem>>, %arg12: memref<2x32x32xbf16, #tpu.memory_space<vmem>>, %arg13: memref<2x2x32xf32, #tpu.memory_space<vmem>>, %arg14: memref<2x32x32xbf16, #tpu.memory_space<vmem>>, %arg15: memref<2x8x32xf32, #tpu.memory_space<vmem>>) attributes {dimension_semantics = [#tpu.dimension_semantics<parallel>], iteration_bounds = array<i64: 1>, scalar_prefetch = 0 : i64, scratch_operands = 0 : i64, tpu.core_type = #tpu.core_type<tc>, window_params = [{transform_indices = @transform_0, window_bounds = array<i64: 2, 8, 32>}, {transform_indices = @transform_1, window_bounds = array<i64: 2, 16, 32>}, {pipeline_mode = #tpu.pipeline_mode<synchronous>, transform_indices = @transform_2, window_bounds = array<i64: 2, 32>}, {pipeline_mode = #tpu.pipeline_mode<synchronous>, transform_indices = @transform_3, window_bounds = array<i64: 2, 32>}, {pipeline_mode = #tpu.pipeline_mode<synchronous>, transform_indices = @transform_4, window_bounds = array<i64: 32, 32>}, {pipeline_mode = #tpu.pipeline_mode<synchronous>, transform_indices = @transform_5, window_bounds = array<i64: 32, 64>}, {pipeline_mode = #tpu.pipeline_mode<synchronous>, transform_indices = @transform_6, window_bounds = array<i64: 32, 32>}, {pipeline_mode = #tpu.pipeline_mode<synchronous>, transform_indices = @transform_7, window_bounds = array<i64: 2, 32>}, {pipeline_mode = #tpu.pipeline_mode<synchronous>, transform_indices = @transform_8, window_bounds = array<i64: 32, 32>}, {pipeline_mode = #tpu.pipeline_mode<synchronous>, transform_indices = @transform_9, window_bounds = array<i64: 2, 2, 32>}, {pipeline_mode = #tpu.pipeline_mode<synchronous>, transform_indices = @transform_10, window_bounds = array<i64: 2, 32, 96>}, {pipeline_mode = #tpu.pipeline_mode<synchronous>, transform_indices = @transform_11, window_bounds = array<i64: 2, 32, 32>}, {pipeline_mode = #tpu.pipeline_mode<synchronous>, transform_indices = @transform_12, window_bounds = array<i64: 2, 2, 32>}, {pipeline_mode = #tpu.pipeline_mode<synchronous>, transform_indices = @transform_13, window_bounds = array<i64: 2, 32, 32>}, {transform_indices = @transform_14, window_bounds = array<i64: 2, 8, 32>}]} {
    %0 = tpu.iota {dimensions = array<i32: 1>} : vector<8x32xi32>
    %c0_i32 = arith.constant 0 : i32
    %1 = vector.broadcast %c0_i32 : i32 to vector<8x32xi32>
    %2 = arith.cmpi sge, %0, %1 : vector<8x32xi32>
    %c8_i32 = arith.constant 8 : i32
    %3 = vector.broadcast %c8_i32 : i32 to vector<8x32xi32>
    %4 = arith.cmpi slt, %0, %3 : vector<8x32xi32>
    %5 = arith.andi %2, %4 : vector<8x32xi1>
    %6 = arith.extui %5 : vector<8x32xi1> to vector<8x32xi32>
    %7 = arith.sitofp %6 : vector<8x32xi32> to vector<8x32xf32>
    %c8_i32_0 = arith.constant 8 : i32
    %8 = vector.broadcast %c8_i32_0 : i32 to vector<8x32xi32>
    %9 = arith.cmpi sge, %0, %8 : vector<8x32xi32>
    %c16_i32 = arith.constant 16 : i32
    %10 = vector.broadcast %c16_i32 : i32 to vector<8x32xi32>
    %11 = arith.cmpi slt, %0, %10 : vector<8x32xi32>
    %12 = arith.andi %9, %11 : vector<8x32xi1>
    %13 = arith.extui %12 : vector<8x32xi1> to vector<8x32xi32>
    %14 = arith.sitofp %13 : vector<8x32xi32> to vector<8x32xf32>
    %c16_i32_1 = arith.constant 16 : i32
    %15 = vector.broadcast %c16_i32_1 : i32 to vector<8x32xi32>
    %16 = arith.cmpi sge, %0, %15 : vector<8x32xi32>
    %c24_i32 = arith.constant 24 : i32
    %17 = vector.broadcast %c24_i32 : i32 to vector<8x32xi32>
    %18 = arith.cmpi slt, %0, %17 : vector<8x32xi32>
    %19 = arith.andi %16, %18 : vector<8x32xi1>
    %20 = arith.extui %19 : vector<8x32xi1> to vector<8x32xi32>
    %21 = arith.sitofp %20 : vector<8x32xi32> to vector<8x32xf32>
    %c24_i32_2 = arith.constant 24 : i32
    %22 = vector.broadcast %c24_i32_2 : i32 to vector<8x32xi32>
    %23 = arith.cmpi sge, %0, %22 : vector<8x32xi32>
    %c32_i32 = arith.constant 32 : i32
    %24 = vector.broadcast %c32_i32 : i32 to vector<8x32xi32>
    %25 = arith.cmpi slt, %0, %24 : vector<8x32xi32>
    %26 = arith.andi %23, %25 : vector<8x32xi1>
    %27 = arith.extui %26 : vector<8x32xi1> to vector<8x32xi32>
    %28 = arith.sitofp %27 : vector<8x32xi32> to vector<8x32xf32>
    %29 = tpu.concatenate %7, %14, %21, %28 in 0 : vector<8x32xf32>, vector<8x32xf32>, vector<8x32xf32>, vector<8x32xf32> -> vector<32x32xf32>
    %c0 = arith.constant 0 : index
    %c0_3 = arith.constant 0 : index
    %c0_4 = arith.constant 0 : index
    %30 = vector.load %arg1[%c0, %c0_3, %c0_4] : memref<2x8x32xf32, #tpu.memory_space<vmem>>, vector<1x8x32xf32>
    %31 = vector.shape_cast %30 : vector<1x8x32xf32> to vector<8x32xf32>
    %c0_5 = arith.constant 0 : index
    %c0_6 = arith.constant 0 : index
    %c0_7 = arith.constant 0 : index
    %32 = vector.load %arg2[%c0_5, %c0_6, %c0_7] : memref<2x16x32xf32, #tpu.memory_space<vmem>>, vector<1x16x32xf32>
    %33 = vector.shape_cast %32 : vector<1x16x32xf32> to vector<16x32xf32>
    %c0_8 = arith.constant 0 : index
    %c0_9 = arith.constant 0 : index
    %34 = vector.load %arg3[%c0_8, %c0_9] : memref<2x32xf32, #tpu.memory_space<vmem>>, vector<2x32xf32>
    %35 = vector.extract_strided_slice %34 {offsets = [0, 0], sizes = [1, 32], strides = [1, 1]} : vector<2x32xf32> to vector<1x32xf32>
    %36 = vector.extract_strided_slice %34 {offsets = [1, 0], sizes = [1, 32], strides = [1, 1]} : vector<2x32xf32> to vector<1x32xf32>
    %cst = arith.constant dense<0.000000e+00> : vector<8xf32>
    %37 = vector.multi_reduction <add>, %31, %cst [1] : vector<8x32xf32> to vector<8xf32>
    %38 = vector.shape_cast %37 : vector<8xf32> to vector<8x1xf32>
    %cst_10 = arith.constant 3.200000e+01 : f32
    %39 = vector.broadcast %cst_10 : f32 to vector<8x1xf32>
    %40 = arith.divf %38, %39 : vector<8x1xf32>
    %41 = vector.broadcast %40 : vector<8x1xf32> to vector<8x32xf32>
    %42 = arith.subf %31, %41 : vector<8x32xf32>
    %43 = arith.mulf %42, %42 : vector<8x32xf32>
    %cst_11 = arith.constant dense<0.000000e+00> : vector<8xf32>
    %44 = vector.multi_reduction <add>, %43, %cst_11 [1] : vector<8x32xf32> to vector<8xf32>
    %45 = vector.shape_cast %44 : vector<8xf32> to vector<8x1xf32>
    %cst_12 = arith.constant 3.200000e+01 : f32
    %46 = vector.broadcast %cst_12 : f32 to vector<8x1xf32>
    %47 = arith.divf %45, %46 : vector<8x1xf32>
    %48 = vector.broadcast %40 : vector<8x1xf32> to vector<8x32xf32>
    %49 = arith.subf %31, %48 : vector<8x32xf32>
    %cst_13 = arith.constant 9.99999974E-6 : f32
    %50 = vector.broadcast %cst_13 : f32 to vector<8x1xf32>
    %51 = arith.addf %47, %50 : vector<8x1xf32>
    %52 = math.rsqrt %51 : vector<8x1xf32>
    %53 = vector.broadcast %52 : vector<8x1xf32> to vector<8x32xf32>
    %54 = arith.mulf %49, %53 : vector<8x32xf32>
    %55 = vector.broadcast %35 : vector<1x32xf32> to vector<8x32xf32>
    %56 = arith.mulf %54, %55 : vector<8x32xf32>
    %57 = vector.broadcast %36 : vector<1x32xf32> to vector<8x32xf32>
    %58 = arith.addf %56, %57 : vector<8x32xf32>
    %c0_14 = arith.constant 0 : index
    %c0_15 = arith.constant 0 : index
    %59 = vector.load %arg4[%c0_14, %c0_15] : memref<2x32xf32, #tpu.memory_space<vmem>>, vector<2x32xf32>
    %60 = vector.extract_strided_slice %59 {offsets = [0, 0], sizes = [1, 32], strides = [1, 1]} : vector<2x32xf32> to vector<1x32xf32>
    %61 = vector.extract_strided_slice %59 {offsets = [1, 0], sizes = [1, 32], strides = [1, 1]} : vector<2x32xf32> to vector<1x32xf32>
    %cst_16 = arith.constant dense<0.000000e+00> : vector<16xf32>
    %62 = vector.multi_reduction <add>, %33, %cst_16 [1] : vector<16x32xf32> to vector<16xf32>
    %63 = vector.shape_cast %62 : vector<16xf32> to vector<16x1xf32>
    %cst_17 = arith.constant 3.200000e+01 : f32
    %64 = vector.broadcast %cst_17 : f32 to vector<16x1xf32>
    %65 = arith.divf %63, %64 : vector<16x1xf32>
    %66 = vector.broadcast %65 : vector<16x1xf32> to vector<16x32xf32>
    %67 = arith.subf %33, %66 : vector<16x32xf32>
    %68 = arith.mulf %67, %67 : vector<16x32xf32>
    %cst_18 = arith.constant dense<0.000000e+00> : vector<16xf32>
    %69 = vector.multi_reduction <add>, %68, %cst_18 [1] : vector<16x32xf32> to vector<16xf32>
    %70 = vector.shape_cast %69 : vector<16xf32> to vector<16x1xf32>
    %cst_19 = arith.constant 3.200000e+01 : f32
    %71 = vector.broadcast %cst_19 : f32 to vector<16x1xf32>
    %72 = arith.divf %70, %71 : vector<16x1xf32>
    %73 = vector.broadcast %65 : vector<16x1xf32> to vector<16x32xf32>
    %74 = arith.subf %33, %73 : vector<16x32xf32>
    %cst_20 = arith.constant 9.99999974E-6 : f32
    %75 = vector.broadcast %cst_20 : f32 to vector<16x1xf32>
    %76 = arith.addf %72, %75 : vector<16x1xf32>
    %77 = math.rsqrt %76 : vector<16x1xf32>
    %78 = vector.broadcast %77 : vector<16x1xf32> to vector<16x32xf32>
    %79 = arith.mulf %74, %78 : vector<16x32xf32>
    %80 = vector.broadcast %60 : vector<1x32xf32> to vector<16x32xf32>
    %81 = arith.mulf %79, %80 : vector<16x32xf32>
    %82 = vector.broadcast %61 : vector<1x32xf32> to vector<16x32xf32>
    %83 = arith.addf %81, %82 : vector<16x32xf32>
    %c0_21 = arith.constant 0 : index
    %c0_22 = arith.constant 0 : index
    %84 = vector.load %arg5[%c0_21, %c0_22] : memref<32x32xbf16, #tpu.memory_space<vmem>>, vector<32x32xbf16>
    %85 = arith.truncf %58 : vector<8x32xf32> to vector<8x32xbf16>
    %cst_23 = arith.constant dense<0.000000e+00> : vector<8x32xf32>
    %86 = tpu.matmul %85, %84, %cst_23 {dimension_numbers = #tpu.dot_dimension_numbers<[1], [0], [0], [1], [0, 0, 1, 1], [], []>} : vector<8x32xbf16>, vector<32x32xbf16>, vector<8x32xf32> -> vector<8x32xf32>
    %c0_24 = arith.constant 0 : index
    %c0_25 = arith.constant 0 : index
    %87 = vector.load %arg6[%c0_24, %c0_25] : memref<32x64xbf16, #tpu.memory_space<vmem>>, vector<32x64xbf16>
    %88 = arith.truncf %83 : vector<16x32xf32> to vector<16x32xbf16>
    %cst_26 = arith.constant dense<0.000000e+00> : vector<16x64xf32>
    %89 = tpu.matmul %88, %87, %cst_26 {dimension_numbers = #tpu.dot_dimension_numbers<[1], [0], [0], [1], [0, 0, 1, 1], [], []>} : vector<16x32xbf16>, vector<32x64xbf16>, vector<16x64xf32> -> vector<16x64xf32>
    %90 = vector.extract_strided_slice %89 {offsets = [0, 0], sizes = [16, 32], strides = [1, 1]} : vector<16x64xf32> to vector<16x32xf32>
    %91 = vector.extract_strided_slice %89 {offsets = [0, 32], sizes = [16, 32], strides = [1, 1]} : vector<16x64xf32> to vector<16x32xf32>
    %92 = arith.truncf %86 : vector<8x32xf32> to vector<8x32xbf16>
    %93 = arith.truncf %90 : vector<16x32xf32> to vector<16x32xbf16>
    %cst_27 = arith.constant dense<0.000000e+00> : vector<8x16xf32>
    %94 = tpu.matmul %92, %93, %cst_27 {dimension_numbers = #tpu.dot_dimension_numbers<[1], [1], [0], [0], [0, 0, 1, 0], [], []>} : vector<8x32xbf16>, vector<16x32xbf16>, vector<8x16xf32> -> vector<8x16xf32>
    %cst_28 = arith.constant dense<0xFF800000> : vector<8xf32>
    %95 = vector.multi_reduction <maximumf>, %94, %cst_28 [1] : vector<8x16xf32> to vector<8xf32>
    %96 = vector.shape_cast %95 : vector<8xf32> to vector<8x1xf32>
    %97 = vector.broadcast %96 : vector<8x1xf32> to vector<8x16xf32>
    %98 = arith.subf %94, %97 : vector<8x16xf32>
    %99 = math.exp %98 : vector<8x16xf32>
    %cst_29 = arith.constant dense<0.000000e+00> : vector<8xf32>
    %100 = vector.multi_reduction <add>, %99, %cst_29 [1] : vector<8x16xf32> to vector<8xf32>
    %101 = vector.shape_cast %100 : vector<8xf32> to vector<8x1xf32>
    %102 = vector.broadcast %101 : vector<8x1xf32> to vector<8x16xf32>
    %103 = arith.divf %99, %102 : vector<8x16xf32>
    %104 = arith.truncf %103 : vector<8x16xf32> to vector<8x16xbf16>
    %105 = arith.truncf %91 : vector<16x32xf32> to vector<16x32xbf16>
    %cst_30 = arith.constant dense<0.000000e+00> : vector<8x32xf32>
    %106 = tpu.matmul %104, %105, %cst_30 {dimension_numbers = #tpu.dot_dimension_numbers<[1], [0], [0], [1], [0, 0, 1, 1], [], []>} : vector<8x16xbf16>, vector<16x32xbf16>, vector<8x32xf32> -> vector<8x32xf32>
    %c0_31 = arith.constant 0 : index
    %c0_32 = arith.constant 0 : index
    %107 = vector.load %arg7[%c0_31, %c0_32] : memref<32x32xbf16, #tpu.memory_space<vmem>>, vector<32x32xbf16>
    %108 = arith.truncf %106 : vector<8x32xf32> to vector<8x32xbf16>
    %cst_33 = arith.constant dense<0.000000e+00> : vector<8x32xf32>
    %109 = tpu.matmul %108, %107, %cst_33 {dimension_numbers = #tpu.dot_dimension_numbers<[1], [0], [0], [1], [0, 0, 1, 1], [], []>} : vector<8x32xbf16>, vector<32x32xbf16>, vector<8x32xf32> -> vector<8x32xf32>
    %110 = arith.addf %109, %31 : vector<8x32xf32>
    %c0_34 = arith.constant 0 : index
    %c0_35 = arith.constant 0 : index
    %111 = vector.load %arg8[%c0_34, %c0_35] : memref<2x32xf32, #tpu.memory_space<vmem>>, vector<2x32xf32>
    %112 = vector.extract_strided_slice %111 {offsets = [0, 0], sizes = [1, 32], strides = [1, 1]} : vector<2x32xf32> to vector<1x32xf32>
    %113 = vector.extract_strided_slice %111 {offsets = [1, 0], sizes = [1, 32], strides = [1, 1]} : vector<2x32xf32> to vector<1x32xf32>
    %cst_36 = arith.constant dense<0.000000e+00> : vector<8xf32>
    %114 = vector.multi_reduction <add>, %110, %cst_36 [1] : vector<8x32xf32> to vector<8xf32>
    %115 = vector.shape_cast %114 : vector<8xf32> to vector<8x1xf32>
    %cst_37 = arith.constant 3.200000e+01 : f32
    %116 = vector.broadcast %cst_37 : f32 to vector<8x1xf32>
    %117 = arith.divf %115, %116 : vector<8x1xf32>
    %118 = vector.broadcast %117 : vector<8x1xf32> to vector<8x32xf32>
    %119 = arith.subf %110, %118 : vector<8x32xf32>
    %120 = arith.mulf %119, %119 : vector<8x32xf32>
    %cst_38 = arith.constant dense<0.000000e+00> : vector<8xf32>
    %121 = vector.multi_reduction <add>, %120, %cst_38 [1] : vector<8x32xf32> to vector<8xf32>
    %122 = vector.shape_cast %121 : vector<8xf32> to vector<8x1xf32>
    %cst_39 = arith.constant 3.200000e+01 : f32
    %123 = vector.broadcast %cst_39 : f32 to vector<8x1xf32>
    %124 = arith.divf %122, %123 : vector<8x1xf32>
    %125 = vector.broadcast %117 : vector<8x1xf32> to vector<8x32xf32>
    %126 = arith.subf %110, %125 : vector<8x32xf32>
    %cst_40 = arith.constant 9.99999974E-6 : f32
    %127 = vector.broadcast %cst_40 : f32 to vector<8x1xf32>
    %128 = arith.addf %124, %127 : vector<8x1xf32>
    %129 = math.rsqrt %128 : vector<8x1xf32>
    %130 = vector.broadcast %129 : vector<8x1xf32> to vector<8x32xf32>
    %131 = arith.mulf %126, %130 : vector<8x32xf32>
    %132 = vector.broadcast %112 : vector<1x32xf32> to vector<8x32xf32>
    %133 = arith.mulf %131, %132 : vector<8x32xf32>
    %134 = vector.broadcast %113 : vector<1x32xf32> to vector<8x32xf32>
    %135 = arith.addf %133, %134 : vector<8x32xf32>
    %136 = arith.negf %135 : vector<8x32xf32>
    %137 = math.exp %136 : vector<8x32xf32>
    %cst_41 = arith.constant 1.000000e+00 : f32
    %138 = vector.broadcast %cst_41 : f32 to vector<8x32xf32>
    %139 = arith.addf %138, %137 : vector<8x32xf32>
    %140 = arith.divf %138, %139 : vector<8x32xf32>
    %141 = arith.mulf %135, %140 : vector<8x32xf32>
    %c0_42 = arith.constant 0 : index
    %c0_43 = arith.constant 0 : index
    %142 = vector.load %arg9[%c0_42, %c0_43] : memref<32x32xbf16, #tpu.memory_space<vmem>>, vector<32x32xbf16>
    %143 = arith.truncf %141 : vector<8x32xf32> to vector<8x32xbf16>
    %cst_44 = arith.constant dense<0.000000e+00> : vector<8x32xf32>
    %144 = tpu.matmul %143, %142, %cst_44 {dimension_numbers = #tpu.dot_dimension_numbers<[1], [0], [0], [1], [0, 0, 1, 1], [], []>} : vector<8x32xbf16>, vector<32x32xbf16>, vector<8x32xf32> -> vector<8x32xf32>
    %145 = arith.addf %144, %110 : vector<8x32xf32>
    %c0_45 = arith.constant 0 : index
    %c0_46 = arith.constant 0 : index
    %c0_47 = arith.constant 0 : index
    %146 = vector.load %arg10[%c0_45, %c0_46, %c0_47] : memref<2x2x32xf32, #tpu.memory_space<vmem>>, vector<1x2x32xf32>
    %147 = vector.shape_cast %146 : vector<1x2x32xf32> to vector<2x32xf32>
    %148 = vector.extract_strided_slice %147 {offsets = [0, 0], sizes = [1, 32], strides = [1, 1]} : vector<2x32xf32> to vector<1x32xf32>
    %149 = vector.extract_strided_slice %147 {offsets = [1, 0], sizes = [1, 32], strides = [1, 1]} : vector<2x32xf32> to vector<1x32xf32>
    %cst_48 = arith.constant dense<0.000000e+00> : vector<8xf32>
    %150 = vector.multi_reduction <add>, %145, %cst_48 [1] : vector<8x32xf32> to vector<8xf32>
    %151 = vector.shape_cast %150 : vector<8xf32> to vector<8x1xf32>
    %cst_49 = arith.constant 3.200000e+01 : f32
    %152 = vector.broadcast %cst_49 : f32 to vector<8x1xf32>
    %153 = arith.divf %151, %152 : vector<8x1xf32>
    %154 = vector.broadcast %153 : vector<8x1xf32> to vector<8x32xf32>
    %155 = arith.subf %145, %154 : vector<8x32xf32>
    %156 = arith.mulf %155, %155 : vector<8x32xf32>
    %cst_50 = arith.constant dense<0.000000e+00> : vector<8xf32>
    %157 = vector.multi_reduction <add>, %156, %cst_50 [1] : vector<8x32xf32> to vector<8xf32>
    %158 = vector.shape_cast %157 : vector<8xf32> to vector<8x1xf32>
    %cst_51 = arith.constant 3.200000e+01 : f32
    %159 = vector.broadcast %cst_51 : f32 to vector<8x1xf32>
    %160 = arith.divf %158, %159 : vector<8x1xf32>
    %161 = vector.broadcast %153 : vector<8x1xf32> to vector<8x32xf32>
    %162 = arith.subf %145, %161 : vector<8x32xf32>
    %cst_52 = arith.constant 9.99999974E-6 : f32
    %163 = vector.broadcast %cst_52 : f32 to vector<8x1xf32>
    %164 = arith.addf %160, %163 : vector<8x1xf32>
    %165 = math.rsqrt %164 : vector<8x1xf32>
    %166 = vector.broadcast %165 : vector<8x1xf32> to vector<8x32xf32>
    %167 = arith.mulf %162, %166 : vector<8x32xf32>
    %168 = vector.broadcast %148 : vector<1x32xf32> to vector<8x32xf32>
    %169 = arith.mulf %167, %168 : vector<8x32xf32>
    %170 = vector.broadcast %149 : vector<1x32xf32> to vector<8x32xf32>
    %171 = arith.addf %169, %170 : vector<8x32xf32>
    %c0_53 = arith.constant 0 : index
    %c0_54 = arith.constant 0 : index
    %c0_55 = arith.constant 0 : index
    %172 = vector.load %arg11[%c0_53, %c0_54, %c0_55] : memref<2x32x96xbf16, #tpu.memory_space<vmem>>, vector<1x32x96xbf16>
    %173 = vector.shape_cast %172 : vector<1x32x96xbf16> to vector<32x96xbf16>
    %174 = arith.truncf %171 : vector<8x32xf32> to vector<8x32xbf16>
    %cst_56 = arith.constant dense<0.000000e+00> : vector<8x96xf32>
    %175 = tpu.matmul %174, %173, %cst_56 {dimension_numbers = #tpu.dot_dimension_numbers<[1], [0], [0], [1], [0, 0, 1, 1], [], []>} : vector<8x32xbf16>, vector<32x96xbf16>, vector<8x96xf32> -> vector<8x96xf32>
    %176 = vector.extract_strided_slice %175 {offsets = [0, 0], sizes = [8, 32], strides = [1, 1]} : vector<8x96xf32> to vector<8x32xf32>
    %177 = vector.extract_strided_slice %175 {offsets = [0, 32], sizes = [8, 32], strides = [1, 1]} : vector<8x96xf32> to vector<8x32xf32>
    %178 = vector.extract_strided_slice %175 {offsets = [0, 64], sizes = [8, 32], strides = [1, 1]} : vector<8x96xf32> to vector<8x32xf32>
    %179 = tpu.concatenate %176, %176, %176, %176 in 0 : vector<8x32xf32>, vector<8x32xf32>, vector<8x32xf32>, vector<8x32xf32> -> vector<32x32xf32>
    %180 = arith.mulf %179, %29 : vector<32x32xf32>
    %181 = arith.truncf %180 : vector<32x32xf32> to vector<32x32xbf16>
    %182 = arith.truncf %177 : vector<8x32xf32> to vector<8x32xbf16>
    %cst_57 = arith.constant dense<0.000000e+00> : vector<32x8xf32>
    %183 = tpu.matmul %181, %182, %cst_57 {dimension_numbers = #tpu.dot_dimension_numbers<[1], [1], [0], [0], [0, 0, 1, 0], [], []>} : vector<32x32xbf16>, vector<8x32xbf16>, vector<32x8xf32> -> vector<32x8xf32>
    %cst_58 = arith.constant dense<0xFF800000> : vector<32xf32>
    %184 = vector.multi_reduction <maximumf>, %183, %cst_58 [1] : vector<32x8xf32> to vector<32xf32>
    %185 = vector.shape_cast %184 : vector<32xf32> to vector<32x1xf32>
    %186 = vector.broadcast %185 : vector<32x1xf32> to vector<32x8xf32>
    %187 = arith.subf %183, %186 : vector<32x8xf32>
    %188 = math.exp %187 : vector<32x8xf32>
    %cst_59 = arith.constant dense<0.000000e+00> : vector<32xf32>
    %189 = vector.multi_reduction <add>, %188, %cst_59 [1] : vector<32x8xf32> to vector<32xf32>
    %190 = vector.shape_cast %189 : vector<32xf32> to vector<32x1xf32>
    %191 = vector.broadcast %190 : vector<32x1xf32> to vector<32x8xf32>
    %192 = arith.divf %188, %191 : vector<32x8xf32>
    %193 = arith.truncf %192 : vector<32x8xf32> to vector<32x8xbf16>
    %194 = arith.truncf %178 : vector<8x32xf32> to vector<8x32xbf16>
    %cst_60 = arith.constant dense<0.000000e+00> : vector<32x32xf32>
    %195 = tpu.matmul %193, %194, %cst_60 {dimension_numbers = #tpu.dot_dimension_numbers<[1], [0], [0], [1], [0, 0, 1, 1], [], []>} : vector<32x8xbf16>, vector<8x32xbf16>, vector<32x32xf32> -> vector<32x32xf32>
    %196 = arith.mulf %195, %29 : vector<32x32xf32>
    %c0_61 = arith.constant 0 : index
    %c0_62 = arith.constant 0 : index
    %c0_63 = arith.constant 0 : index
    %197 = vector.load %arg12[%c0_61, %c0_62, %c0_63] : memref<2x32x32xbf16, #tpu.memory_space<vmem>>, vector<1x32x32xbf16>
    %198 = vector.shape_cast %197 : vector<1x32x32xbf16> to vector<32x32xbf16>
    %199 = arith.truncf %196 : vector<32x32xf32> to vector<32x32xbf16>
    %cst_64 = arith.constant dense<0.000000e+00> : vector<32x32xf32>
    %200 = tpu.matmul %199, %198, %cst_64 {dimension_numbers = #tpu.dot_dimension_numbers<[1], [0], [0], [1], [0, 0, 1, 1], [], []>} : vector<32x32xbf16>, vector<32x32xbf16>, vector<32x32xf32> -> vector<32x32xf32>
    %201 = vector.extract_strided_slice %200 {offsets = [0, 0], sizes = [8, 32], strides = [1, 1]} : vector<32x32xf32> to vector<8x32xf32>
    %202 = vector.extract_strided_slice %200 {offsets = [8, 0], sizes = [8, 32], strides = [1, 1]} : vector<32x32xf32> to vector<8x32xf32>
    %203 = arith.addf %201, %202 : vector<8x32xf32>
    %204 = vector.extract_strided_slice %200 {offsets = [16, 0], sizes = [8, 32], strides = [1, 1]} : vector<32x32xf32> to vector<8x32xf32>
    %205 = arith.addf %203, %204 : vector<8x32xf32>
    %206 = vector.extract_strided_slice %200 {offsets = [24, 0], sizes = [8, 32], strides = [1, 1]} : vector<32x32xf32> to vector<8x32xf32>
    %207 = arith.addf %205, %206 : vector<8x32xf32>
    %208 = arith.addf %207, %145 : vector<8x32xf32>
    %c0_65 = arith.constant 0 : index
    %c0_66 = arith.constant 0 : index
    %c0_67 = arith.constant 0 : index
    %209 = vector.load %arg13[%c0_65, %c0_66, %c0_67] : memref<2x2x32xf32, #tpu.memory_space<vmem>>, vector<1x2x32xf32>
    %210 = vector.shape_cast %209 : vector<1x2x32xf32> to vector<2x32xf32>
    %211 = vector.extract_strided_slice %210 {offsets = [0, 0], sizes = [1, 32], strides = [1, 1]} : vector<2x32xf32> to vector<1x32xf32>
    %212 = vector.extract_strided_slice %210 {offsets = [1, 0], sizes = [1, 32], strides = [1, 1]} : vector<2x32xf32> to vector<1x32xf32>
    %cst_68 = arith.constant dense<0.000000e+00> : vector<8xf32>
    %213 = vector.multi_reduction <add>, %208, %cst_68 [1] : vector<8x32xf32> to vector<8xf32>
    %214 = vector.shape_cast %213 : vector<8xf32> to vector<8x1xf32>
    %cst_69 = arith.constant 3.200000e+01 : f32
    %215 = vector.broadcast %cst_69 : f32 to vector<8x1xf32>
    %216 = arith.divf %214, %215 : vector<8x1xf32>
    %217 = vector.broadcast %216 : vector<8x1xf32> to vector<8x32xf32>
    %218 = arith.subf %208, %217 : vector<8x32xf32>
    %219 = arith.mulf %218, %218 : vector<8x32xf32>
    %cst_70 = arith.constant dense<0.000000e+00> : vector<8xf32>
    %220 = vector.multi_reduction <add>, %219, %cst_70 [1] : vector<8x32xf32> to vector<8xf32>
    %221 = vector.shape_cast %220 : vector<8xf32> to vector<8x1xf32>
    %cst_71 = arith.constant 3.200000e+01 : f32
    %222 = vector.broadcast %cst_71 : f32 to vector<8x1xf32>
    %223 = arith.divf %221, %222 : vector<8x1xf32>
    %224 = vector.broadcast %216 : vector<8x1xf32> to vector<8x32xf32>
    %225 = arith.subf %208, %224 : vector<8x32xf32>
    %cst_72 = arith.constant 9.99999974E-6 : f32
    %226 = vector.broadcast %cst_72 : f32 to vector<8x1xf32>
    %227 = arith.addf %223, %226 : vector<8x1xf32>
    %228 = math.rsqrt %227 : vector<8x1xf32>
    %229 = vector.broadcast %228 : vector<8x1xf32> to vector<8x32xf32>
    %230 = arith.mulf %225, %229 : vector<8x32xf32>
    %231 = vector.broadcast %211 : vector<1x32xf32> to vector<8x32xf32>
    %232 = arith.mulf %230, %231 : vector<8x32xf32>
    %233 = vector.broadcast %212 : vector<1x32xf32> to vector<8x32xf32>
    %234 = arith.addf %232, %233 : vector<8x32xf32>
    %235 = arith.negf %234 : vector<8x32xf32>
    %236 = math.exp %235 : vector<8x32xf32>
    %cst_73 = arith.constant 1.000000e+00 : f32
    %237 = vector.broadcast %cst_73 : f32 to vector<8x32xf32>
    %238 = arith.addf %237, %236 : vector<8x32xf32>
    %239 = arith.divf %237, %238 : vector<8x32xf32>
    %240 = arith.mulf %234, %239 : vector<8x32xf32>
    %c0_74 = arith.constant 0 : index
    %c0_75 = arith.constant 0 : index
    %c0_76 = arith.constant 0 : index
    %241 = vector.load %arg14[%c0_74, %c0_75, %c0_76] : memref<2x32x32xbf16, #tpu.memory_space<vmem>>, vector<1x32x32xbf16>
    %242 = vector.shape_cast %241 : vector<1x32x32xbf16> to vector<32x32xbf16>
    %243 = arith.truncf %240 : vector<8x32xf32> to vector<8x32xbf16>
    %cst_77 = arith.constant dense<0.000000e+00> : vector<8x32xf32>
    %244 = tpu.matmul %243, %242, %cst_77 {dimension_numbers = #tpu.dot_dimension_numbers<[1], [0], [0], [1], [0, 0, 1, 1], [], []>} : vector<8x32xbf16>, vector<32x32xbf16>, vector<8x32xf32> -> vector<8x32xf32>
    %245 = arith.addf %244, %208 : vector<8x32xf32>
    %c1 = arith.constant 1 : index
    %c0_78 = arith.constant 0 : index
    %c0_79 = arith.constant 0 : index
    %246 = vector.load %arg10[%c1, %c0_78, %c0_79] : memref<2x2x32xf32, #tpu.memory_space<vmem>>, vector<1x2x32xf32>
    %247 = vector.shape_cast %246 : vector<1x2x32xf32> to vector<2x32xf32>
    %248 = vector.extract_strided_slice %247 {offsets = [0, 0], sizes = [1, 32], strides = [1, 1]} : vector<2x32xf32> to vector<1x32xf32>
    %249 = vector.extract_strided_slice %247 {offsets = [1, 0], sizes = [1, 32], strides = [1, 1]} : vector<2x32xf32> to vector<1x32xf32>
    %cst_80 = arith.constant dense<0.000000e+00> : vector<8xf32>
    %250 = vector.multi_reduction <add>, %245, %cst_80 [1] : vector<8x32xf32> to vector<8xf32>
    %251 = vector.shape_cast %250 : vector<8xf32> to vector<8x1xf32>
    %cst_81 = arith.constant 3.200000e+01 : f32
    %252 = vector.broadcast %cst_81 : f32 to vector<8x1xf32>
    %253 = arith.divf %251, %252 : vector<8x1xf32>
    %254 = vector.broadcast %253 : vector<8x1xf32> to vector<8x32xf32>
    %255 = arith.subf %245, %254 : vector<8x32xf32>
    %256 = arith.mulf %255, %255 : vector<8x32xf32>
    %cst_82 = arith.constant dense<0.000000e+00> : vector<8xf32>
    %257 = vector.multi_reduction <add>, %256, %cst_82 [1] : vector<8x32xf32> to vector<8xf32>
    %258 = vector.shape_cast %257 : vector<8xf32> to vector<8x1xf32>
    %cst_83 = arith.constant 3.200000e+01 : f32
    %259 = vector.broadcast %cst_83 : f32 to vector<8x1xf32>
    %260 = arith.divf %258, %259 : vector<8x1xf32>
    %261 = vector.broadcast %253 : vector<8x1xf32> to vector<8x32xf32>
    %262 = arith.subf %245, %261 : vector<8x32xf32>
    %cst_84 = arith.constant 9.99999974E-6 : f32
    %263 = vector.broadcast %cst_84 : f32 to vector<8x1xf32>
    %264 = arith.addf %260, %263 : vector<8x1xf32>
    %265 = math.rsqrt %264 : vector<8x1xf32>
    %266 = vector.broadcast %265 : vector<8x1xf32> to vector<8x32xf32>
    %267 = arith.mulf %262, %266 : vector<8x32xf32>
    %268 = vector.broadcast %248 : vector<1x32xf32> to vector<8x32xf32>
    %269 = arith.mulf %267, %268 : vector<8x32xf32>
    %270 = vector.broadcast %249 : vector<1x32xf32> to vector<8x32xf32>
    %271 = arith.addf %269, %270 : vector<8x32xf32>
    %c1_85 = arith.constant 1 : index
    %c0_86 = arith.constant 0 : index
    %c0_87 = arith.constant 0 : index
    %272 = vector.load %arg11[%c1_85, %c0_86, %c0_87] : memref<2x32x96xbf16, #tpu.memory_space<vmem>>, vector<1x32x96xbf16>
    %273 = vector.shape_cast %272 : vector<1x32x96xbf16> to vector<32x96xbf16>
    %274 = arith.truncf %271 : vector<8x32xf32> to vector<8x32xbf16>
    %cst_88 = arith.constant dense<0.000000e+00> : vector<8x96xf32>
    %275 = tpu.matmul %274, %273, %cst_88 {dimension_numbers = #tpu.dot_dimension_numbers<[1], [0], [0], [1], [0, 0, 1, 1], [], []>} : vector<8x32xbf16>, vector<32x96xbf16>, vector<8x96xf32> -> vector<8x96xf32>
    %276 = vector.extract_strided_slice %275 {offsets = [0, 0], sizes = [8, 32], strides = [1, 1]} : vector<8x96xf32> to vector<8x32xf32>
    %277 = vector.extract_strided_slice %275 {offsets = [0, 32], sizes = [8, 32], strides = [1, 1]} : vector<8x96xf32> to vector<8x32xf32>
    %278 = vector.extract_strided_slice %275 {offsets = [0, 64], sizes = [8, 32], strides = [1, 1]} : vector<8x96xf32> to vector<8x32xf32>
    %279 = tpu.concatenate %276, %276, %276, %276 in 0 : vector<8x32xf32>, vector<8x32xf32>, vector<8x32xf32>, vector<8x32xf32> -> vector<32x32xf32>
    %280 = arith.mulf %279, %29 : vector<32x32xf32>
    %281 = arith.truncf %280 : vector<32x32xf32> to vector<32x32xbf16>
    %282 = arith.truncf %277 : vector<8x32xf32> to vector<8x32xbf16>
    %cst_89 = arith.constant dense<0.000000e+00> : vector<32x8xf32>
    %283 = tpu.matmul %281, %282, %cst_89 {dimension_numbers = #tpu.dot_dimension_numbers<[1], [1], [0], [0], [0, 0, 1, 0], [], []>} : vector<32x32xbf16>, vector<8x32xbf16>, vector<32x8xf32> -> vector<32x8xf32>
    %cst_90 = arith.constant dense<0xFF800000> : vector<32xf32>
    %284 = vector.multi_reduction <maximumf>, %283, %cst_90 [1] : vector<32x8xf32> to vector<32xf32>
    %285 = vector.shape_cast %284 : vector<32xf32> to vector<32x1xf32>
    %286 = vector.broadcast %285 : vector<32x1xf32> to vector<32x8xf32>
    %287 = arith.subf %283, %286 : vector<32x8xf32>
    %288 = math.exp %287 : vector<32x8xf32>
    %cst_91 = arith.constant dense<0.000000e+00> : vector<32xf32>
    %289 = vector.multi_reduction <add>, %288, %cst_91 [1] : vector<32x8xf32> to vector<32xf32>
    %290 = vector.shape_cast %289 : vector<32xf32> to vector<32x1xf32>
    %291 = vector.broadcast %290 : vector<32x1xf32> to vector<32x8xf32>
    %292 = arith.divf %288, %291 : vector<32x8xf32>
    %293 = arith.truncf %292 : vector<32x8xf32> to vector<32x8xbf16>
    %294 = arith.truncf %278 : vector<8x32xf32> to vector<8x32xbf16>
    %cst_92 = arith.constant dense<0.000000e+00> : vector<32x32xf32>
    %295 = tpu.matmul %293, %294, %cst_92 {dimension_numbers = #tpu.dot_dimension_numbers<[1], [0], [0], [1], [0, 0, 1, 1], [], []>} : vector<32x8xbf16>, vector<8x32xbf16>, vector<32x32xf32> -> vector<32x32xf32>
    %296 = arith.mulf %295, %29 : vector<32x32xf32>
    %c1_93 = arith.constant 1 : index
    %c0_94 = arith.constant 0 : index
    %c0_95 = arith.constant 0 : index
    %297 = vector.load %arg12[%c1_93, %c0_94, %c0_95] : memref<2x32x32xbf16, #tpu.memory_space<vmem>>, vector<1x32x32xbf16>
    %298 = vector.shape_cast %297 : vector<1x32x32xbf16> to vector<32x32xbf16>
    %299 = arith.truncf %296 : vector<32x32xf32> to vector<32x32xbf16>
    %cst_96 = arith.constant dense<0.000000e+00> : vector<32x32xf32>
    %300 = tpu.matmul %299, %298, %cst_96 {dimension_numbers = #tpu.dot_dimension_numbers<[1], [0], [0], [1], [0, 0, 1, 1], [], []>} : vector<32x32xbf16>, vector<32x32xbf16>, vector<32x32xf32> -> vector<32x32xf32>
    %301 = vector.extract_strided_slice %300 {offsets = [0, 0], sizes = [8, 32], strides = [1, 1]} : vector<32x32xf32> to vector<8x32xf32>
    %302 = vector.extract_strided_slice %300 {offsets = [8, 0], sizes = [8, 32], strides = [1, 1]} : vector<32x32xf32> to vector<8x32xf32>
    %303 = arith.addf %301, %302 : vector<8x32xf32>
    %304 = vector.extract_strided_slice %300 {offsets = [16, 0], sizes = [8, 32], strides = [1, 1]} : vector<32x32xf32> to vector<8x32xf32>
    %305 = arith.addf %303, %304 : vector<8x32xf32>
    %306 = vector.extract_strided_slice %300 {offsets = [24, 0], sizes = [8, 32], strides = [1, 1]} : vector<32x32xf32> to vector<8x32xf32>
    %307 = arith.addf %305, %306 : vector<8x32xf32>
    %308 = arith.addf %307, %245 : vector<8x32xf32>
    %c1_97 = arith.constant 1 : index
    %c0_98 = arith.constant 0 : index
    %c0_99 = arith.constant 0 : index
    %309 = vector.load %arg13[%c1_97, %c0_98, %c0_99] : memref<2x2x32xf32, #tpu.memory_space<vmem>>, vector<1x2x32xf32>
    %310 = vector.shape_cast %309 : vector<1x2x32xf32> to vector<2x32xf32>
    %311 = vector.extract_strided_slice %310 {offsets = [0, 0], sizes = [1, 32], strides = [1, 1]} : vector<2x32xf32> to vector<1x32xf32>
    %312 = vector.extract_strided_slice %310 {offsets = [1, 0], sizes = [1, 32], strides = [1, 1]} : vector<2x32xf32> to vector<1x32xf32>
    %cst_100 = arith.constant dense<0.000000e+00> : vector<8xf32>
    %313 = vector.multi_reduction <add>, %308, %cst_100 [1] : vector<8x32xf32> to vector<8xf32>
    %314 = vector.shape_cast %313 : vector<8xf32> to vector<8x1xf32>
    %cst_101 = arith.constant 3.200000e+01 : f32
    %315 = vector.broadcast %cst_101 : f32 to vector<8x1xf32>
    %316 = arith.divf %314, %315 : vector<8x1xf32>
    %317 = vector.broadcast %316 : vector<8x1xf32> to vector<8x32xf32>
    %318 = arith.subf %308, %317 : vector<8x32xf32>
    %319 = arith.mulf %318, %318 : vector<8x32xf32>
    %cst_102 = arith.constant dense<0.000000e+00> : vector<8xf32>
    %320 = vector.multi_reduction <add>, %319, %cst_102 [1] : vector<8x32xf32> to vector<8xf32>
    %321 = vector.shape_cast %320 : vector<8xf32> to vector<8x1xf32>
    %cst_103 = arith.constant 3.200000e+01 : f32
    %322 = vector.broadcast %cst_103 : f32 to vector<8x1xf32>
    %323 = arith.divf %321, %322 : vector<8x1xf32>
    %324 = vector.broadcast %316 : vector<8x1xf32> to vector<8x32xf32>
    %325 = arith.subf %308, %324 : vector<8x32xf32>
    %cst_104 = arith.constant 9.99999974E-6 : f32
    %326 = vector.broadcast %cst_104 : f32 to vector<8x1xf32>
    %327 = arith.addf %323, %326 : vector<8x1xf32>
    %328 = math.rsqrt %327 : vector<8x1xf32>
    %329 = vector.broadcast %328 : vector<8x1xf32> to vector<8x32xf32>
    %330 = arith.mulf %325, %329 : vector<8x32xf32>
    %331 = vector.broadcast %311 : vector<1x32xf32> to vector<8x32xf32>
    %332 = arith.mulf %330, %331 : vector<8x32xf32>
    %333 = vector.broadcast %312 : vector<1x32xf32> to vector<8x32xf32>
    %334 = arith.addf %332, %333 : vector<8x32xf32>
    %335 = arith.negf %334 : vector<8x32xf32>
    %336 = math.exp %335 : vector<8x32xf32>
    %cst_105 = arith.constant 1.000000e+00 : f32
    %337 = vector.broadcast %cst_105 : f32 to vector<8x32xf32>
    %338 = arith.addf %337, %336 : vector<8x32xf32>
    %339 = arith.divf %337, %338 : vector<8x32xf32>
    %340 = arith.mulf %334, %339 : vector<8x32xf32>
    %c1_106 = arith.constant 1 : index
    %c0_107 = arith.constant 0 : index
    %c0_108 = arith.constant 0 : index
    %341 = vector.load %arg14[%c1_106, %c0_107, %c0_108] : memref<2x32x32xbf16, #tpu.memory_space<vmem>>, vector<1x32x32xbf16>
    %342 = vector.shape_cast %341 : vector<1x32x32xbf16> to vector<32x32xbf16>
    %343 = arith.truncf %340 : vector<8x32xf32> to vector<8x32xbf16>
    %cst_109 = arith.constant dense<0.000000e+00> : vector<8x32xf32>
    %344 = tpu.matmul %343, %342, %cst_109 {dimension_numbers = #tpu.dot_dimension_numbers<[1], [0], [0], [1], [0, 0, 1, 1], [], []>} : vector<8x32xbf16>, vector<32x32xbf16>, vector<8x32xf32> -> vector<8x32xf32>
    %345 = arith.addf %344, %308 : vector<8x32xf32>
    %c0_110 = arith.constant 0 : index
    %c0_111 = arith.constant 0 : index
    %c0_112 = arith.constant 0 : index
    %346 = vector.load %arg15[%c0_110, %c0_111, %c0_112] : memref<2x8x32xf32, #tpu.memory_space<vmem>>, vector<1x8x32xf32>
    %347 = vector.shape_cast %346 : vector<1x8x32xf32> to vector<8x32xf32>
    %348 = vector.shape_cast %345 : vector<8x32xf32> to vector<1x8x32xf32>
    tpu.vector_store %arg15[%c0_110, %c0_111, %c0_112], %348 {strides = array<i32>} : memref<2x8x32xf32, #tpu.memory_space<vmem>>, vector<1x8x32xf32>,
    %c1_113 = arith.constant 1 : index
    %c0_114 = arith.constant 0 : index
    %c0_115 = arith.constant 0 : index
    %349 = vector.load %arg1[%c1_113, %c0_114, %c0_115] : memref<2x8x32xf32, #tpu.memory_space<vmem>>, vector<1x8x32xf32>
    %350 = vector.shape_cast %349 : vector<1x8x32xf32> to vector<8x32xf32>
    %c1_116 = arith.constant 1 : index
    %c0_117 = arith.constant 0 : index
    %c0_118 = arith.constant 0 : index
    %351 = vector.load %arg2[%c1_116, %c0_117, %c0_118] : memref<2x16x32xf32, #tpu.memory_space<vmem>>, vector<1x16x32xf32>
    %352 = vector.shape_cast %351 : vector<1x16x32xf32> to vector<16x32xf32>
    %c0_119 = arith.constant 0 : index
    %c0_120 = arith.constant 0 : index
    %353 = vector.load %arg3[%c0_119, %c0_120] : memref<2x32xf32, #tpu.memory_space<vmem>>, vector<2x32xf32>
    %354 = vector.extract_strided_slice %353 {offsets = [0, 0], sizes = [1, 32], strides = [1, 1]} : vector<2x32xf32> to vector<1x32xf32>
    %355 = vector.extract_strided_slice %353 {offsets = [1, 0], sizes = [1, 32], strides = [1, 1]} : vector<2x32xf32> to vector<1x32xf32>
    %cst_121 = arith.constant dense<0.000000e+00> : vector<8xf32>
    %356 = vector.multi_reduction <add>, %350, %cst_121 [1] : vector<8x32xf32> to vector<8xf32>
    %357 = vector.shape_cast %356 : vector<8xf32> to vector<8x1xf32>
    %cst_122 = arith.constant 3.200000e+01 : f32
    %358 = vector.broadcast %cst_122 : f32 to vector<8x1xf32>
    %359 = arith.divf %357, %358 : vector<8x1xf32>
    %360 = vector.broadcast %359 : vector<8x1xf32> to vector<8x32xf32>
    %361 = arith.subf %350, %360 : vector<8x32xf32>
    %362 = arith.mulf %361, %361 : vector<8x32xf32>
    %cst_123 = arith.constant dense<0.000000e+00> : vector<8xf32>
    %363 = vector.multi_reduction <add>, %362, %cst_123 [1] : vector<8x32xf32> to vector<8xf32>
    %364 = vector.shape_cast %363 : vector<8xf32> to vector<8x1xf32>
    %cst_124 = arith.constant 3.200000e+01 : f32
    %365 = vector.broadcast %cst_124 : f32 to vector<8x1xf32>
    %366 = arith.divf %364, %365 : vector<8x1xf32>
    %367 = vector.broadcast %359 : vector<8x1xf32> to vector<8x32xf32>
    %368 = arith.subf %350, %367 : vector<8x32xf32>
    %cst_125 = arith.constant 9.99999974E-6 : f32
    %369 = vector.broadcast %cst_125 : f32 to vector<8x1xf32>
    %370 = arith.addf %366, %369 : vector<8x1xf32>
    %371 = math.rsqrt %370 : vector<8x1xf32>
    %372 = vector.broadcast %371 : vector<8x1xf32> to vector<8x32xf32>
    %373 = arith.mulf %368, %372 : vector<8x32xf32>
    %374 = vector.broadcast %354 : vector<1x32xf32> to vector<8x32xf32>
    %375 = arith.mulf %373, %374 : vector<8x32xf32>
    %376 = vector.broadcast %355 : vector<1x32xf32> to vector<8x32xf32>
    %377 = arith.addf %375, %376 : vector<8x32xf32>
    %c0_126 = arith.constant 0 : index
    %c0_127 = arith.constant 0 : index
    %378 = vector.load %arg4[%c0_126, %c0_127] : memref<2x32xf32, #tpu.memory_space<vmem>>, vector<2x32xf32>
    %379 = vector.extract_strided_slice %378 {offsets = [0, 0], sizes = [1, 32], strides = [1, 1]} : vector<2x32xf32> to vector<1x32xf32>
    %380 = vector.extract_strided_slice %378 {offsets = [1, 0], sizes = [1, 32], strides = [1, 1]} : vector<2x32xf32> to vector<1x32xf32>
    %cst_128 = arith.constant dense<0.000000e+00> : vector<16xf32>
    %381 = vector.multi_reduction <add>, %352, %cst_128 [1] : vector<16x32xf32> to vector<16xf32>
    %382 = vector.shape_cast %381 : vector<16xf32> to vector<16x1xf32>
    %cst_129 = arith.constant 3.200000e+01 : f32
    %383 = vector.broadcast %cst_129 : f32 to vector<16x1xf32>
    %384 = arith.divf %382, %383 : vector<16x1xf32>
    %385 = vector.broadcast %384 : vector<16x1xf32> to vector<16x32xf32>
    %386 = arith.subf %352, %385 : vector<16x32xf32>
    %387 = arith.mulf %386, %386 : vector<16x32xf32>
    %cst_130 = arith.constant dense<0.000000e+00> : vector<16xf32>
    %388 = vector.multi_reduction <add>, %387, %cst_130 [1] : vector<16x32xf32> to vector<16xf32>
    %389 = vector.shape_cast %388 : vector<16xf32> to vector<16x1xf32>
    %cst_131 = arith.constant 3.200000e+01 : f32
    %390 = vector.broadcast %cst_131 : f32 to vector<16x1xf32>
    %391 = arith.divf %389, %390 : vector<16x1xf32>
    %392 = vector.broadcast %384 : vector<16x1xf32> to vector<16x32xf32>
    %393 = arith.subf %352, %392 : vector<16x32xf32>
    %cst_132 = arith.constant 9.99999974E-6 : f32
    %394 = vector.broadcast %cst_132 : f32 to vector<16x1xf32>
    %395 = arith.addf %391, %394 : vector<16x1xf32>
    %396 = math.rsqrt %395 : vector<16x1xf32>
    %397 = vector.broadcast %396 : vector<16x1xf32> to vector<16x32xf32>
    %398 = arith.mulf %393, %397 : vector<16x32xf32>
    %399 = vector.broadcast %379 : vector<1x32xf32> to vector<16x32xf32>
    %400 = arith.mulf %398, %399 : vector<16x32xf32>
    %401 = vector.broadcast %380 : vector<1x32xf32> to vector<16x32xf32>
    %402 = arith.addf %400, %401 : vector<16x32xf32>
    %c0_133 = arith.constant 0 : index
    %c0_134 = arith.constant 0 : index
    %403 = vector.load %arg5[%c0_133, %c0_134] : memref<32x32xbf16, #tpu.memory_space<vmem>>, vector<32x32xbf16>
    %404 = arith.truncf %377 : vector<8x32xf32> to vector<8x32xbf16>
    %cst_135 = arith.constant dense<0.000000e+00> : vector<8x32xf32>
    %405 = tpu.matmul %404, %403, %cst_135 {dimension_numbers = #tpu.dot_dimension_numbers<[1], [0], [0], [1], [0, 0, 1, 1], [], []>} : vector<8x32xbf16>, vector<32x32xbf16>, vector<8x32xf32> -> vector<8x32xf32>
    %c0_136 = arith.constant 0 : index
    %c0_137 = arith.constant 0 : index
    %406 = vector.load %arg6[%c0_136, %c0_137] : memref<32x64xbf16, #tpu.memory_space<vmem>>, vector<32x64xbf16>
    %407 = arith.truncf %402 : vector<16x32xf32> to vector<16x32xbf16>
    %cst_138 = arith.constant dense<0.000000e+00> : vector<16x64xf32>
    %408 = tpu.matmul %407, %406, %cst_138 {dimension_numbers = #tpu.dot_dimension_numbers<[1], [0], [0], [1], [0, 0, 1, 1], [], []>} : vector<16x32xbf16>, vector<32x64xbf16>, vector<16x64xf32> -> vector<16x64xf32>
    %409 = vector.extract_strided_slice %408 {offsets = [0, 0], sizes = [16, 32], strides = [1, 1]} : vector<16x64xf32> to vector<16x32xf32>
    %410 = vector.extract_strided_slice %408 {offsets = [0, 32], sizes = [16, 32], strides = [1, 1]} : vector<16x64xf32> to vector<16x32xf32>
    %411 = arith.truncf %405 : vector<8x32xf32> to vector<8x32xbf16>
    %412 = arith.truncf %409 : vector<16x32xf32> to vector<16x32xbf16>
    %cst_139 = arith.constant dense<0.000000e+00> : vector<8x16xf32>
    %413 = tpu.matmul %411, %412, %cst_139 {dimension_numbers = #tpu.dot_dimension_numbers<[1], [1], [0], [0], [0, 0, 1, 0], [], []>} : vector<8x32xbf16>, vector<16x32xbf16>, vector<8x16xf32> -> vector<8x16xf32>
    %cst_140 = arith.constant dense<0xFF800000> : vector<8xf32>
    %414 = vector.multi_reduction <maximumf>, %413, %cst_140 [1] : vector<8x16xf32> to vector<8xf32>
    %415 = vector.shape_cast %414 : vector<8xf32> to vector<8x1xf32>
    %416 = vector.broadcast %415 : vector<8x1xf32> to vector<8x16xf32>
    %417 = arith.subf %413, %416 : vector<8x16xf32>
    %418 = math.exp %417 : vector<8x16xf32>
    %cst_141 = arith.constant dense<0.000000e+00> : vector<8xf32>
    %419 = vector.multi_reduction <add>, %418, %cst_141 [1] : vector<8x16xf32> to vector<8xf32>
    %420 = vector.shape_cast %419 : vector<8xf32> to vector<8x1xf32>
    %421 = vector.broadcast %420 : vector<8x1xf32> to vector<8x16xf32>
    %422 = arith.divf %418, %421 : vector<8x16xf32>
    %423 = arith.truncf %422 : vector<8x16xf32> to vector<8x16xbf16>
    %424 = arith.truncf %410 : vector<16x32xf32> to vector<16x32xbf16>
    %cst_142 = arith.constant dense<0.000000e+00> : vector<8x32xf32>
    %425 = tpu.matmul %423, %424, %cst_142 {dimension_numbers = #tpu.dot_dimension_numbers<[1], [0], [0], [1], [0, 0, 1, 1], [], []>} : vector<8x16xbf16>, vector<16x32xbf16>, vector<8x32xf32> -> vector<8x32xf32>
    %c0_143 = arith.constant 0 : index
    %c0_144 = arith.constant 0 : index
    %426 = vector.load %arg7[%c0_143, %c0_144] : memref<32x32xbf16, #tpu.memory_space<vmem>>, vector<32x32xbf16>
    %427 = arith.truncf %425 : vector<8x32xf32> to vector<8x32xbf16>
    %cst_145 = arith.constant dense<0.000000e+00> : vector<8x32xf32>
    %428 = tpu.matmul %427, %426, %cst_145 {dimension_numbers = #tpu.dot_dimension_numbers<[1], [0], [0], [1], [0, 0, 1, 1], [], []>} : vector<8x32xbf16>, vector<32x32xbf16>, vector<8x32xf32> -> vector<8x32xf32>
    %429 = arith.addf %428, %350 : vector<8x32xf32>
    %c0_146 = arith.constant 0 : index
    %c0_147 = arith.constant 0 : index
    %430 = vector.load %arg8[%c0_146, %c0_147] : memref<2x32xf32, #tpu.memory_space<vmem>>, vector<2x32xf32>
    %431 = vector.extract_strided_slice %430 {offsets = [0, 0], sizes = [1, 32], strides = [1, 1]} : vector<2x32xf32> to vector<1x32xf32>
    %432 = vector.extract_strided_slice %430 {offsets = [1, 0], sizes = [1, 32], strides = [1, 1]} : vector<2x32xf32> to vector<1x32xf32>
    %cst_148 = arith.constant dense<0.000000e+00> : vector<8xf32>
    %433 = vector.multi_reduction <add>, %429, %cst_148 [1] : vector<8x32xf32> to vector<8xf32>
    %434 = vector.shape_cast %433 : vector<8xf32> to vector<8x1xf32>
    %cst_149 = arith.constant 3.200000e+01 : f32
    %435 = vector.broadcast %cst_149 : f32 to vector<8x1xf32>
    %436 = arith.divf %434, %435 : vector<8x1xf32>
    %437 = vector.broadcast %436 : vector<8x1xf32> to vector<8x32xf32>
    %438 = arith.subf %429, %437 : vector<8x32xf32>
    %439 = arith.mulf %438, %438 : vector<8x32xf32>
    %cst_150 = arith.constant dense<0.000000e+00> : vector<8xf32>
    %440 = vector.multi_reduction <add>, %439, %cst_150 [1] : vector<8x32xf32> to vector<8xf32>
    %441 = vector.shape_cast %440 : vector<8xf32> to vector<8x1xf32>
    %cst_151 = arith.constant 3.200000e+01 : f32
    %442 = vector.broadcast %cst_151 : f32 to vector<8x1xf32>
    %443 = arith.divf %441, %442 : vector<8x1xf32>
    %444 = vector.broadcast %436 : vector<8x1xf32> to vector<8x32xf32>
    %445 = arith.subf %429, %444 : vector<8x32xf32>
    %cst_152 = arith.constant 9.99999974E-6 : f32
    %446 = vector.broadcast %cst_152 : f32 to vector<8x1xf32>
    %447 = arith.addf %443, %446 : vector<8x1xf32>
    %448 = math.rsqrt %447 : vector<8x1xf32>
    %449 = vector.broadcast %448 : vector<8x1xf32> to vector<8x32xf32>
    %450 = arith.mulf %445, %449 : vector<8x32xf32>
    %451 = vector.broadcast %431 : vector<1x32xf32> to vector<8x32xf32>
    %452 = arith.mulf %450, %451 : vector<8x32xf32>
    %453 = vector.broadcast %432 : vector<1x32xf32> to vector<8x32xf32>
    %454 = arith.addf %452, %453 : vector<8x32xf32>
    %455 = arith.negf %454 : vector<8x32xf32>
    %456 = math.exp %455 : vector<8x32xf32>
    %cst_153 = arith.constant 1.000000e+00 : f32
    %457 = vector.broadcast %cst_153 : f32 to vector<8x32xf32>
    %458 = arith.addf %457, %456 : vector<8x32xf32>
    %459 = arith.divf %457, %458 : vector<8x32xf32>
    %460 = arith.mulf %454, %459 : vector<8x32xf32>
    %c0_154 = arith.constant 0 : index
    %c0_155 = arith.constant 0 : index
    %461 = vector.load %arg9[%c0_154, %c0_155] : memref<32x32xbf16, #tpu.memory_space<vmem>>, vector<32x32xbf16>
    %462 = arith.truncf %460 : vector<8x32xf32> to vector<8x32xbf16>
    %cst_156 = arith.constant dense<0.000000e+00> : vector<8x32xf32>
    %463 = tpu.matmul %462, %461, %cst_156 {dimension_numbers = #tpu.dot_dimension_numbers<[1], [0], [0], [1], [0, 0, 1, 1], [], []>} : vector<8x32xbf16>, vector<32x32xbf16>, vector<8x32xf32> -> vector<8x32xf32>
    %464 = arith.addf %463, %429 : vector<8x32xf32>
    %c0_157 = arith.constant 0 : index
    %c0_158 = arith.constant 0 : index
    %c0_159 = arith.constant 0 : index
    %465 = vector.load %arg10[%c0_157, %c0_158, %c0_159] : memref<2x2x32xf32, #tpu.memory_space<vmem>>, vector<1x2x32xf32>
    %466 = vector.shape_cast %465 : vector<1x2x32xf32> to vector<2x32xf32>
    %467 = vector.extract_strided_slice %466 {offsets = [0, 0], sizes = [1, 32], strides = [1, 1]} : vector<2x32xf32> to vector<1x32xf32>
    %468 = vector.extract_strided_slice %466 {offsets = [1, 0], sizes = [1, 32], strides = [1, 1]} : vector<2x32xf32> to vector<1x32xf32>
    %cst_160 = arith.constant dense<0.000000e+00> : vector<8xf32>
    %469 = vector.multi_reduction <add>, %464, %cst_160 [1] : vector<8x32xf32> to vector<8xf32>
    %470 = vector.shape_cast %469 : vector<8xf32> to vector<8x1xf32>
    %cst_161 = arith.constant 3.200000e+01 : f32
    %471 = vector.broadcast %cst_161 : f32 to vector<8x1xf32>
    %472 = arith.divf %470, %471 : vector<8x1xf32>
    %473 = vector.broadcast %472 : vector<8x1xf32> to vector<8x32xf32>
    %474 = arith.subf %464, %473 : vector<8x32xf32>
    %475 = arith.mulf %474, %474 : vector<8x32xf32>
    %cst_162 = arith.constant dense<0.000000e+00> : vector<8xf32>
    %476 = vector.multi_reduction <add>, %475, %cst_162 [1] : vector<8x32xf32> to vector<8xf32>
    %477 = vector.shape_cast %476 : vector<8xf32> to vector<8x1xf32>
    %cst_163 = arith.constant 3.200000e+01 : f32
    %478 = vector.broadcast %cst_163 : f32 to vector<8x1xf32>
    %479 = arith.divf %477, %478 : vector<8x1xf32>
    %480 = vector.broadcast %472 : vector<8x1xf32> to vector<8x32xf32>
    %481 = arith.subf %464, %480 : vector<8x32xf32>
    %cst_164 = arith.constant 9.99999974E-6 : f32
    %482 = vector.broadcast %cst_164 : f32 to vector<8x1xf32>
    %483 = arith.addf %479, %482 : vector<8x1xf32>
    %484 = math.rsqrt %483 : vector<8x1xf32>
    %485 = vector.broadcast %484 : vector<8x1xf32> to vector<8x32xf32>
    %486 = arith.mulf %481, %485 : vector<8x32xf32>
    %487 = vector.broadcast %467 : vector<1x32xf32> to vector<8x32xf32>
    %488 = arith.mulf %486, %487 : vector<8x32xf32>
    %489 = vector.broadcast %468 : vector<1x32xf32> to vector<8x32xf32>
    %490 = arith.addf %488, %489 : vector<8x32xf32>
    %c0_165 = arith.constant 0 : index
    %c0_166 = arith.constant 0 : index
    %c0_167 = arith.constant 0 : index
    %491 = vector.load %arg11[%c0_165, %c0_166, %c0_167] : memref<2x32x96xbf16, #tpu.memory_space<vmem>>, vector<1x32x96xbf16>
    %492 = vector.shape_cast %491 : vector<1x32x96xbf16> to vector<32x96xbf16>
    %493 = arith.truncf %490 : vector<8x32xf32> to vector<8x32xbf16>
    %cst_168 = arith.constant dense<0.000000e+00> : vector<8x96xf32>
    %494 = tpu.matmul %493, %492, %cst_168 {dimension_numbers = #tpu.dot_dimension_numbers<[1], [0], [0], [1], [0, 0, 1, 1], [], []>} : vector<8x32xbf16>, vector<32x96xbf16>, vector<8x96xf32> -> vector<8x96xf32>
    %495 = vector.extract_strided_slice %494 {offsets = [0, 0], sizes = [8, 32], strides = [1, 1]} : vector<8x96xf32> to vector<8x32xf32>
    %496 = vector.extract_strided_slice %494 {offsets = [0, 32], sizes = [8, 32], strides = [1, 1]} : vector<8x96xf32> to vector<8x32xf32>
    %497 = vector.extract_strided_slice %494 {offsets = [0, 64], sizes = [8, 32], strides = [1, 1]} : vector<8x96xf32> to vector<8x32xf32>
    %498 = tpu.concatenate %495, %495, %495, %495 in 0 : vector<8x32xf32>, vector<8x32xf32>, vector<8x32xf32>, vector<8x32xf32> -> vector<32x32xf32>
    %499 = arith.mulf %498, %29 : vector<32x32xf32>
    %500 = arith.truncf %499 : vector<32x32xf32> to vector<32x32xbf16>
    %501 = arith.truncf %496 : vector<8x32xf32> to vector<8x32xbf16>
    %cst_169 = arith.constant dense<0.000000e+00> : vector<32x8xf32>
    %502 = tpu.matmul %500, %501, %cst_169 {dimension_numbers = #tpu.dot_dimension_numbers<[1], [1], [0], [0], [0, 0, 1, 0], [], []>} : vector<32x32xbf16>, vector<8x32xbf16>, vector<32x8xf32> -> vector<32x8xf32>
    %cst_170 = arith.constant dense<0xFF800000> : vector<32xf32>
    %503 = vector.multi_reduction <maximumf>, %502, %cst_170 [1] : vector<32x8xf32> to vector<32xf32>
    %504 = vector.shape_cast %503 : vector<32xf32> to vector<32x1xf32>
    %505 = vector.broadcast %504 : vector<32x1xf32> to vector<32x8xf32>
    %506 = arith.subf %502, %505 : vector<32x8xf32>
    %507 = math.exp %506 : vector<32x8xf32>
    %cst_171 = arith.constant dense<0.000000e+00> : vector<32xf32>
    %508 = vector.multi_reduction <add>, %507, %cst_171 [1] : vector<32x8xf32> to vector<32xf32>
    %509 = vector.shape_cast %508 : vector<32xf32> to vector<32x1xf32>
    %510 = vector.broadcast %509 : vector<32x1xf32> to vector<32x8xf32>
    %511 = arith.divf %507, %510 : vector<32x8xf32>
    %512 = arith.truncf %511 : vector<32x8xf32> to vector<32x8xbf16>
    %513 = arith.truncf %497 : vector<8x32xf32> to vector<8x32xbf16>
    %cst_172 = arith.constant dense<0.000000e+00> : vector<32x32xf32>
    %514 = tpu.matmul %512, %513, %cst_172 {dimension_numbers = #tpu.dot_dimension_numbers<[1], [0], [0], [1], [0, 0, 1, 1], [], []>} : vector<32x8xbf16>, vector<8x32xbf16>, vector<32x32xf32> -> vector<32x32xf32>
    %515 = arith.mulf %514, %29 : vector<32x32xf32>
    %c0_173 = arith.constant 0 : index
    %c0_174 = arith.constant 0 : index
    %c0_175 = arith.constant 0 : index
    %516 = vector.load %arg12[%c0_173, %c0_174, %c0_175] : memref<2x32x32xbf16, #tpu.memory_space<vmem>>, vector<1x32x32xbf16>
    %517 = vector.shape_cast %516 : vector<1x32x32xbf16> to vector<32x32xbf16>
    %518 = arith.truncf %515 : vector<32x32xf32> to vector<32x32xbf16>
    %cst_176 = arith.constant dense<0.000000e+00> : vector<32x32xf32>
    %519 = tpu.matmul %518, %517, %cst_176 {dimension_numbers = #tpu.dot_dimension_numbers<[1], [0], [0], [1], [0, 0, 1, 1], [], []>} : vector<32x32xbf16>, vector<32x32xbf16>, vector<32x32xf32> -> vector<32x32xf32>
    %520 = vector.extract_strided_slice %519 {offsets = [0, 0], sizes = [8, 32], strides = [1, 1]} : vector<32x32xf32> to vector<8x32xf32>
    %521 = vector.extract_strided_slice %519 {offsets = [8, 0], sizes = [8, 32], strides = [1, 1]} : vector<32x32xf32> to vector<8x32xf32>
    %522 = arith.addf %520, %521 : vector<8x32xf32>
    %523 = vector.extract_strided_slice %519 {offsets = [16, 0], sizes = [8, 32], strides = [1, 1]} : vector<32x32xf32> to vector<8x32xf32>
    %524 = arith.addf %522, %523 : vector<8x32xf32>
    %525 = vector.extract_strided_slice %519 {offsets = [24, 0], sizes = [8, 32], strides = [1, 1]} : vector<32x32xf32> to vector<8x32xf32>
    %526 = arith.addf %524, %525 : vector<8x32xf32>
    %527 = arith.addf %526, %464 : vector<8x32xf32>
    %c0_177 = arith.constant 0 : index
    %c0_178 = arith.constant 0 : index
    %c0_179 = arith.constant 0 : index
    %528 = vector.load %arg13[%c0_177, %c0_178, %c0_179] : memref<2x2x32xf32, #tpu.memory_space<vmem>>, vector<1x2x32xf32>
    %529 = vector.shape_cast %528 : vector<1x2x32xf32> to vector<2x32xf32>
    %530 = vector.extract_strided_slice %529 {offsets = [0, 0], sizes = [1, 32], strides = [1, 1]} : vector<2x32xf32> to vector<1x32xf32>
    %531 = vector.extract_strided_slice %529 {offsets = [1, 0], sizes = [1, 32], strides = [1, 1]} : vector<2x32xf32> to vector<1x32xf32>
    %cst_180 = arith.constant dense<0.000000e+00> : vector<8xf32>
    %532 = vector.multi_reduction <add>, %527, %cst_180 [1] : vector<8x32xf32> to vector<8xf32>
    %533 = vector.shape_cast %532 : vector<8xf32> to vector<8x1xf32>
    %cst_181 = arith.constant 3.200000e+01 : f32
    %534 = vector.broadcast %cst_181 : f32 to vector<8x1xf32>
    %535 = arith.divf %533, %534 : vector<8x1xf32>
    %536 = vector.broadcast %535 : vector<8x1xf32> to vector<8x32xf32>
    %537 = arith.subf %527, %536 : vector<8x32xf32>
    %538 = arith.mulf %537, %537 : vector<8x32xf32>
    %cst_182 = arith.constant dense<0.000000e+00> : vector<8xf32>
    %539 = vector.multi_reduction <add>, %538, %cst_182 [1] : vector<8x32xf32> to vector<8xf32>
    %540 = vector.shape_cast %539 : vector<8xf32> to vector<8x1xf32>
    %cst_183 = arith.constant 3.200000e+01 : f32
    %541 = vector.broadcast %cst_183 : f32 to vector<8x1xf32>
    %542 = arith.divf %540, %541 : vector<8x1xf32>
    %543 = vector.broadcast %535 : vector<8x1xf32> to vector<8x32xf32>
    %544 = arith.subf %527, %543 : vector<8x32xf32>
    %cst_184 = arith.constant 9.99999974E-6 : f32
    %545 = vector.broadcast %cst_184 : f32 to vector<8x1xf32>
    %546 = arith.addf %542, %545 : vector<8x1xf32>
    %547 = math.rsqrt %546 : vector<8x1xf32>
    %548 = vector.broadcast %547 : vector<8x1xf32> to vector<8x32xf32>
    %549 = arith.mulf %544, %548 : vector<8x32xf32>
    %550 = vector.broadcast %530 : vector<1x32xf32> to vector<8x32xf32>
    %551 = arith.mulf %549, %550 : vector<8x32xf32>
    %552 = vector.broadcast %531 : vector<1x32xf32> to vector<8x32xf32>
    %553 = arith.addf %551, %552 : vector<8x32xf32>
    %554 = arith.negf %553 : vector<8x32xf32>
    %555 = math.exp %554 : vector<8x32xf32>
    %cst_185 = arith.constant 1.000000e+00 : f32
    %556 = vector.broadcast %cst_185 : f32 to vector<8x32xf32>
    %557 = arith.addf %556, %555 : vector<8x32xf32>
    %558 = arith.divf %556, %557 : vector<8x32xf32>
    %559 = arith.mulf %553, %558 : vector<8x32xf32>
    %c0_186 = arith.constant 0 : index
    %c0_187 = arith.constant 0 : index
    %c0_188 = arith.constant 0 : index
    %560 = vector.load %arg14[%c0_186, %c0_187, %c0_188] : memref<2x32x32xbf16, #tpu.memory_space<vmem>>, vector<1x32x32xbf16>
    %561 = vector.shape_cast %560 : vector<1x32x32xbf16> to vector<32x32xbf16>
    %562 = arith.truncf %559 : vector<8x32xf32> to vector<8x32xbf16>
    %cst_189 = arith.constant dense<0.000000e+00> : vector<8x32xf32>
    %563 = tpu.matmul %562, %561, %cst_189 {dimension_numbers = #tpu.dot_dimension_numbers<[1], [0], [0], [1], [0, 0, 1, 1], [], []>} : vector<8x32xbf16>, vector<32x32xbf16>, vector<8x32xf32> -> vector<8x32xf32>
    %564 = arith.addf %563, %527 : vector<8x32xf32>
    %c1_190 = arith.constant 1 : index
    %c0_191 = arith.constant 0 : index
    %c0_192 = arith.constant 0 : index
    %565 = vector.load %arg10[%c1_190, %c0_191, %c0_192] : memref<2x2x32xf32, #tpu.memory_space<vmem>>, vector<1x2x32xf32>
    %566 = vector.shape_cast %565 : vector<1x2x32xf32> to vector<2x32xf32>
    %567 = vector.extract_strided_slice %566 {offsets = [0, 0], sizes = [1, 32], strides = [1, 1]} : vector<2x32xf32> to vector<1x32xf32>
    %568 = vector.extract_strided_slice %566 {offsets = [1, 0], sizes = [1, 32], strides = [1, 1]} : vector<2x32xf32> to vector<1x32xf32>
    %cst_193 = arith.constant dense<0.000000e+00> : vector<8xf32>
    %569 = vector.multi_reduction <add>, %564, %cst_193 [1] : vector<8x32xf32> to vector<8xf32>
    %570 = vector.shape_cast %569 : vector<8xf32> to vector<8x1xf32>
    %cst_194 = arith.constant 3.200000e+01 : f32
    %571 = vector.broadcast %cst_194 : f32 to vector<8x1xf32>
    %572 = arith.divf %570, %571 : vector<8x1xf32>
    %573 = vector.broadcast %572 : vector<8x1xf32> to vector<8x32xf32>
    %574 = arith.subf %564, %573 : vector<8x32xf32>
    %575 = arith.mulf %574, %574 : vector<8x32xf32>
    %cst_195 = arith.constant dense<0.000000e+00> : vector<8xf32>
    %576 = vector.multi_reduction <add>, %575, %cst_195 [1] : vector<8x32xf32> to vector<8xf32>
    %577 = vector.shape_cast %576 : vector<8xf32> to vector<8x1xf32>
    %cst_196 = arith.constant 3.200000e+01 : f32
    %578 = vector.broadcast %cst_196 : f32 to vector<8x1xf32>
    %579 = arith.divf %577, %578 : vector<8x1xf32>
    %580 = vector.broadcast %572 : vector<8x1xf32> to vector<8x32xf32>
    %581 = arith.subf %564, %580 : vector<8x32xf32>
    %cst_197 = arith.constant 9.99999974E-6 : f32
    %582 = vector.broadcast %cst_197 : f32 to vector<8x1xf32>
    %583 = arith.addf %579, %582 : vector<8x1xf32>
    %584 = math.rsqrt %583 : vector<8x1xf32>
    %585 = vector.broadcast %584 : vector<8x1xf32> to vector<8x32xf32>
    %586 = arith.mulf %581, %585 : vector<8x32xf32>
    %587 = vector.broadcast %567 : vector<1x32xf32> to vector<8x32xf32>
    %588 = arith.mulf %586, %587 : vector<8x32xf32>
    %589 = vector.broadcast %568 : vector<1x32xf32> to vector<8x32xf32>
    %590 = arith.addf %588, %589 : vector<8x32xf32>
    %c1_198 = arith.constant 1 : index
    %c0_199 = arith.constant 0 : index
    %c0_200 = arith.constant 0 : index
    %591 = vector.load %arg11[%c1_198, %c0_199, %c0_200] : memref<2x32x96xbf16, #tpu.memory_space<vmem>>, vector<1x32x96xbf16>
    %592 = vector.shape_cast %591 : vector<1x32x96xbf16> to vector<32x96xbf16>
    %593 = arith.truncf %590 : vector<8x32xf32> to vector<8x32xbf16>
    %cst_201 = arith.constant dense<0.000000e+00> : vector<8x96xf32>
    %594 = tpu.matmul %593, %592, %cst_201 {dimension_numbers = #tpu.dot_dimension_numbers<[1], [0], [0], [1], [0, 0, 1, 1], [], []>} : vector<8x32xbf16>, vector<32x96xbf16>, vector<8x96xf32> -> vector<8x96xf32>
    %595 = vector.extract_strided_slice %594 {offsets = [0, 0], sizes = [8, 32], strides = [1, 1]} : vector<8x96xf32> to vector<8x32xf32>
    %596 = vector.extract_strided_slice %594 {offsets = [0, 32], sizes = [8, 32], strides = [1, 1]} : vector<8x96xf32> to vector<8x32xf32>
    %597 = vector.extract_strided_slice %594 {offsets = [0, 64], sizes = [8, 32], strides = [1, 1]} : vector<8x96xf32> to vector<8x32xf32>
    %598 = tpu.concatenate %595, %595, %595, %595 in 0 : vector<8x32xf32>, vector<8x32xf32>, vector<8x32xf32>, vector<8x32xf32> -> vector<32x32xf32>
    %599 = arith.mulf %598, %29 : vector<32x32xf32>
    %600 = arith.truncf %599 : vector<32x32xf32> to vector<32x32xbf16>
    %601 = arith.truncf %596 : vector<8x32xf32> to vector<8x32xbf16>
    %cst_202 = arith.constant dense<0.000000e+00> : vector<32x8xf32>
    %602 = tpu.matmul %600, %601, %cst_202 {dimension_numbers = #tpu.dot_dimension_numbers<[1], [1], [0], [0], [0, 0, 1, 0], [], []>} : vector<32x32xbf16>, vector<8x32xbf16>, vector<32x8xf32> -> vector<32x8xf32>
    %cst_203 = arith.constant dense<0xFF800000> : vector<32xf32>
    %603 = vector.multi_reduction <maximumf>, %602, %cst_203 [1] : vector<32x8xf32> to vector<32xf32>
    %604 = vector.shape_cast %603 : vector<32xf32> to vector<32x1xf32>
    %605 = vector.broadcast %604 : vector<32x1xf32> to vector<32x8xf32>
    %606 = arith.subf %602, %605 : vector<32x8xf32>
    %607 = math.exp %606 : vector<32x8xf32>
    %cst_204 = arith.constant dense<0.000000e+00> : vector<32xf32>
    %608 = vector.multi_reduction <add>, %607, %cst_204 [1] : vector<32x8xf32> to vector<32xf32>
    %609 = vector.shape_cast %608 : vector<32xf32> to vector<32x1xf32>
    %610 = vector.broadcast %609 : vector<32x1xf32> to vector<32x8xf32>
    %611 = arith.divf %607, %610 : vector<32x8xf32>
    %612 = arith.truncf %611 : vector<32x8xf32> to vector<32x8xbf16>
    %613 = arith.truncf %597 : vector<8x32xf32> to vector<8x32xbf16>
    %cst_205 = arith.constant dense<0.000000e+00> : vector<32x32xf32>
    %614 = tpu.matmul %612, %613, %cst_205 {dimension_numbers = #tpu.dot_dimension_numbers<[1], [0], [0], [1], [0, 0, 1, 1], [], []>} : vector<32x8xbf16>, vector<8x32xbf16>, vector<32x32xf32> -> vector<32x32xf32>
    %615 = arith.mulf %614, %29 : vector<32x32xf32>
    %c1_206 = arith.constant 1 : index
    %c0_207 = arith.constant 0 : index
    %c0_208 = arith.constant 0 : index
    %616 = vector.load %arg12[%c1_206, %c0_207, %c0_208] : memref<2x32x32xbf16, #tpu.memory_space<vmem>>, vector<1x32x32xbf16>
    %617 = vector.shape_cast %616 : vector<1x32x32xbf16> to vector<32x32xbf16>
    %618 = arith.truncf %615 : vector<32x32xf32> to vector<32x32xbf16>
    %cst_209 = arith.constant dense<0.000000e+00> : vector<32x32xf32>
    %619 = tpu.matmul %618, %617, %cst_209 {dimension_numbers = #tpu.dot_dimension_numbers<[1], [0], [0], [1], [0, 0, 1, 1], [], []>} : vector<32x32xbf16>, vector<32x32xbf16>, vector<32x32xf32> -> vector<32x32xf32>
    %620 = vector.extract_strided_slice %619 {offsets = [0, 0], sizes = [8, 32], strides = [1, 1]} : vector<32x32xf32> to vector<8x32xf32>
    %621 = vector.extract_strided_slice %619 {offsets = [8, 0], sizes = [8, 32], strides = [1, 1]} : vector<32x32xf32> to vector<8x32xf32>
    %622 = arith.addf %620, %621 : vector<8x32xf32>
    %623 = vector.extract_strided_slice %619 {offsets = [16, 0], sizes = [8, 32], strides = [1, 1]} : vector<32x32xf32> to vector<8x32xf32>
    %624 = arith.addf %622, %623 : vector<8x32xf32>
    %625 = vector.extract_strided_slice %619 {offsets = [24, 0], sizes = [8, 32], strides = [1, 1]} : vector<32x32xf32> to vector<8x32xf32>
    %626 = arith.addf %624, %625 : vector<8x32xf32>
    %627 = arith.addf %626, %564 : vector<8x32xf32>
    %c1_210 = arith.constant 1 : index
    %c0_211 = arith.constant 0 : index
    %c0_212 = arith.constant 0 : index
    %628 = vector.load %arg13[%c1_210, %c0_211, %c0_212] : memref<2x2x32xf32, #tpu.memory_space<vmem>>, vector<1x2x32xf32>
    %629 = vector.shape_cast %628 : vector<1x2x32xf32> to vector<2x32xf32>
    %630 = vector.extract_strided_slice %629 {offsets = [0, 0], sizes = [1, 32], strides = [1, 1]} : vector<2x32xf32> to vector<1x32xf32>
    %631 = vector.extract_strided_slice %629 {offsets = [1, 0], sizes = [1, 32], strides = [1, 1]} : vector<2x32xf32> to vector<1x32xf32>
    %cst_213 = arith.constant dense<0.000000e+00> : vector<8xf32>
    %632 = vector.multi_reduction <add>, %627, %cst_213 [1] : vector<8x32xf32> to vector<8xf32>
    %633 = vector.shape_cast %632 : vector<8xf32> to vector<8x1xf32>
    %cst_214 = arith.constant 3.200000e+01 : f32
    %634 = vector.broadcast %cst_214 : f32 to vector<8x1xf32>
    %635 = arith.divf %633, %634 : vector<8x1xf32>
    %636 = vector.broadcast %635 : vector<8x1xf32> to vector<8x32xf32>
    %637 = arith.subf %627, %636 : vector<8x32xf32>
    %638 = arith.mulf %637, %637 : vector<8x32xf32>
    %cst_215 = arith.constant dense<0.000000e+00> : vector<8xf32>
    %639 = vector.multi_reduction <add>, %638, %cst_215 [1] : vector<8x32xf32> to vector<8xf32>
    %640 = vector.shape_cast %639 : vector<8xf32> to vector<8x1xf32>
    %cst_216 = arith.constant 3.200000e+01 : f32
    %641 = vector.broadcast %cst_216 : f32 to vector<8x1xf32>
    %642 = arith.divf %640, %641 : vector<8x1xf32>
    %643 = vector.broadcast %635 : vector<8x1xf32> to vector<8x32xf32>
    %644 = arith.subf %627, %643 : vector<8x32xf32>
    %cst_217 = arith.constant 9.99999974E-6 : f32
    %645 = vector.broadcast %cst_217 : f32 to vector<8x1xf32>
    %646 = arith.addf %642, %645 : vector<8x1xf32>
    %647 = math.rsqrt %646 : vector<8x1xf32>
    %648 = vector.broadcast %647 : vector<8x1xf32> to vector<8x32xf32>
    %649 = arith.mulf %644, %648 : vector<8x32xf32>
    %650 = vector.broadcast %630 : vector<1x32xf32> to vector<8x32xf32>
    %651 = arith.mulf %649, %650 : vector<8x32xf32>
    %652 = vector.broadcast %631 : vector<1x32xf32> to vector<8x32xf32>
    %653 = arith.addf %651, %652 : vector<8x32xf32>
    %654 = arith.negf %653 : vector<8x32xf32>
    %655 = math.exp %654 : vector<8x32xf32>
    %cst_218 = arith.constant 1.000000e+00 : f32
    %656 = vector.broadcast %cst_218 : f32 to vector<8x32xf32>
    %657 = arith.addf %656, %655 : vector<8x32xf32>
    %658 = arith.divf %656, %657 : vector<8x32xf32>
    %659 = arith.mulf %653, %658 : vector<8x32xf32>
    %c1_219 = arith.constant 1 : index
    %c0_220 = arith.constant 0 : index
    %c0_221 = arith.constant 0 : index
    %660 = vector.load %arg14[%c1_219, %c0_220, %c0_221] : memref<2x32x32xbf16, #tpu.memory_space<vmem>>, vector<1x32x32xbf16>
    %661 = vector.shape_cast %660 : vector<1x32x32xbf16> to vector<32x32xbf16>
    %662 = arith.truncf %659 : vector<8x32xf32> to vector<8x32xbf16>
    %cst_222 = arith.constant dense<0.000000e+00> : vector<8x32xf32>
    %663 = tpu.matmul %662, %661, %cst_222 {dimension_numbers = #tpu.dot_dimension_numbers<[1], [0], [0], [1], [0, 0, 1, 1], [], []>} : vector<8x32xbf16>, vector<32x32xbf16>, vector<8x32xf32> -> vector<8x32xf32>
    %664 = arith.addf %663, %627 : vector<8x32xf32>
    %c1_223 = arith.constant 1 : index
    %c0_224 = arith.constant 0 : index
    %c0_225 = arith.constant 0 : index
    %665 = vector.load %arg15[%c1_223, %c0_224, %c0_225] : memref<2x8x32xf32, #tpu.memory_space<vmem>>, vector<1x8x32xf32>
    %666 = vector.shape_cast %665 : vector<1x8x32xf32> to vector<8x32xf32>
    %667 = vector.shape_cast %664 : vector<8x32xf32> to vector<1x8x32xf32>
    tpu.vector_store %arg15[%c1_223, %c0_224, %c0_225], %667 {strides = array<i32>} : memref<2x8x32xf32, #tpu.memory_space<vmem>>, vector<1x8x32xf32>,
    return
  }
  func.func @transform_0(%arg0: i32) -> (i32, i32, i32) {
    %c0_i32 = arith.constant 0 : i32
    %c0_i32_0 = arith.constant 0 : i32
    %c0_i32_1 = arith.constant 0 : i32
    return %arg0, %c0_i32, %c0_i32_0 : i32, i32, i32
  }
  func.func @transform_1(%arg0: i32) -> (i32, i32, i32) {
    %c0_i32 = arith.constant 0 : i32
    %c0_i32_0 = arith.constant 0 : i32
    %c0_i32_1 = arith.constant 0 : i32
    return %arg0, %c0_i32, %c0_i32_0 : i32, i32, i32
  }
  func.func @transform_2(%arg0: i32) -> (i32, i32) {
    %c0_i32 = arith.constant 0 : i32
    %c0_i32_0 = arith.constant 0 : i32
    %c0_i32_1 = arith.constant 0 : i32
    return %c0_i32, %c0_i32_0 : i32, i32
  }
  func.func @transform_3(%arg0: i32) -> (i32, i32) {
    %c0_i32 = arith.constant 0 : i32
    %c0_i32_0 = arith.constant 0 : i32
    %c0_i32_1 = arith.constant 0 : i32
    return %c0_i32, %c0_i32_0 : i32, i32
  }
  func.func @transform_4(%arg0: i32) -> (i32, i32) {
    %c0_i32 = arith.constant 0 : i32
    %c0_i32_0 = arith.constant 0 : i32
    %c0_i32_1 = arith.constant 0 : i32
    return %c0_i32, %c0_i32_0 : i32, i32
  }
  func.func @transform_5(%arg0: i32) -> (i32, i32) {
    %c0_i32 = arith.constant 0 : i32
    %c0_i32_0 = arith.constant 0 : i32
    %c0_i32_1 = arith.constant 0 : i32
    return %c0_i32, %c0_i32_0 : i32, i32
  }
  func.func @transform_6(%arg0: i32) -> (i32, i32) {
    %c0_i32 = arith.constant 0 : i32
    %c0_i32_0 = arith.constant 0 : i32
    %c0_i32_1 = arith.constant 0 : i32
    return %c0_i32, %c0_i32_0 : i32, i32
  }
  func.func @transform_7(%arg0: i32) -> (i32, i32) {
    %c0_i32 = arith.constant 0 : i32
    %c0_i32_0 = arith.constant 0 : i32
    %c0_i32_1 = arith.constant 0 : i32
    return %c0_i32, %c0_i32_0 : i32, i32
  }
  func.func @transform_8(%arg0: i32) -> (i32, i32) {
    %c0_i32 = arith.constant 0 : i32
    %c0_i32_0 = arith.constant 0 : i32
    %c0_i32_1 = arith.constant 0 : i32
    return %c0_i32, %c0_i32_0 : i32, i32
  }
  func.func @transform_9(%arg0: i32) -> (i32, i32, i32) {
    %c0_i32 = arith.constant 0 : i32
    %c0_i32_0 = arith.constant 0 : i32
    %c0_i32_1 = arith.constant 0 : i32
    %c0_i32_2 = arith.constant 0 : i32
    return %c0_i32, %c0_i32_0, %c0_i32_1 : i32, i32, i32
  }
  func.func @transform_10(%arg0: i32) -> (i32, i32, i32) {
    %c0_i32 = arith.constant 0 : i32
    %c0_i32_0 = arith.constant 0 : i32
    %c0_i32_1 = arith.constant 0 : i32
    %c0_i32_2 = arith.constant 0 : i32
    return %c0_i32, %c0_i32_0, %c0_i32_1 : i32, i32, i32
  }
  func.func @transform_11(%arg0: i32) -> (i32, i32, i32) {
    %c0_i32 = arith.constant 0 : i32
    %c0_i32_0 = arith.constant 0 : i32
    %c0_i32_1 = arith.constant 0 : i32
    %c0_i32_2 = arith.constant 0 : i32
    return %c0_i32, %c0_i32_0, %c0_i32_1 : i32, i32, i32
  }
  func.func @transform_12(%arg0: i32) -> (i32, i32, i32) {
    %c0_i32 = arith.constant 0 : i32
    %c0_i32_0 = arith.constant 0 : i32
    %c0_i32_1 = arith.constant 0 : i32
    %c0_i32_2 = arith.constant 0 : i32
    return %c0_i32, %c0_i32_0, %c0_i32_1 : i32, i32, i32
  }
  func.func @transform_13(%arg0: i32) -> (i32, i32, i32) {
    %c0_i32 = arith.constant 0 : i32
    %c0_i32_0 = arith.constant 0 : i32
    %c0_i32_1 = arith.constant 0 : i32
    %c0_i32_2 = arith.constant 0 : i32
    return %c0_i32, %c0_i32_0, %c0_i32_1 : i32, i32, i32
  }
  func.func @transform_14(%arg0: i32) -> (i32, i32, i32) {
    %c0_i32 = arith.constant 0 : i32
    %c0_i32_0 = arith.constant 0 : i32
    %c0_i32_1 = arith.constant 0 : i32
    return %arg0, %c0_i32, %c0_i32_0 : i32, i32, i32
  }
}

</mosaic_0001>

<bundles_post_ra>
// kernel: tpu_custom_call.1
= control target key start
LH: loop header
LB: loop body
LE: loop exit
PB: predicated region body
PF: predicated region fallthrough
CT: control target
= control target key end

     0   :  { %19 = vsyncpa [#allocation3], 0  ;;  %s3626_s0 = inlined_call_operand.hbm [shape: f32[2,8,32], index: 0, kind: input, shape index: {}]   ;;  %s3627_s1 = inlined_call_operand.hbm [shape: f32[2,16,32], index: 1, kind: input, shape index: {}]   ;;  %s3628_s2 = inlined_call_operand.hbm [shape: f32[2,32], index: 2, kind: input, shape index: {}]   ;;  %s3629_s3 = inlined_call_operand.hbm [shape: f32[2,32], index: 3, kind: input, shape index: {}]   ;;  %s3630_s4 = inlined_call_operand.hbm [shape: bf16[32,32], index: 4, kind: input, shape index: {}]   ;;  %s3631_s5 = inlined_call_operand.hbm [shape: bf16[32,64], index: 5, kind: input, shape index: {}]   ;;  %s3632_s6 = inlined_call_operand.hbm [shape: bf16[32,32], index: 6, kind: input, shape index: {}]   ;;  %s3633_s7 = inlined_call_operand.hbm [shape: f32[2,32], index: 7, kind: input, shape index: {}]   ;;  %s3634_s8 = inlined_call_operand.hbm [shape: bf16[32,32], index: 8, kind: input, shape index: {}]   ;;  %s3635_s9 = inlined_call_operand.vmem [shape: f32[2,2,32], index: 9, kind: input, shape index: {}]   ;;  %s3636_s10 = inlined_call_operand.hbm [shape: bf16[2,32,96], index: 10, kind: input, shape index: {}]   ;;  %s3637_s11 = inlined_call_operand.hbm [shape: bf16[2,32,32], index: 11, kind: input, shape index: {}]   ;;  %s3638_s12 = inlined_call_operand.vmem [shape: f32[2,2,32], index: 12, kind: input, shape index: {}]   ;;  %s3639_s13 = inlined_call_operand.hbm [shape: bf16[2,32,32], index: 13, kind: input, shape index: {}]   ;;  %s3640_s14 = inlined_call_operand.hbm [shape: f32[2,8,32], index: 14, kind: output, shape index: {}]  }
   0x1   :  { %20 = vsyncpa [#allocation6], 0 }
   0x2   :  { %21 = vsyncpa [#allocation9], 0 }
   0x3   :  { %22 = vsyncpa [#allocation12], 0 }
   0x4   :  { %23 = vsyncpa [#allocation15], 0 }
   0x5   :  { %24 = vsyncpa [#allocation18], 0 }
   0x6   :  { %25 = vsyncpa [#allocation21], 0 }
   0x7   :  { %26 = vsyncpa [#allocation4], 0  ;;  %s44_s15 = sshll.u32 %s3627_s1, 4  ;;  %s3116_s16 = smov [#allocation5]   ;;  %s45_s15 = int_to_ptr.hbm [resolvable:$true] %s44_s15 }
   0x8   :  { %s46_s17 = sshll.u32 %s3116_s16, 4  ;;  %s69_s20 = sshll.u32 %s3629_s3, 4  ;;  %s47_s17 = int_to_ptr.vmem [resolvable:$true] %s46_s17  ;;  %s70_s20 = int_to_ptr.hbm [resolvable:$true] %s69_s20 }
   0x9   :  { %s3117_s21 = smov 128   ;;  %s3118_s22 = smov 8  }
   0xa   :  { %52 = dma.hbm_to_vmem [thread:$0]  %s45_s15, 512, %s47_s17, [#allocation6], %s3117_s21, %s3117_s21, %s3118_s22  }
   0xb   :  { %s3119_s23 = smov [#allocation8]   ;;  %s92_s26 = sshll.u32 %s3631_s5, 4  ;;  %s93_s26 = int_to_ptr.hbm [resolvable:$true] %s92_s26 }
   0xc   :  { %s71_s24 = sshll.u32 %s3119_s23, 4  ;;  %s3120_s27 = smov [#allocation11]   ;;  %s72_s24 = int_to_ptr.vmem [resolvable:$true] %s71_s24 }
   0xd   :  { %74 = dma.hbm_to_vmem [thread:$0]  %s70_s20, 32, %s72_s24, [#allocation9]  }
   0xe   :  { %s94_s28 = sshll.u32 %s3120_s27, 4  ;;  %s119_s30 = sshll.u32 %s3633_s7, 4  ;;  %s95_s28 = int_to_ptr.vmem [resolvable:$true] %s94_s28  ;;  %s120_s30 = int_to_ptr.hbm [resolvable:$true] %s119_s30 }
   0xf   :  { %s3121_s16 = smov 64   ;;  %s3122_s18 = smov 4  }
  0x10   :  { %100 = dma.hbm_to_vmem [thread:$0]  %s93_s26, 256, %s95_s28, [#allocation12], %s3121_s16, %s3121_s16, %s3122_s18  }
  0x11   :  { %s3123_s15 = smov [#allocation14]   ;;  %s144_s5 = sshll.u32 %s3636_s10, 4  ;;  %s145_s5 = int_to_ptr.hbm [resolvable:$true] %s144_s5 }
  0x12   :  { %s121_s17 = sshll.u32 %s3123_s15, 4  ;;  %s31_s7 = sshll.u32 %s3626_s0, 4  ;;  %s122_s17 = int_to_ptr.vmem [resolvable:$true] %s121_s17  ;;  %s32_s7 = int_to_ptr.hbm [resolvable:$true] %s31_s7 }
  0x13   :  { %124 = dma.hbm_to_vmem [thread:$0]  %s120_s30, 32, %s122_s17, [#allocation15]  }
  0x14   :  { %s3124_s1 = smov [#allocation17]   ;;  %s3125_s26 = smov [#allocation2]  }
  0x15   :  { %s146_s25 = sshll.u32 %s3124_s1, 4  ;;  %s33_s27 = sshll.u32 %s3125_s26, 4  ;;  %s147_s25 = int_to_ptr.vmem [resolvable:$true] %s146_s25  ;;  %s34_s27 = int_to_ptr.vmem [resolvable:$true] %s33_s27 }
  0x16   :  { %152 = dma.hbm_to_vmem [thread:$0]  %s145_s5, 512, %s147_s25, [#allocation18], %s3121_s16, %s3121_s16, %s3122_s18  }
  0x17   :  { %s58_s10 = sshll.u32 %s3628_s2, 4  ;;  %s79_s30 = sshll.u32 %s3630_s4, 4  ;;  %s59_s10 = int_to_ptr.hbm [resolvable:$true] %s58_s10  ;;  %s80_s30 = int_to_ptr.hbm [resolvable:$true] %s79_s30 }
  0x18   :  { %39 = dma.hbm_to_vmem [thread:$0]  %s32_s7, 256, %s34_s27, [#allocation3], %s3117_s21, %s3117_s21, %s3118_s22  }
  0x19   :  { %s3126_s15 = smov [#allocation7]   ;;  %s3127_s19 = smov [#allocation10]  }
  0x1a   :  { %s60_s17 = sshll.u32 %s3126_s15, 4  ;;  %s81_s20 = sshll.u32 %s3127_s19, 4  ;;  %s61_s17 = int_to_ptr.vmem [resolvable:$true] %s60_s17  ;;  %s82_s20 = int_to_ptr.vmem [resolvable:$true] %s81_s20 }
  0x1b   :  { %63 = dma.hbm_to_vmem [thread:$0]  %s59_s10, 32, %s61_s17, [#allocation6]  }
  0x1c   :  { %s105_s2 = sshll.u32 %s3632_s6, 4  ;;  %s129_s4 = sshll.u32 %s3634_s8, 4  ;;  %s106_s2 = int_to_ptr.hbm [resolvable:$true] %s105_s2  ;;  %s130_s4 = int_to_ptr.hbm [resolvable:$true] %s129_s4 }
  0x1d   :  { %87 = dma.hbm_to_vmem [thread:$0]  %s80_s30, 256, %s82_s20, [#allocation9], %s3121_s16, %s3121_s16, %s3122_s18  }
  0x1e   :  { %s3128_s1 = smov [#allocation13]   ;;  %s3129_s26 = smov [#allocation16]  }
  0x1f   :  { %s107_s25 = sshll.u32 %s3128_s1, 4  ;;  %s131_s6 = sshll.u32 %s3129_s26, 4  ;;  %s108_s25 = int_to_ptr.vmem [resolvable:$true] %s107_s25  ;;  %s132_s6 = int_to_ptr.vmem [resolvable:$true] %s131_s6 }
  0x20   :  { %113 = dma.hbm_to_vmem [thread:$0]  %s106_s2, 256, %s108_s25, [#allocation12], %s3121_s16, %s3121_s16, %s3122_s18  }
  0x21   :  { %s157_s3 = sshll.u32 %s3637_s11, 4  ;;  %s172_s0 = sshll.u32 %s3639_s13, 4  ;;  %s158_s3 = int_to_ptr.hbm [resolvable:$true] %s157_s3  ;;  %s173_s0 = int_to_ptr.hbm [resolvable:$true] %s172_s0 }
  0x22   :  { %137 = dma.hbm_to_vmem [thread:$0]  %s130_s4, 256, %s132_s6, [#allocation15], %s3121_s16, %s3121_s16, %s3122_s18  }
  0x23   :  { %s3130_s29 = smov [#allocation19]   ;;  %s3131_s15 = smov [#allocation20]  }
  0x24   :  { %s159_s30 = sshll.u32 %s3130_s29, 4  ;;  %s174_s11 = sshll.u32 %s3131_s15, 4  ;;  %s160_s30 = int_to_ptr.vmem [resolvable:$true] %s159_s30  ;;  %s175_s11 = int_to_ptr.vmem [resolvable:$true] %s174_s11 }
  0x25   :  { %165 = dma.hbm_to_vmem [thread:$0]  %s158_s3, 512, %s160_s30, [#allocation18], %s3121_s16, %s3121_s16, %s3122_s18  }
  0x26   :  { %180 = dma.hbm_to_vmem [thread:$0]  %s173_s0, 512, %s175_s11, [#allocation21], %s3121_s16, %s3121_s16, %s3122_s18  }
  0x27   :  { %3100 = dma.done.wait [#allocation3], 256  }
  0x28   :  { %3101 = vsyncadd [#allocation3], 4294967040 }
  0x29   :  { %3102 = dma.done.wait [#allocation6], 544  }
  0x2a   :  { %3103 = vsyncadd [#allocation6], 4294966752 }
  0x2b   :  { %3104 = dma.done.wait [#allocation9], 288  }
  0x2c   :  { %3105 = vsyncadd [#allocation9], 4294967008 }
  0x2d   :  { %3106 = dma.done.wait [#allocation12], 512  }
  0x2e   :  { %3107 = vsyncadd [#allocation12], 4294966784 }
  0x2f   :  { %3108 = dma.done.wait [#allocation15], 288  }
  0x30   :  { %3109 = vsyncadd [#allocation15], 4294967008 }
  0x31   :  { %3110 = dma.done.wait [#allocation18], 1024  }
  0x32   :  { %3111 = vsyncadd [#allocation18], 4294966272 }
  0x33   :  { %3112 = dma.done.wait [#allocation21], 512  }
  0x34   :  { %3113 = vsyncadd [#allocation21], 4294966784  ;;  %vm256_vm0 = vcmask 261120   ;;  %v253_v0 = vld [vmem:[#allocation5] sm:$0xff]  ;;  %v3274_v1 = vld [vmem:[#allocation2] sm:$0xff]  ;;  %v3132_v6 = vmov 32.0  }
  0x35   :  { %v291_v2 = vsel %vm256_vm0, %v253_v0, 0.0  ;;  %v257_v3 = vsel %vm256_vm0, %v3274_v1, 0.0  ;;  %v254_v4 = vld [vmem:[#allocation5 + $0x8] sm:$0xff]  ;;  %2658 = vrcp.f32 %v3132_v6  ;;  %v2601_v28 = vld [vmem:[#allocation11 + $0x8] sm:$0xff]  ;;  %v2600_v31 = vld [vmem:[#allocation11] sm:$0xff]  ;;  %s3133_s13 = smov 96  }
  0x36   :  { %292 = vadd.xlane.f32.xlu0 %v291_v2  ;;  %258 = vadd.xlane.f32.xlu1 %v257_v3  ;;  %v294_v5 = vsel %vm256_vm0, %v254_v4, 0.0  ;;  %v2599_v33 = vld [vmem:[#allocation10 + $0x8] sm:$0xff]  ;;  %v2598_v35 = vld [vmem:[#allocation10] sm:$0xff]  ;;  %v290_v52 = vld [vmem:[#allocation8] sm:$0x3]  ;;  %vm429_vm11 = vcmask 130048  }
  0x37   :  { %400 = vmatpush.bf16.msra.mxu1 %v2601_v28  ;;  %367 = vmatpush.bf16.msra.mxu0 %v2599_v33  ;;  %v335_v56 = vperm.slane %v290_v52, 0  ;;  %v338_v63 = vperm.slane %v290_v52, 1  ;;  %v2603_v33 = vld [vmem:[#allocation13 + $0x8] sm:$0xff]  ;;  %s2361_s8 = sshll.u32 %s3640_s14, 4  ;;  %s2362_s8 = int_to_ptr.hbm [resolvable:$true] %s2361_s8 }
  0x3b   :  { %v2659_v7 = vpop.eup %2658  ;;  %401 = vmatpush.bf16.msra.mxu1 %v2600_v31  ;;  %368 = vmatpush.bf16.msra.mxu0 %v2598_v35 }
  0x3c   :  { %v261_v8 = vmul.f32 32.0, %v2659_v7  ;;  %vm265_vm1 = vweird.f32 %v2659_v7 }
  0x3e   :  { %295 = vadd.xlane.f32.xlu0 %v294_v5  ;;  %v262_v9 = vsub.f32 1.0, %v261_v8 }
  0x40   :  { %v263_v10 = vmul.f32 %v2659_v7, %v262_v9 }
  0x42   :  { %v264_v11 = vadd.f32 %v2659_v7, %v263_v10 }
  0x44   :  { %v3280_v12 = vsel %vm265_vm1, %v2659_v7, %v264_v11 }
  0xa9   :  { %v293_v13 = vpop.xlane.xlu0 %292  ;;  %v259_v17 = vpop.xlane.xlu1 %258 }
  0xaa   :  { %v297_v14 = vmul.f32 %v293_v13, %v3280_v12  ;;  %v267_v21 = vmul.f32 %v3280_v12, %v259_v17 }
  0xac   :  { %v299_v15 = vsub.f32 %v253_v0, %v297_v14  ;;  %v3287_v24 = vsub.f32 %v3274_v1, %v267_v21 }
  0xae   :  { %v301_v16 = vmul.f32 %v299_v15, %v299_v15  ;;  %v269_v26 = vmul.f32 %v3287_v24, %v3287_v24 }
  0xb0   :  { %v303_v18 = vsel %vm256_vm0, %v301_v16, 0.0  ;;  %v270_v27 = vsel %vm256_vm0, %v269_v26, 0.0 }
  0xb1   :  { %v296_v19 = vpop.xlane.xlu0 %295  ;;  %304 = vadd.xlane.f32.xlu1 %v303_v18 }
  0xb2   :  { %v298_v20 = vmul.f32 %v296_v19, %v3280_v12 }
  0xb4   :  { %v300_v22 = vsub.f32 %v254_v4, %v298_v20  ;;  %v255_v4 = vld [vmem:[#allocation7] sm:$0x3] }
  0xb5   :  { %v286_v9 = vperm.slane %v255_v4, 0  ;;  %v288_v13 = vperm.slane %v255_v4, 1 }
  0xb6   :  { %v302_v23 = vmul.f32 %v300_v22, %v300_v22 }
  0xb8   :  { %v306_v25 = vsel %vm256_vm0, %v302_v23, 0.0 }
  0xb9   :  { %307 = vadd.xlane.f32.xlu2 %v306_v25 }
  0xc1   :  { %271 = vadd.xlane.f32.xlu2 %v270_v27 }
 0x124   :  { %v305_v29 = vpop.xlane.xlu1 %304 }
 0x125   :  { %v309_v30 = vmul.f32 %v305_v29, %v3280_v12 }
 0x127   :  { %v311_v32 = vadd.f32 1e-05, %v309_v30 }
 0x129   :  { %2660 = vrsqrt.f32 %v311_v32  ;;  %vm319_vm3 = vweird.f32 %v311_v32 }
 0x12c   :  { %v308_v34 = vpop.xlane.xlu2 %307 }
 0x12d   :  { %v310_v36 = vmul.f32 %v308_v34, %v3280_v12 }
 0x12f   :  { %v2661_v37 = vpop.eup %2660  ;;  %v312_v38 = vadd.f32 1e-05, %v310_v36 }
 0x130   :  { %v314_v39 = vmul.f32 %v2661_v37, %v311_v32  ;;  %vm320_vm2 = vweird.f32 %v2661_v37 }
 0x131   :  { %2662 = vrsqrt.f32 %v312_v38  ;;  %vm321_vm4 = vmor %vm319_vm3, %vm320_vm2  ;;  %vm329_vm6 = vweird.f32 %v312_v38 }
 0x132   :  { %v315_v40 = vmul.f32 %v2661_v37, %v314_v39 }
 0x134   :  { %v316_v41 = vmul.f32 0.5, %v315_v40  ;;  %v272_v42 = vpop.xlane.xlu2 %271 }
 0x135   :  { %v273_v43 = vmul.f32 %v272_v42, %v3280_v12 }
 0x136   :  { %v317_v44 = vsub.f32 1.5, %v316_v41 }
 0x137   :  { %v2663_v45 = vpop.eup %2662  ;;  %v274_v46 = vadd.f32 1e-05, %v273_v43 }
 0x138   :  { %v318_v47 = vmul.f32 %v2661_v37, %v317_v44  ;;  %v324_v48 = vmul.f32 %v2663_v45, %v312_v38  ;;  %vm330_vm5 = vweird.f32 %v2663_v45 }
 0x139   :  { %2664 = vrsqrt.f32 %v274_v46  ;;  %vm331_vm7 = vmor %vm329_vm6, %vm330_vm5  ;;  %vm281_vm8 = vweird.f32 %v274_v46 }
 0x13a   :  { %v325_v49 = vmul.f32 %v2663_v45, %v324_v48  ;;  %v322_v50 = vsel %vm321_vm4, %v2661_v37, %v318_v47  ;;  %v2602_v47 = vld [vmem:[#allocation13] sm:$0xff] }
 0x13b   :  { %v333_v55 = vmul.f32 %v322_v50, %v299_v15 }
 0x13c   :  { %v326_v51 = vmul.f32 0.5, %v325_v49 }
 0x13d   :  { %v336_v62 = vmul.f32 %v335_v56, %v333_v55 }
 0x13e   :  { %v327_v53 = vsub.f32 1.5, %v326_v51 }
 0x13f   :  { %v2665_v54 = vpop.eup %2664  ;;  %v339_v5 = vadd.f32 %v338_v63, %v336_v62 }
 0x140   :  { %v328_v57 = vmul.f32 %v2663_v45, %v327_v53  ;;  %v276_v58 = vmul.f32 %v2665_v54, %v274_v46  ;;  %vm282_vm9 = vweird.f32 %v2665_v54 }
 0x141   :  { %vm283_vm10 = vmor %vm281_vm8, %vm282_vm9 }
 0x142   :  { %v332_v59 = vsel %vm331_vm7, %v2663_v45, %v328_v57  ;;  %v277_v60 = vmul.f32 %v2665_v54, %v276_v58 }
 0x143   :  { %v334_v61 = vmul.f32 %v332_v59, %v300_v22 }
 0x144   :  { %v278_v0 = vmul.f32 0.5, %v277_v60  ;;  %v2605_v60 = vld [vmem:[#allocation16 + $0x8] sm:$0xff] }
 0x145   :  { %v337_v2 = vmul.f32 %v335_v56, %v334_v61  ;;  %581 = vmatpush.bf16.msrb.mxu0 %v2605_v60  ;;  %v2604_v61 = vld [vmem:[#allocation16] sm:$0xff] }
 0x146   :  { %v279_v3 = vsub.f32 1.5, %v278_v0 }
 0x147   :  { %v340_v6 = vadd.f32 %v338_v63, %v337_v2 }
 0x148   :  { %v280_v7 = vmul.f32 %v2665_v54, %v279_v3 }
 0x149   :  { %v378_v8 = vpack.c.bf16 %v340_v6, %v339_v5  ;;  %582 = vmatpush.bf16.msrb.mxu0 %v2604_v61  ;;  %v508_v5 = vld [vmem:[#allocation14] sm:$0x3]  ;;  %v230_v61 = vlaneseq }
 0x14a   :  { %v284_v10 = vsel %vm283_vm10, %v2665_v54, %v280_v7 }
 0x14b   :  { %2401 = vmatmul.msk.bf16.vlgmr.msra.gmra.mxu1 %vm256_vm0, %v378_v8  ;;  %v285_v11 = vmul.f32 %v284_v10, %v3287_v24  ;;  %v531_v8 = vperm.slane %v508_v5, 0 }
 0x14d   :  { %v287_v14 = vmul.f32 %v286_v9, %v285_v11  ;;  %v533_v11 = vperm.slane %v508_v5, 1 }
 0x14f   :  { %v289_v15 = vadd.f32 %v288_v13, %v287_v14 }
 0x151   :  { %v345_v16 = vpack.c.bf16 %v289_v15, %v289_v15 }
 0x153   :  { %2392 = vmatmul.msk.bf16.vlgmr.msra.gmra.mxu0 %vm256_vm0, %v345_v16 }
 0x1c8   :  { %v403_v17 = vpop.f32.mrf.mxu1 }
 0x1d0   :  { %v370_v18 = vpop.f32.mrf.mxu0  ;;  %v405_v19 = vpop.f32.mrf.mxu1 }
 0x1d1   :  { %v409_v20 = vpack.c.bf16 %v405_v19, %v403_v17  ;;  %v408_v23 = vpack.c.bf16 %v370_v18, %v370_v18 }
 0x1d3   :  { %456 = vrot.lane.b32.xlu2 %v409_v20, %s3133_s13  ;;  %v414_v21 = vsel %vm256_vm0, %v409_v20, 0 }
 0x1d4   :  { %423 = vmatpush.bf16.xpose.msra.mxu2 %v414_v21 }
 0x1d8   :  { %v372_v22 = vpop.f32.mrf.mxu0 }
 0x1db   :  { %2402 = vmatmul.msk.bf16.vlgmr.msra.gmra.mxu2 %vm256_vm0, %v408_v23 }
 0x22d   :  { %v457_v24 = vpop.permute.xlu2 %456 }
 0x22e   :  { %469 = vmatpush.bf16.msra.mxu3 %v457_v24 }
 0x232   :  { %501 = vmatpush.bf16.msrb.mxu3 %v2603_v33 }
 0x236   :  { %502 = vmatpush.bf16.msrb.mxu3 %v2602_v47 }
 0x25e   :  { %v425_v25 = vpop.f32.mrf.mxu2 }
 0x25f   :  { %v430_v26 = vsel %vm429_vm11, %v425_v25, -inf }
 0x260   :  { %431 = vmax.xlane.f32.xlu0 %v430_v26 }
 0x266   :  { %v427_v27 = vpop.f32.mrf.mxu2 }
 0x2d3   :  { %v432_v28 = vpop.xlane.xlu0 %431 }
 0x2d4   :  { %v433_v29 = vsub.f32 %v425_v25, %v432_v28 }
 0x2d6   :  { %v434_v30 = vmul.f32 1.442695, %v433_v29 }
 0x2d8   :  { %2666 = vpow2.f32 %v434_v30 }
 0x2de   :  { %v2667_v31 = vpop.eup %2666 }
 0x2df   :  { %v436_v32 = vsel %vm429_vm11, %v2667_v31, 0.0 }
 0x2e0   :  { %437 = vadd.xlane.f32.xlu1 %v436_v32 }
 0x353   :  { %v438_v34 = vpop.xlane.xlu1 %437 }
 0x354   :  { %2668 = vrcp.f32 %v438_v34  ;;  %v450_v38 = vand.u32 2147483648, %v438_v34  ;;  %v448_v40 = vand.u32 2147483647, %v438_v34  ;;  %vm444_vm13 = vweird.f32 %v438_v34 }
 0x356   :  { %v451_v42 = vor.u32 1.1754944e-38, %v450_v38  ;;  %vm449_vm15 = vcmp.eq.f32.partialorder %v448_v40, 8.507059e+37  ;;  %v2606_v40 = vld [vmem:[#allocation17] sm:$0xff] }
 0x35a   :  { %v2669_v35 = vpop.eup %2668 }
 0x35b   :  { %v440_v36 = vmul.f32 %v2669_v35, %v438_v34  ;;  %vm445_vm12 = vweird.f32 %v2669_v35 }
 0x35c   :  { %vm446_vm14 = vmor %vm444_vm13, %vm445_vm12 }
 0x35d   :  { %v441_v37 = vsub.f32 1.0, %v440_v36 }
 0x35f   :  { %v442_v39 = vmul.f32 %v2669_v35, %v441_v37 }
 0x361   :  { %v443_v41 = vadd.f32 %v2669_v35, %v442_v39  ;;  %v2607_v39 = vld [vmem:[#allocation17 + $0x8] sm:$0xff] }
 0x362   :  { %641 = vmatpush.bf16.msrb.mxu1 %v2607_v39 }
 0x363   :  { %v447_v43 = vsel %vm446_vm14, %v2669_v35, %v443_v41 }
 0x364   :  { %v452_v44 = vsel %vm449_vm15, %v451_v42, %v447_v43 }
 0x365   :  { %v453_v45 = vmul.f32 %v2667_v31, %v452_v44 }
 0x366   :  { %642 = vmatpush.bf16.msrb.mxu1 %v2606_v40 }
 0x367   :  { %v454_v46 = vpack.c.bf16 %v453_v45, %v453_v45 }
 0x369   :  { %2403 = vmatmul.msk.bf16.vlgmr.msra.gmra.mxu3 %vm429_vm11, %v454_v46 }
 0x3ec   :  { %v471_v48 = vpop.f32.mrf.mxu3 }
 0x3ed   :  { %v479_v49 = vpack.c.bf16 %v471_v48, %v471_v48 }
 0x3ef   :  { %2412 = vmatmul.msk.bf16.vlgmr.msrb.gmra.mxu3 %vm256_vm0, %v479_v49  ;;  %v588_v49 = vld [vmem:[%s3635_s9] sm:$0x3] }
 0x3f4   :  { %v473_v50 = vpop.f32.mrf.mxu3 }
 0x472   :  { %v504_v51 = vpop.f32.mrf.mxu3 }
 0x473   :  { %v505_v52 = vadd.f32 %v504_v51, %v3274_v1  ;;  %v611_v51 = vperm.slane %v588_v49, 0 }
 0x475   :  { %v509_v53 = vsel %vm256_vm0, %v505_v52, 0.0 }
 0x476   :  { %510 = vadd.xlane.f32.xlu0 %v509_v53 }
 0x47a   :  { %v506_v54 = vpop.f32.mrf.mxu3 }
 0x47b   :  { %v613_v54 = vperm.slane %v588_v49, 1 }
 0x4e9   :  { %v511_v55 = vpop.xlane.xlu0 %510 }
 0x4ea   :  { %v512_v56 = vmul.f32 %v511_v55, %v3280_v12 }
 0x4ec   :  { %v513_v57 = vsub.f32 %v505_v52, %v512_v56 }
 0x4ee   :  { %v514_v58 = vmul.f32 %v513_v57, %v513_v57 }
 0x4f0   :  { %v515_v59 = vsel %vm256_vm0, %v514_v58, 0.0 }
 0x4f1   :  { %516 = vadd.xlane.f32.xlu1 %v515_v59 }
 0x564   :  { %v517_v62 = vpop.xlane.xlu1 %516 }
 0x565   :  { %v518_v63 = vmul.f32 %v517_v62, %v3280_v12  ;;  %v231_v62 = vand.u32 127, %v230_v61 }
 0x567   :  { %v519_v1 = vadd.f32 1e-05, %v518_v63  ;;  %vm237_vm12 = vcmp.ge.s32.totalorder %v231_v62, 8  ;;  %vm238_vm13 = vcmp.lt.s32.totalorder %v231_v62, 16  ;;  %vm233_vm14 = vcmp.lt.s32.totalorder %v231_v62, 8 }
 0x568   :  { %vm239_vm15 = vmand %vm237_vm12, %vm238_vm13  ;;  %v3134_v63 = vmov 0.0  }
 0x569   :  { %2670 = vrsqrt.f32 %v519_v1  ;;  %vm526_vm2 = vweird.f32 %v519_v1 }
 0x56f   :  { %v2671_v0 = vpop.eup %2670 }
 0x570   :  { %v521_v2 = vmul.f32 %v2671_v0, %v519_v1  ;;  %vm527_vm1 = vweird.f32 %v2671_v0  ;;  %v3325_v1 = vsel %vm233_vm14, 1.0, %v3134_v63 }
 0x571   :  { %vm528_vm3 = vmor %vm526_vm2, %vm527_vm1  ;;  %vm242_vm1 = vcmp.ge.s32.totalorder %v231_v62, 16  ;;  %vm243_vm2 = vcmp.lt.s32.totalorder %v231_v62, 24 }
 0x572   :  { %v522_v3 = vmul.f32 %v2671_v0, %v521_v2 }
 0x574   :  { %v523_v4 = vmul.f32 0.5, %v522_v3 }
 0x576   :  { %v524_v6 = vsub.f32 1.5, %v523_v4 }
 0x578   :  { %v525_v7 = vmul.f32 %v2671_v0, %v524_v6 }
 0x57a   :  { %v529_v9 = vsel %vm528_vm3, %v2671_v0, %v525_v7  ;;  %v3327_v0 = vsel %vm239_vm15, 1.0, %v3134_v63  ;;  %vm247_vm3 = vcmp.ge.s32.totalorder %v231_v62, 24 }
 0x57b   :  { %v530_v10 = vmul.f32 %v529_v9, %v513_v57 }
 0x57d   :  { %v532_v13 = vmul.f32 %v531_v8, %v530_v10 }
 0x57f   :  { %v534_v14 = vadd.f32 %v533_v11, %v532_v13 }
 0x581   :  { %v2413_v15 = vmul.f32 -1.442695, %v534_v14 }
 0x583   :  { %2672 = vpow2.f32 %v2413_v15 }
 0x589   :  { %v2673_v16 = vpop.eup %2672 }
 0x58a   :  { %v538_v17 = vadd.f32 1.0, %v2673_v16 }
 0x58c   :  { %2674 = vrcp.f32 %v538_v17  ;;  %v550_v21 = vand.u32 2147483648, %v538_v17  ;;  %v548_v23 = vand.u32 2147483647, %v538_v17  ;;  %vm544_vm5 = vweird.f32 %v538_v17 }
 0x58e   :  { %v551_v25 = vor.u32 1.1754944e-38, %v550_v21  ;;  %vm549_vm7 = vcmp.eq.f32.partialorder %v548_v23, 8.507059e+37 }
 0x592   :  { %v2675_v18 = vpop.eup %2674 }
 0x593   :  { %v540_v19 = vmul.f32 %v2675_v18, %v538_v17  ;;  %vm545_vm4 = vweird.f32 %v2675_v18 }
 0x594   :  { %vm546_vm6 = vmor %vm544_vm5, %vm545_vm4  ;;  %vm248_vm4 = vcmp.lt.s32.totalorder %v231_v62, 32 }
 0x595   :  { %v541_v20 = vsub.f32 1.0, %v540_v19  ;;  %vm244_vm5 = vmand %vm242_vm1, %vm243_vm2 }
 0x596   :  { %v3333_v7 = vsel %vm244_vm5, 1.0, %v3134_v63 }
 0x597   :  { %v542_v22 = vmul.f32 %v2675_v18, %v541_v20 }
 0x599   :  { %v543_v24 = vadd.f32 %v2675_v18, %v542_v22 }
 0x59b   :  { %v547_v26 = vsel %vm546_vm6, %v2675_v18, %v543_v24  ;;  %vm249_vm6 = vmand %vm247_vm3, %vm248_vm4 }
 0x59c   :  { %v552_v27 = vsel %vm549_vm7, %v551_v25, %v547_v26  ;;  %v3335_v8 = vsel %vm249_vm6, 1.0, %v3134_v63  ;;  %vm686_vm7 = vcmask 64512  }
 0x59d   :  { %v554_v28 = vmul.f32 %v552_v27, %v534_v14 }
 0x59f   :  { %v559_v29 = vpack.c.bf16 %v554_v28, %v554_v28 }
 0x5a1   :  { %2422 = vmatmul.msk.bf16.vlgmr.msrb.gmra.mxu0 %vm256_vm0, %v559_v29 }
 0x61e   :  { %v584_v30 = vpop.f32.mrf.mxu0 }
 0x61f   :  { %v3312_v31 = vadd.f32 %v584_v30, %v505_v52 }
 0x621   :  { %v589_v32 = vsel %vm256_vm0, %v3312_v31, 0.0 }
 0x622   :  { %590 = vadd.xlane.f32.xlu0 %v589_v32 }
 0x626   :  { %v586_v33 = vpop.f32.mrf.mxu0 }
 0x695   :  { %v591_v34 = vpop.xlane.xlu0 %590 }
 0x696   :  { %v592_v35 = vmul.f32 %v591_v34, %v3280_v12 }
 0x698   :  { %v593_v36 = vsub.f32 %v3312_v31, %v592_v35 }
 0x69a   :  { %v594_v37 = vmul.f32 %v593_v36, %v593_v36 }
 0x69c   :  { %v595_v38 = vsel %vm256_vm0, %v594_v37, 0.0 }
 0x69d   :  { %596 = vadd.xlane.f32.xlu1 %v595_v38 }
 0x710   :  { %v597_v41 = vpop.xlane.xlu1 %596 }
 0x711   :  { %v598_v42 = vmul.f32 %v597_v41, %v3280_v12 }
 0x713   :  { %v599_v43 = vadd.f32 1e-05, %v598_v42 }
 0x715   :  { %2676 = vrsqrt.f32 %v599_v43  ;;  %vm606_vm9 = vweird.f32 %v599_v43 }
 0x71b   :  { %v2677_v44 = vpop.eup %2676 }
 0x71c   :  { %v601_v45 = vmul.f32 %v2677_v44, %v599_v43  ;;  %vm607_vm8 = vweird.f32 %v2677_v44 }
 0x71d   :  { %vm608_vm10 = vmor %vm606_vm9, %vm607_vm8  ;;  %vm793_vm8 = vcmask 1043456  }
 0x71e   :  { %v602_v46 = vmul.f32 %v2677_v44, %v601_v45 }
 0x720   :  { %v603_v47 = vmul.f32 0.5, %v602_v46 }
 0x722   :  { %v604_v48 = vsub.f32 1.5, %v603_v47 }
 0x724   :  { %v605_v50 = vmul.f32 %v2677_v44, %v604_v48 }
 0x726   :  { %v609_v52 = vsel %vm608_vm10, %v2677_v44, %v605_v50 }
 0x727   :  { %v610_v53 = vmul.f32 %v609_v52, %v593_v36 }
 0x729   :  { %v612_v55 = vmul.f32 %v611_v51, %v610_v53 }
 0x72b   :  { %v614_v56 = vadd.f32 %v613_v54, %v612_v55 }
 0x72d   :  { %v619_v57 = vpack.c.bf16 %v614_v56, %v614_v56 }
 0x72f   :  { %2431 = vmatmul.msk.bf16.vlgmr.msrb.gmra.mxu1 %vm256_vm0, %v619_v57 }
 0x7ac   :  { %v644_v58 = vpop.f32.mrf.mxu1 }
 0x7ad   :  { %v654_v59 = vpack.c.bf16 %v644_v58, %v644_v58  ;;  %v648_v4 = vmul.f32 %v3325_v1, %v644_v58  ;;  %v649_v5 = vmul.f32 %v3327_v0, %v644_v58  ;;  %v650_v9 = vmul.f32 %v3333_v7, %v644_v58 }
 0x7ae   :  { %v651_v10 = vmul.f32 %v3335_v8, %v644_v58 }
 0x7af   :  { %656 = vrot.lane.b32.xlu0 %v654_v59, %s3133_s13  ;;  %v652_v6 = vpack.c.bf16 %v649_v5, %v648_v4 }
 0x7b0   :  { %v653_v11 = vpack.c.bf16 %v651_v10, %v650_v9 }
 0x7b4   :  { %v646_v60 = vpop.f32.mrf.mxu1 }
 0x821   :  { %v657_v2 = vpop.permute.xlu0 %656 }
 0x822   :  { %v665_v3 = vsel %vm256_vm0, %v657_v2, 0 }
 0x823   :  { %674 = vmatpush.bf16.xpose.msrb.mxu2 %v665_v3 }
 0x82a   :  { %2432 = vmatmul.msk.bf16.vlgmr.msrb.gmra.mxu2 %vm256_vm0, %v652_v6 }
 0x83a   :  { %2433 = vmatmul.msk.bf16.gmra.mxu2 %vm256_vm0, %v653_v11 }
 0x8ad   :  { %v676_v13 = vpop.f32.mrf.mxu2 }
 0x8ae   :  { %v687_v14 = vsel %vm686_vm7, %v676_v13, -inf }
 0x8af   :  { %688 = vmax.xlane.f32.xlu1 %v687_v14 }
 0x8b5   :  { %v678_v15 = vpop.f32.mrf.mxu2 }
 0x8b6   :  { %v690_v16 = vsel %vm686_vm7, %v678_v15, -inf }
 0x8b7   :  { %691 = vmax.xlane.f32.xlu2 %v690_v16 }
 0x8bd   :  { %v681_v17 = vpop.f32.mrf.mxu2 }
 0x8be   :  { %v693_v18 = vsel %vm686_vm7, %v681_v17, -inf }
 0x8bf   :  { %694 = vmax.xlane.f32.xlu1 %v693_v18 }
 0x8c5   :  { %v683_v19 = vpop.f32.mrf.mxu2 }
 0x8c6   :  { %v696_v20 = vsel %vm686_vm7, %v683_v19, -inf }
 0x8c7   :  { %697 = vmax.xlane.f32.xlu1 %v696_v20 }
 0x8cf   :  { %785 = vrot.lane.b32.xlu2 %v654_v59, %s3121_s16 }
 0x922   :  { %v689_v21 = vpop.xlane.xlu1 %688 }
 0x923   :  { %v699_v22 = vsub.f32 %v676_v13, %v689_v21 }
 0x925   :  { %v703_v23 = vmul.f32 1.442695, %v699_v22 }
 0x927   :  { %2678 = vpow2.f32 %v703_v23 }
 0x92a   :  { %v692_v24 = vpop.xlane.xlu2 %691 }
 0x92b   :  { %v700_v25 = vsub.f32 %v678_v15, %v692_v24 }
 0x92d   :  { %v3345_v26 = vpop.eup %2678  ;;  %v705_v27 = vmul.f32 1.442695, %v700_v25 }
 0x92e   :  { %v711_v28 = vsel %vm686_vm7, %v3345_v26, 0.0 }
 0x92f   :  { %2680 = vpow2.f32 %v705_v27  ;;  %712 = vadd.xlane.f32.xlu0 %v711_v28 }
 0x932   :  { %v786_v29 = vpop.permute.xlu2 %785  ;;  %v695_v30 = vpop.xlane.xlu1 %694 }
 0x933   :  { %v795_v32 = vsel %vm793_vm8, %v786_v29, 0  ;;  %v701_v33 = vsub.f32 %v681_v17, %v695_v30 }
 0x934   :  { %804 = vmatpush.bf16.msra.mxu3 %v795_v32 }
 0x935   :  { %v2681_v34 = vpop.eup %2680  ;;  %v707_v35 = vmul.f32 1.442695, %v701_v33 }
 0x936   :  { %v714_v36 = vsel %vm686_vm7, %v2681_v34, 0.0 }
 0x937   :  { %2682 = vpow2.f32 %v707_v35  ;;  %715 = vadd.xlane.f32.xlu1 %v714_v36  ;;  %v2609_v36 = vld [vmem:[#allocation19 + $0x8] sm:$0xff] }
 0x938   :  { %850 = vmatpush.bf16.msra.mxu0 %v2609_v36 }
 0x93a   :  { %v698_v37 = vpop.xlane.xlu1 %697 }
 0x93b   :  { %v702_v38 = vsub.f32 %v683_v19, %v698_v37  ;;  %v2608_v37 = vld [vmem:[#allocation19] sm:$0xff] }
 0x93c   :  { %851 = vmatpush.bf16.msra.mxu0 %v2608_v37 }
 0x93d   :  { %v3351_v39 = vpop.eup %2682  ;;  %v709_v40 = vmul.f32 1.442695, %v702_v38 }
 0x93e   :  { %v717_v41 = vsel %vm686_vm7, %v3351_v39, 0.0 }
 0x93f   :  { %2684 = vpow2.f32 %v709_v40  ;;  %718 = vadd.xlane.f32.xlu1 %v717_v41 }
 0x945   :  { %v3355_v42 = vpop.eup %2684 }
 0x946   :  { %v720_v43 = vsel %vm686_vm7, %v3355_v42, 0.0 }
 0x947   :  { %721 = vadd.xlane.f32.xlu1 %v720_v43 }
 0x9a2   :  { %v713_v44 = vpop.xlane.xlu0 %712 }
 0x9a3   :  { %2686 = vrcp.f32 %v713_v44  ;;  %v734_v54 = vand.u32 2147483648, %v713_v44  ;;  %vm728_vm10 = vweird.f32 %v713_v44  ;;  %v732_v55 = vand.u32 2147483647, %v713_v44 }
 0x9a5   :  { %v735_v61 = vor.u32 1.1754944e-38, %v734_v54  ;;  %vm733_vm14 = vcmp.eq.f32.partialorder %v732_v55, 8.507059e+37 }
 0x9a9   :  { %v2687_v45 = vpop.eup %2686 }
 0x9aa   :  { %v724_v46 = vmul.f32 %v2687_v45, %v713_v44  ;;  %v716_v47 = vpop.xlane.xlu1 %715  ;;  %vm729_vm9 = vweird.f32 %v2687_v45 }
 0x9ab   :  { %2688 = vrcp.f32 %v716_v47  ;;  %vm730_vm12 = vmor %vm728_vm10, %vm729_vm9  ;;  %v749_v57 = vand.u32 2147483648, %v716_v47  ;;  %v747_v60 = vand.u32 2147483647, %v716_v47  ;;  %vm743_vm15 = vweird.f32 %v716_v47 }
 0x9ac   :  { %v725_v48 = vsub.f32 1.0, %v724_v46 }
 0x9ad   :  { %v750_v3 = vor.u32 1.1754944e-38, %v749_v57  ;;  %vm748_vm2 = vcmp.eq.f32.partialorder %v747_v60, 8.507059e+37 }
 0x9ae   :  { %v726_v49 = vmul.f32 %v2687_v45, %v725_v48 }
 0x9b0   :  { %v727_v51 = vadd.f32 %v2687_v45, %v726_v49 }
 0x9b1   :  { %v2689_v50 = vpop.eup %2688 }
 0x9b2   :  { %v739_v52 = vmul.f32 %v2689_v50, %v716_v47  ;;  %v719_v53 = vpop.xlane.xlu1 %718  ;;  %v731_v58 = vsel %vm730_vm12, %v2687_v45, %v727_v51  ;;  %vm744_vm13 = vweird.f32 %v2689_v50 }
 0x9b3   :  { %2690 = vrcp.f32 %v719_v53  ;;  %v736_v2 = vsel %vm733_vm14, %v735_v61, %v731_v58  ;;  %vm745_vm1 = vmor %vm743_vm15, %vm744_vm13  ;;  %v764_v19 = vand.u32 2147483648, %v719_v53  ;;  %vm758_vm4 = vweird.f32 %v719_v53 }
 0x9b4   :  { %v740_v56 = vsub.f32 1.0, %v739_v52  ;;  %v737_v10 = vmul.f32 %v3345_v26, %v736_v2  ;;  %v762_v20 = vand.u32 2147483647, %v719_v53 }
 0x9b5   :  { %v765_v26 = vor.u32 1.1754944e-38, %v764_v19 }
 0x9b6   :  { %v741_v59 = vmul.f32 %v2689_v50, %v740_v56  ;;  %vm763_vm9 = vcmp.eq.f32.partialorder %v762_v20, 8.507059e+37 }
 0x9b8   :  { %v742_v62 = vadd.f32 %v2689_v50, %v741_v59 }
 0x9b9   :  { %v2691_v63 = vpop.eup %2690 }
 0x9ba   :  { %v746_v4 = vsel %vm745_vm1, %v2689_v50, %v742_v62  ;;  %v754_v5 = vmul.f32 %v2691_v63, %v719_v53  ;;  %v722_v6 = vpop.xlane.xlu1 %721  ;;  %vm759_vm3 = vweird.f32 %v2691_v63 }
 0x9bb   :  { %v751_v9 = vsel %vm748_vm2, %v750_v3, %v746_v4  ;;  %2692 = vrcp.f32 %v722_v6  ;;  %vm760_vm5 = vmor %vm758_vm4, %vm759_vm3  ;;  %v779_v22 = vand.u32 2147483648, %v722_v6  ;;  %v777_v24 = vand.u32 2147483647, %v722_v6  ;;  %v2611_v3 = vld [vmem:[#allocation20 + $0x8] sm:$0xff]  ;;  %v2610_v4 = vld [vmem:[#allocation20] sm:$0xff] }
 0x9bc   :  { %v752_v11 = vmul.f32 %v2681_v34, %v751_v9  ;;  %v755_v13 = vsub.f32 1.0, %v754_v5  ;;  %vm773_vm10 = vweird.f32 %v722_v6  ;;  %940 = vmatpush.bf16.msra.mxu1 %v2611_v3 }
 0x9bd   :  { %v780_v28 = vor.u32 1.1754944e-38, %v779_v22  ;;  %vm778_vm13 = vcmp.eq.f32.partialorder %v777_v24, 8.507059e+37 }
 0x9be   :  { %v756_v14 = vmul.f32 %v2691_v63, %v755_v13  ;;  %v783_v15 = vpack.c.bf16 %v752_v11, %v737_v10  ;;  %v867_v10 = vld [vmem:[%s3638_s12] sm:$0x3] }
 0x9c0   :  { %2434 = vmatmul.msk.bf16.vlgmr.msra.gmra.mxu3 %vm686_vm7, %v783_v15  ;;  %v757_v17 = vadd.f32 %v2691_v63, %v756_v14  ;;  %941 = vmatpush.bf16.msra.mxu1 %v2610_v4  ;;  %v890_v14 = vperm.slane %v867_v10, 0 }
 0x9c1   :  { %v2693_v16 = vpop.eup %2692 }
 0x9c2   :  { %v769_v18 = vmul.f32 %v2693_v16, %v722_v6  ;;  %vm774_vm6 = vweird.f32 %v2693_v16  ;;  %v761_v25 = vsel %vm760_vm5, %v2691_v63, %v757_v17 }
 0x9c3   :  { %vm775_vm12 = vmor %vm773_vm10, %vm774_vm6  ;;  %v766_v29 = vsel %vm763_vm9, %v765_v26, %v761_v25 }
 0x9c4   :  { %v770_v21 = vsub.f32 1.0, %v769_v18  ;;  %v767_v33 = vmul.f32 %v3351_v39, %v766_v29 }
 0x9c6   :  { %v771_v23 = vmul.f32 %v2693_v16, %v770_v21 }
 0x9c8   :  { %v772_v27 = vadd.f32 %v2693_v16, %v771_v23 }
 0x9ca   :  { %v776_v30 = vsel %vm775_vm12, %v2693_v16, %v772_v27  ;;  %v892_v16 = vperm.slane %v867_v10, 1 }
 0x9cb   :  { %v781_v32 = vsel %vm778_vm13, %v780_v28, %v776_v30 }
 0x9cc   :  { %v782_v34 = vmul.f32 %v3355_v42, %v781_v32 }
 0x9ce   :  { %v784_v35 = vpack.c.bf16 %v782_v34, %v767_v33 }
 0x9d0   :  { %2435 = vmatmul.msk.bf16.gmra.mxu3 %vm686_vm7, %v784_v35 }
 0xa43   :  { %v806_v38 = vpop.f32.mrf.mxu3 }
 0xa44   :  { %v816_v41 = vmul.f32 %v3325_v1, %v806_v38 }
 0xa4b   :  { %v808_v40 = vpop.f32.mrf.mxu3 }
 0xa4c   :  { %v817_v43 = vmul.f32 %v3327_v0, %v808_v40 }
 0xa4e   :  { %v824_v44 = vpack.c.bf16 %v817_v43, %v816_v41 }
 0xa50   :  { %2444 = vmatmul.msk.bf16.vlgmr.msra.gmra.mxu0 %vm256_vm0, %v824_v44 }
 0xa53   :  { %v811_v45 = vpop.f32.mrf.mxu3 }
 0xa54   :  { %v818_v42 = vmul.f32 %v3333_v7, %v811_v45 }
 0xa5b   :  { %v813_v39 = vpop.f32.mrf.mxu3 }
 0xa5c   :  { %v819_v46 = vmul.f32 %v3335_v8, %v813_v39 }
 0xa5e   :  { %v825_v47 = vpack.c.bf16 %v819_v46, %v818_v42  ;;  %v2613_v42 = vld [vmem:[#allocation17 + $0x18] sm:$0xff]  ;;  %v2612_v46 = vld [vmem:[#allocation17 + $0x10] sm:$0xff] }
 0xa5f   :  { %1002 = vmatpush.bf16.msrb.mxu1 %v2613_v42 }
 0xa60   :  { %2445 = vmatmul.msk.bf16.gmra.mxu0 %vm256_vm0, %v825_v47 }
 0xa63   :  { %1003 = vmatpush.bf16.msrb.mxu1 %v2612_v46 }
 0xacd   :  { %v853_v48 = vpop.f32.mrf.mxu0 }
 0xad5   :  { %v855_v49 = vpop.f32.mrf.mxu0 }
 0xad6   :  { %v863_v51 = vadd.f32 %v855_v49, %v853_v48 }
 0xadd   :  { %v858_v50 = vpop.f32.mrf.mxu0 }
 0xade   :  { %v864_v52 = vadd.f32 %v863_v51, %v858_v50 }
 0xae5   :  { %v860_v53 = vpop.f32.mrf.mxu0 }
 0xae6   :  { %v865_v54 = vadd.f32 %v864_v52, %v860_v53 }
 0xae8   :  { %v866_v55 = vadd.f32 %v865_v54, %v3312_v31  ;;  %v2456_v54 = vld [vmem:[%s3635_s9 + $0x2] sm:$0x3] }
 0xaea   :  { %v868_v56 = vsel %vm256_vm0, %v866_v55, 0.0 }
 0xaeb   :  { %869 = vadd.xlane.f32.xlu1 %v868_v56 }
 0xb5e   :  { %v870_v57 = vpop.xlane.xlu1 %869 }
 0xb5f   :  { %v871_v58 = vmul.f32 %v870_v57, %v3280_v12  ;;  %v971_v57 = vperm.slane %v2456_v54, 0 }
 0xb61   :  { %v872_v59 = vsub.f32 %v866_v55, %v871_v58 }
 0xb63   :  { %v873_v60 = vmul.f32 %v872_v59, %v872_v59 }
 0xb65   :  { %v874_v61 = vsel %vm256_vm0, %v873_v60, 0.0  ;;  %v973_v60 = vperm.slane %v2456_v54, 1 }
 0xb66   :  { %875 = vadd.xlane.f32.xlu1 %v874_v61 }
 0xbd9   :  { %v876_v62 = vpop.xlane.xlu1 %875 }
 0xbda   :  { %v877_v63 = vmul.f32 %v876_v62, %v3280_v12 }
 0xbdc   :  { %v878_v2 = vadd.f32 1e-05, %v877_v63 }
 0xbde   :  { %2694 = vrsqrt.f32 %v878_v2  ;;  %vm885_vm15 = vweird.f32 %v878_v2 }
 0xbe4   :  { %v2695_v31 = vpop.eup %2694 }
 0xbe5   :  { %v880_v5 = vmul.f32 %v2695_v31, %v878_v2  ;;  %vm886_vm14 = vweird.f32 %v2695_v31 }
 0xbe6   :  { %vm887_vm1 = vmor %vm885_vm15, %vm886_vm14 }
 0xbe7   :  { %v881_v6 = vmul.f32 %v2695_v31, %v880_v5 }
 0xbe9   :  { %v882_v9 = vmul.f32 0.5, %v881_v6 }
 0xbeb   :  { %v883_v11 = vsub.f32 1.5, %v882_v9 }
 0xbed   :  { %v884_v13 = vmul.f32 %v2695_v31, %v883_v11 }
 0xbef   :  { %v888_v15 = vsel %vm887_vm1, %v2695_v31, %v884_v13 }
 0xbf0   :  { %v889_v17 = vmul.f32 %v888_v15, %v872_v59 }
 0xbf2   :  { %v891_v18 = vmul.f32 %v890_v14, %v889_v17 }
 0xbf4   :  { %v893_v19 = vadd.f32 %v892_v16, %v891_v18 }
 0xbf6   :  { %v2446_v20 = vmul.f32 -1.442695, %v893_v19 }
 0xbf8   :  { %2696 = vpow2.f32 %v2446_v20 }
 0xbfe   :  { %v2697_v21 = vpop.eup %2696 }
 0xbff   :  { %v897_v22 = vadd.f32 1.0, %v2697_v21 }
 0xc01   :  { %2698 = vrcp.f32 %v897_v22  ;;  %v909_v26 = vand.u32 2147483648, %v897_v22  ;;  %v907_v28 = vand.u32 2147483647, %v897_v22  ;;  %vm903_vm3 = vweird.f32 %v897_v22 }
 0xc03   :  { %v910_v30 = vor.u32 1.1754944e-38, %v909_v26  ;;  %vm908_vm5 = vcmp.eq.f32.partialorder %v907_v28, 8.507059e+37 }
 0xc07   :  { %v2699_v23 = vpop.eup %2698 }
 0xc08   :  { %v899_v24 = vmul.f32 %v2699_v23, %v897_v22  ;;  %vm904_vm2 = vweird.f32 %v2699_v23 }
 0xc09   :  { %vm905_vm4 = vmor %vm903_vm3, %vm904_vm2 }
 0xc0a   :  { %v900_v25 = vsub.f32 1.0, %v899_v24 }
 0xc0c   :  { %v901_v27 = vmul.f32 %v2699_v23, %v900_v25 }
 0xc0e   :  { %v902_v29 = vadd.f32 %v2699_v23, %v901_v27 }
 0xc10   :  { %v906_v32 = vsel %vm905_vm4, %v2699_v23, %v902_v29 }
 0xc11   :  { %v911_v33 = vsel %vm908_vm5, %v910_v30, %v906_v32 }
 0xc12   :  { %v913_v34 = vmul.f32 %v911_v33, %v893_v19 }
 0xc14   :  { %v918_v35 = vpack.c.bf16 %v913_v34, %v913_v34 }
 0xc16   :  { %2455 = vmatmul.msk.bf16.vlgmr.msra.gmra.mxu1 %vm256_vm0, %v918_v35 }
 0xc93   :  { %v943_v36 = vpop.f32.mrf.mxu1 }
 0xc94   :  { %v3379_v37 = vadd.f32 %v943_v36, %v866_v55 }
 0xc96   :  { %v949_v38 = vsel %vm256_vm0, %v3379_v37, 0.0 }
 0xc97   :  { %950 = vadd.xlane.f32.xlu0 %v949_v38 }
 0xc9b   :  { %v945_v40 = vpop.f32.mrf.mxu1 }
 0xd0a   :  { %v951_v41 = vpop.xlane.xlu0 %950 }
 0xd0b   :  { %v952_v43 = vmul.f32 %v951_v41, %v3280_v12 }
 0xd0d   :  { %v953_v44 = vsub.f32 %v3379_v37, %v952_v43 }
 0xd0f   :  { %v954_v45 = vmul.f32 %v953_v44, %v953_v44 }
 0xd11   :  { %v955_v39 = vsel %vm256_vm0, %v954_v45, 0.0 }
 0xd12   :  { %956 = vadd.xlane.f32.xlu1 %v955_v39 }
 0xd85   :  { %v957_v47 = vpop.xlane.xlu1 %956 }
 0xd86   :  { %v958_v48 = vmul.f32 %v957_v47, %v3280_v12 }
 0xd88   :  { %v959_v49 = vadd.f32 1e-05, %v958_v48 }
 0xd8a   :  { %2700 = vrsqrt.f32 %v959_v49  ;;  %vm966_vm9 = vweird.f32 %v959_v49 }
 0xd90   :  { %v2701_v50 = vpop.eup %2700 }
 0xd91   :  { %v961_v51 = vmul.f32 %v2701_v50, %v959_v49  ;;  %vm967_vm6 = vweird.f32 %v2701_v50 }
 0xd92   :  { %vm968_vm10 = vmor %vm966_vm9, %vm967_vm6 }
 0xd93   :  { %v962_v52 = vmul.f32 %v2701_v50, %v961_v51 }
 0xd95   :  { %v963_v53 = vmul.f32 0.5, %v962_v52 }
 0xd97   :  { %v964_v55 = vsub.f32 1.5, %v963_v53 }
 0xd99   :  { %v965_v56 = vmul.f32 %v2701_v50, %v964_v55 }
 0xd9b   :  { %v969_v58 = vsel %vm968_vm10, %v2701_v50, %v965_v56 }
 0xd9c   :  { %v970_v59 = vmul.f32 %v969_v58, %v953_v44 }
 0xd9e   :  { %v972_v61 = vmul.f32 %v971_v57, %v970_v59 }
 0xda0   :  { %v974_v62 = vadd.f32 %v973_v60, %v972_v61 }
 0xda2   :  { %v980_v63 = vpack.c.bf16 %v974_v62, %v974_v62 }
 0xda4   :  { %2465 = vmatmul.msk.bf16.vlgmr.msrb.gmra.mxu1 %vm256_vm0, %v980_v63 }
 0xe21   :  { %v1005_v2 = vpop.f32.mrf.mxu1 }
 0xe22   :  { %v1015_v3 = vpack.c.bf16 %v1005_v2, %v1005_v2  ;;  %v1009_v6 = vmul.f32 %v3325_v1, %v1005_v2  ;;  %v1010_v9 = vmul.f32 %v3327_v0, %v1005_v2  ;;  %v1011_v11 = vmul.f32 %v3333_v7, %v1005_v2 }
 0xe23   :  { %v1012_v13 = vmul.f32 %v3335_v8, %v1005_v2 }
 0xe24   :  { %1017 = vrot.lane.b32.xlu2 %v1015_v3, %s3133_s13  ;;  %v1013_v10 = vpack.c.bf16 %v1010_v9, %v1009_v6 }
 0xe25   :  { %v1014_v14 = vpack.c.bf16 %v1012_v13, %v1011_v11 }
 0xe29   :  { %v1007_v4 = vpop.f32.mrf.mxu1 }
 0xe7e   :  { %v1018_v31 = vpop.permute.xlu2 %1017 }
 0xe7f   :  { %v1026_v5 = vsel %vm256_vm0, %v1018_v31, 0 }
 0xe80   :  { %1035 = vmatpush.bf16.xpose.msra.mxu2 %v1026_v5 }
 0xe87   :  { %2466 = vmatmul.msk.bf16.vlgmr.msra.gmra.mxu2 %vm256_vm0, %v1013_v10 }
 0xe97   :  { %2467 = vmatmul.msk.bf16.gmra.mxu2 %vm256_vm0, %v1014_v14 }
 0xf0a   :  { %v1037_v15 = vpop.f32.mrf.mxu2 }
 0xf0b   :  { %v1047_v16 = vsel %vm686_vm7, %v1037_v15, -inf }
 0xf0c   :  { %1048 = vmax.xlane.f32.xlu0 %v1047_v16 }
 0xf12   :  { %v1039_v17 = vpop.f32.mrf.mxu2 }
 0xf13   :  { %v1050_v18 = vsel %vm686_vm7, %v1039_v17, -inf }
 0xf14   :  { %1051 = vmax.xlane.f32.xlu1 %v1050_v18 }
 0xf1a   :  { %v1042_v19 = vpop.f32.mrf.mxu2 }
 0xf1b   :  { %v1053_v20 = vsel %vm686_vm7, %v1042_v19, -inf }
 0xf1c   :  { %1054 = vmax.xlane.f32.xlu2 %v1053_v20 }
 0xf22   :  { %v1044_v21 = vpop.f32.mrf.mxu2 }
 0xf23   :  { %v1056_v22 = vsel %vm686_vm7, %v1044_v21, -inf }
 0xf24   :  { %1057 = vmax.xlane.f32.xlu0 %v1056_v22 }
 0xf7f   :  { %v1049_v23 = vpop.xlane.xlu0 %1048 }
 0xf80   :  { %v1059_v24 = vsub.f32 %v1037_v15, %v1049_v23 }
 0xf82   :  { %v1063_v25 = vmul.f32 1.442695, %v1059_v24 }
 0xf84   :  { %2702 = vpow2.f32 %v1063_v25 }
 0xf87   :  { %v1052_v26 = vpop.xlane.xlu1 %1051 }
 0xf88   :  { %v1060_v27 = vsub.f32 %v1039_v17, %v1052_v26 }
 0xf8a   :  { %v3403_v28 = vpop.eup %2702  ;;  %v1065_v29 = vmul.f32 1.442695, %v1060_v27 }
 0xf8b   :  { %v1071_v30 = vsel %vm686_vm7, %v3403_v28, 0.0 }
 0xf8c   :  { %2704 = vpow2.f32 %v1065_v29  ;;  %1072 = vadd.xlane.f32.xlu1 %v1071_v30 }
 0xf8f   :  { %v1055_v32 = vpop.xlane.xlu2 %1054 }
 0xf90   :  { %v1061_v33 = vsub.f32 %v1042_v19, %v1055_v32 }
 0xf92   :  { %v2705_v34 = vpop.eup %2704  ;;  %v1067_v35 = vmul.f32 1.442695, %v1061_v33 }
 0xf93   :  { %v1074_v36 = vsel %vm686_vm7, %v2705_v34, 0.0 }
 0xf94   :  { %2706 = vpow2.f32 %v1067_v35  ;;  %1075 = vadd.xlane.f32.xlu0 %v1074_v36 }
 0xf97   :  { %v1058_v38 = vpop.xlane.xlu0 %1057 }
 0xf98   :  { %v1062_v40 = vsub.f32 %v1044_v21, %v1058_v38 }
 0xf9a   :  { %v3408_v41 = vpop.eup %2706  ;;  %v1069_v43 = vmul.f32 1.442695, %v1062_v40  ;;  %v2615_v40 = vld [vmem:[#allocation19 + $0x18] sm:$0xff] }
 0xf9b   :  { %v1077_v44 = vsel %vm686_vm7, %v3408_v41, 0.0  ;;  %1210 = vmatpush.bf16.msrb.mxu0 %v2615_v40 }
 0xf9c   :  { %2708 = vpow2.f32 %v1069_v43  ;;  %1078 = vadd.xlane.f32.xlu1 %v1077_v44  ;;  %v2614_v43 = vld [vmem:[#allocation19 + $0x10] sm:$0xff] }
 0xf9d   :  { %v1314_v44 = vld [vmem:[#allocation5 + $0x18] sm:$0xff] }
 0xf9f   :  { %1211 = vmatpush.bf16.msrb.mxu0 %v2614_v43  ;;  %v2617_v43 = vld [vmem:[#allocation20 + $0x18] sm:$0xff] }
 0xfa0   :  { %1302 = vmatpush.bf16.msra.mxu1 %v2617_v43 }
 0xfa2   :  { %v3412_v45 = vpop.eup %2708 }
 0xfa3   :  { %v1080_v39 = vsel %vm686_vm7, %v3412_v45, 0.0 }
 0xfa4   :  { %1081 = vadd.xlane.f32.xlu0 %v1080_v39  ;;  %v1346_v39 = vsel %vm256_vm0, %v1314_v44, 0.0 }
 0xfa5   :  { %1347 = vadd.xlane.f32.xlu2 %v1346_v39 }
 0xfb5   :  { %1145 = vrot.lane.b32.xlu1 %v1015_v3, %s3121_s16 }
 0xfff   :  { %v1073_v42 = vpop.xlane.xlu1 %1072 }
0x1000   :  { %v1094_v63 = vand.u32 2147483648, %v1073_v42  ;;  %vm1088_vm1 = vweird.f32 %v1073_v42  ;;  %v1092_v2 = vand.u32 2147483647, %v1073_v42 }
0x1002   :  { %v1095_v9 = vor.u32 1.1754944e-38, %v1094_v63  ;;  %vm1093_vm4 = vcmp.eq.f32.partialorder %v1092_v2, 8.507059e+37 }
0x1007   :  { %v1076_v46 = vpop.xlane.xlu0 %1075 }
0x1008   :  { %2710 = vrcp.f32 %v1076_v46  ;;  %v1109_v58 = vand.u32 2147483648, %v1076_v46  ;;  %vm1103_vm14 = vweird.f32 %v1076_v46  ;;  %v1107_v61 = vand.u32 2147483647, %v1076_v46 }
0x1009   :  { %2712 = vrcp.f32 %v1073_v42 }
0x100a   :  { %v1110_v31 = vor.u32 1.1754944e-38, %v1109_v58  ;;  %vm1108_vm3 = vcmp.eq.f32.partialorder %v1107_v61, 8.507059e+37 }
0x100e   :  { %v2711_v47 = vpop.eup %2710 }
0x100f   :  { %v2713_v48 = vpop.eup %2712  ;;  %v1099_v49 = vmul.f32 %v2711_v47, %v1076_v46  ;;  %v1079_v53 = vpop.xlane.xlu1 %1078  ;;  %vm1104_vm12 = vweird.f32 %v2711_v47 }
0x1010   :  { %v1084_v50 = vmul.f32 %v2713_v48, %v1073_v42  ;;  %vm1089_vm13 = vweird.f32 %v2713_v48  ;;  %vm1105_vm15 = vmor %vm1103_vm14, %vm1104_vm12  ;;  %v1124_v26 = vand.u32 2147483648, %v1079_v53  ;;  %vm1118_vm12 = vweird.f32 %v1079_v53 }
0x1011   :  { %v1100_v51 = vsub.f32 1.0, %v1099_v49  ;;  %vm1090_vm2 = vmor %vm1088_vm1, %vm1089_vm13  ;;  %v1122_v27 = vand.u32 2147483647, %v1079_v53 }
0x1012   :  { %v1085_v52 = vsub.f32 1.0, %v1084_v50  ;;  %v1125_v32 = vor.u32 1.1754944e-38, %v1124_v26 }
0x1013   :  { %v1101_v55 = vmul.f32 %v2711_v47, %v1100_v51 }
0x1014   :  { %v1086_v56 = vmul.f32 %v2713_v48, %v1085_v52 }
0x1015   :  { %v1102_v57 = vadd.f32 %v2711_v47, %v1101_v55 }
0x1016   :  { %v1087_v60 = vadd.f32 %v2713_v48, %v1086_v56 }
0x1017   :  { %v1082_v54 = vpop.xlane.xlu0 %1081  ;;  %v1106_v3 = vsel %vm1105_vm15, %v2711_v47, %v1102_v57  ;;  %vm1123_vm15 = vcmp.eq.f32.partialorder %v1122_v27, 8.507059e+37 }
0x1018   :  { %2714 = vrcp.f32 %v1082_v54  ;;  %v1091_v5 = vsel %vm1090_vm2, %v2713_v48, %v1087_v60  ;;  %v1111_v10 = vsel %vm1108_vm3, %v1110_v31, %v1106_v3  ;;  %v1139_v23 = vand.u32 2147483648, %v1082_v54  ;;  %v1348_v2 = vpop.xlane.xlu2 %1347 }
0x1019   :  { %2716 = vrcp.f32 %v1079_v53  ;;  %v1096_v13 = vsel %vm1093_vm4, %v1095_v9, %v1091_v5  ;;  %v1112_v14 = vmul.f32 %v2705_v34, %v1111_v10  ;;  %vm1133_vm9 = vweird.f32 %v1082_v54 }
0x101a   :  { %v1097_v17 = vmul.f32 %v3403_v28, %v1096_v13  ;;  %v1137_v25 = vand.u32 2147483647, %v1082_v54  ;;  %v1140_v29 = vor.u32 1.1754944e-38, %v1139_v23  ;;  %v1350_v3 = vmul.f32 %v1348_v2, %v3280_v12  ;;  %v1342_v2 = vld [vmem:[#allocation8] sm:$0x3] }
0x101c   :  { %v1143_v21 = vpack.c.bf16 %v1112_v14, %v1097_v17  ;;  %vm1138_vm14 = vcmp.eq.f32.partialorder %v1137_v25, 8.507059e+37  ;;  %v3439_v31 = vsub.f32 %v1314_v44, %v1350_v3 }
0x101e   :  { %v2715_v59 = vpop.eup %2714 }
0x101f   :  { %v2717_v62 = vpop.eup %2716  ;;  %v1129_v4 = vmul.f32 %v2715_v59, %v1082_v54  ;;  %vm1134_vm5 = vweird.f32 %v2715_v59 }
0x1020   :  { %v1114_v6 = vmul.f32 %v2717_v62, %v1079_v53  ;;  %vm1119_vm6 = vweird.f32 %v2717_v62  ;;  %vm1135_vm10 = vmor %vm1133_vm9, %vm1134_vm5 }
0x1021   :  { %v1130_v11 = vsub.f32 1.0, %v1129_v4  ;;  %vm1120_vm13 = vmor %vm1118_vm12, %vm1119_vm6  ;;  %v3437_v4 = vld [vmem:[#allocation2 + $0x8] sm:$0xff] }
0x1022   :  { %v1115_v15 = vsub.f32 1.0, %v1114_v6  ;;  %v1316_v5 = vsel %vm256_vm0, %v3437_v4, 0.0 }
0x1023   :  { %v1131_v18 = vmul.f32 %v2715_v59, %v1130_v11 }
0x1024   :  { %v1116_v20 = vmul.f32 %v2717_v62, %v1115_v15 }
0x1025   :  { %v1132_v22 = vadd.f32 %v2715_v59, %v1131_v18 }
0x1026   :  { %v1117_v24 = vadd.f32 %v2717_v62, %v1116_v20 }
0x1027   :  { %v1146_v16 = vpop.permute.xlu1 %1145  ;;  %v1136_v28 = vsel %vm1135_vm10, %v2715_v59, %v1132_v22 }
0x1028   :  { %v1154_v19 = vsel %vm793_vm8, %v1146_v16, 0  ;;  %v1121_v30 = vsel %vm1120_vm13, %v2717_v62, %v1117_v24  ;;  %v1141_v33 = vsel %vm1138_vm14, %v1140_v29, %v1136_v28  ;;  %v1313_v62 = vld [vmem:[#allocation5 + $0x10] sm:$0xff]  ;;  %v2621_v28 = vld [vmem:[#allocation11 + $0x8] sm:$0xff] }
0x1029   :  { %1163 = vmatpush.bf16.msrb.mxu3 %v1154_v19  ;;  %v1126_v34 = vsel %vm1123_vm15, %v1125_v32, %v1121_v30  ;;  %v1142_v35 = vmul.f32 %v3412_v45, %v1141_v33  ;;  %v1343_v63 = vsel %vm256_vm0, %v1313_v62, 0.0  ;;  %1452 = vmatpush.bf16.msrb.mxu2 %v2621_v28 }
0x102a   :  { %v1127_v36 = vmul.f32 %v3408_v41, %v1126_v34  ;;  %v2620_v34 = vld [vmem:[#allocation11] sm:$0xff] }
0x102c   :  { %2468 = vmatmul.msk.bf16.vlgmr.msrb.gmra.mxu3 %vm686_vm7, %v1143_v21  ;;  %v1144_v38 = vpack.c.bf16 %v1142_v35, %v1127_v36 }
0x102d   :  { %1453 = vmatpush.bf16.msrb.mxu2 %v2620_v34 }
0x103c   :  { %2469 = vmatmul.msk.bf16.gmra.mxu3 %vm686_vm7, %v1144_v38 }
0x10af   :  { %v1165_v42 = vpop.f32.mrf.mxu3 }
0x10b0   :  { %v1175_v47 = vmul.f32 %v3325_v1, %v1165_v42  ;;  %v2616_v42 = vld [vmem:[#allocation20 + $0x10] sm:$0xff] }
0x10b1   :  { %1303 = vmatpush.bf16.msra.mxu1 %v2616_v42 }
0x10b7   :  { %v1167_v46 = vpop.f32.mrf.mxu3 }
0x10b8   :  { %v1176_v48 = vmul.f32 %v3327_v0, %v1167_v46 }
0x10ba   :  { %v1184_v45 = vpack.c.bf16 %v1176_v48, %v1175_v47 }
0x10bc   :  { %2478 = vmatmul.msk.bf16.vlgmr.msrb.gmra.mxu0 %vm256_vm0, %v1184_v45 }
0x10bf   :  { %v1170_v41 = vpop.f32.mrf.mxu3 }
0x10c0   :  { %v1177_v50 = vmul.f32 %v3333_v7, %v1170_v41 }
0x10c7   :  { %v1172_v49 = vpop.f32.mrf.mxu3 }
0x10c8   :  { %v1178_v51 = vmul.f32 %v3335_v8, %v1172_v49  ;;  %v2480_v49 = vld [vmem:[%s3638_s12 + $0x2] sm:$0x3] }
0x10ca   :  { %v1185_v52 = vpack.c.bf16 %v1178_v51, %v1177_v50 }
0x10cc   :  { %2479 = vmatmul.msk.bf16.gmra.mxu0 %vm256_vm0, %v1185_v52 }
0x1139   :  { %v1213_v53 = vpop.f32.mrf.mxu0 }
0x1141   :  { %v1215_v54 = vpop.f32.mrf.mxu0 }
0x1142   :  { %v1223_v56 = vadd.f32 %v1215_v54, %v1213_v53 }
0x1149   :  { %v1218_v55 = vpop.f32.mrf.mxu0 }
0x114a   :  { %v1224_v57 = vadd.f32 %v1223_v56, %v1218_v55 }
0x1151   :  { %v1220_v58 = vpop.f32.mrf.mxu0 }
0x1152   :  { %v1225_v59 = vadd.f32 %v1224_v57, %v1220_v58  ;;  %v1251_v57 = vperm.slane %v2480_v49, 0 }
0x1154   :  { %v3431_v60 = vadd.f32 %v1225_v59, %v3379_v37  ;;  %v1354_v37 = vmul.f32 %v3439_v31, %v3439_v31 }
0x1156   :  { %v1229_v61 = vsel %vm256_vm0, %v3431_v60, 0.0  ;;  %v1358_v6 = vsel %vm256_vm0, %v1354_v37, 0.0 }
0x1157   :  { %1230 = vadd.xlane.f32.xlu0 %v1229_v61 }
0x115f   :  { %1344 = vadd.xlane.f32.xlu0 %v1343_v63 }
0x1167   :  { %1317 = vadd.xlane.f32.xlu0 %v1316_v5 }
0x116f   :  { %1359 = vadd.xlane.f32.xlu0 %v1358_v6 }
0x11ca   :  { %v1231_v9 = vpop.xlane.xlu0 %1230 }
0x11cb   :  { %v1232_v10 = vmul.f32 %v1231_v9, %v3280_v12 }
0x11cd   :  { %v3448_v11 = vsub.f32 %v3431_v60, %v1232_v10  ;;  %v1387_v10 = vperm.slane %v1342_v2, 0 }
0x11cf   :  { %v1234_v13 = vmul.f32 %v3448_v11, %v3448_v11 }
0x11d1   :  { %v1235_v14 = vsel %vm256_vm0, %v1234_v13, 0.0 }
0x11d2   :  { %1236 = vadd.xlane.f32.xlu1 %v1235_v14  ;;  %v1345_v15 = vpop.xlane.xlu0 %1344 }
0x11d3   :  { %v1349_v16 = vmul.f32 %v1345_v15, %v3280_v12 }
0x11d5   :  { %v3454_v17 = vsub.f32 %v1313_v62, %v1349_v16  ;;  %v1253_v62 = vperm.slane %v2480_v49, 1 }
0x11d7   :  { %v1353_v18 = vmul.f32 %v3454_v17, %v3454_v17 }
0x11d9   :  { %v1355_v19 = vsel %vm256_vm0, %v1353_v18, 0.0  ;;  %v2619_v18 = vld [vmem:[#allocation10 + $0x8] sm:$0xff] }
0x11da   :  { %1356 = vadd.xlane.f32.xlu2 %v1355_v19  ;;  %v1318_v20 = vpop.xlane.xlu0 %1317  ;;  %1419 = vmatpush.bf16.msrb.mxu1 %v2619_v18 }
0x11db   :  { %v1319_v21 = vmul.f32 %v1318_v20, %v3280_v12 }
0x11dd   :  { %v3461_v22 = vsub.f32 %v3437_v4, %v1319_v21 }
0x11df   :  { %v1321_v23 = vmul.f32 %v3461_v22, %v3461_v22 }
0x11e1   :  { %v1322_v24 = vsel %vm256_vm0, %v1321_v23, 0.0  ;;  %v2618_v23 = vld [vmem:[#allocation10] sm:$0xff] }
0x11e2   :  { %1323 = vadd.xlane.f32.xlu2 %v1322_v24  ;;  %v1360_v25 = vpop.xlane.xlu0 %1359  ;;  %1420 = vmatpush.bf16.msrb.mxu1 %v2618_v23 }
0x11e3   :  { %v1362_v26 = vmul.f32 %v1360_v25, %v3280_v12 }
0x11e5   :  { %v1364_v27 = vadd.f32 1e-05, %v1362_v26 }
0x11e7   :  { %2718 = vrsqrt.f32 %v1364_v27  ;;  %vm1381_vm1 = vweird.f32 %v1364_v27 }
0x11ed   :  { %v2719_v30 = vpop.eup %2718 }
0x11ee   :  { %v1376_v35 = vmul.f32 %v2719_v30, %v1364_v27  ;;  %vm1382_vm2 = vweird.f32 %v2719_v30 }
0x11ef   :  { %vm3472_vm4 = vmor %vm1381_vm1, %vm1382_vm2 }
0x11f0   :  { %v1377_v36 = vmul.f32 %v2719_v30, %v1376_v35 }
0x11f2   :  { %v1378_v46 = vmul.f32 0.5, %v1377_v36 }
0x11f4   :  { %v1379_v45 = vsub.f32 1.5, %v1378_v46 }
0x11f6   :  { %v1380_v53 = vmul.f32 %v2719_v30, %v1379_v45 }
0x11f8   :  { %v1384_v3 = vsel %vm3472_vm4, %v2719_v30, %v1380_v53 }
0x11f9   :  { %v1386_v13 = vmul.f32 %v1384_v3, %v3439_v31 }
0x11fb   :  { %v1389_v20 = vmul.f32 %v1387_v10, %v1386_v13 }
0x1245   :  { %v1237_v29 = vpop.xlane.xlu1 %1236 }
0x1246   :  { %v1238_v32 = vmul.f32 %v1237_v29, %v3280_v12 }
0x1248   :  { %v1239_v33 = vadd.f32 1e-05, %v1238_v32 }
0x124a   :  { %2720 = vrsqrt.f32 %v1239_v33  ;;  %vm1246_vm5 = vweird.f32 %v1239_v33 }
0x124d   :  { %v1357_v38 = vpop.xlane.xlu2 %1356 }
0x124e   :  { %v1361_v40 = vmul.f32 %v1357_v38, %v3280_v12 }
0x1250   :  { %v2721_v44 = vpop.eup %2720  ;;  %v1363_v39 = vadd.f32 1e-05, %v1361_v40 }
0x1251   :  { %v1241_v47 = vmul.f32 %v2721_v44, %v1239_v33  ;;  %vm1247_vm3 = vweird.f32 %v2721_v44 }
0x1252   :  { %2722 = vrsqrt.f32 %v1363_v39  ;;  %vm1248_vm6 = vmor %vm1246_vm5, %vm1247_vm3  ;;  %vm1371_vm9 = vweird.f32 %v1363_v39 }
0x1253   :  { %v1242_v48 = vmul.f32 %v2721_v44, %v1241_v47 }
0x1255   :  { %v1243_v41 = vmul.f32 0.5, %v1242_v48  ;;  %v1324_v52 = vpop.xlane.xlu2 %1323 }
0x1256   :  { %v1325_v61 = vmul.f32 %v1324_v52, %v3280_v12 }
0x1257   :  { %v1244_v50 = vsub.f32 1.5, %v1243_v41  ;;  %v1315_v41 = vld [vmem:[#allocation7] sm:$0x3] }
0x1258   :  { %v2723_v51 = vpop.eup %2722  ;;  %v1326_v9 = vadd.f32 1e-05, %v1325_v61  ;;  %v1340_v53 = vperm.slane %v1315_v41, 1 }
0x1259   :  { %v1245_v55 = vmul.f32 %v2721_v44, %v1244_v50  ;;  %v1366_v56 = vmul.f32 %v2723_v51, %v1363_v39  ;;  %vm1372_vm10 = vweird.f32 %v2723_v51  ;;  %v1338_v50 = vperm.slane %v1315_v41, 0 }
0x125a   :  { %vm1373_vm12 = vmor %vm1371_vm9, %vm1372_vm10  ;;  %2724 = vrsqrt.f32 %v1326_v9  ;;  %vm1333_vm15 = vweird.f32 %v1326_v9 }
0x125b   :  { %v1249_v58 = vsel %vm1248_vm6, %v2721_v44, %v1245_v55  ;;  %v1367_v59 = vmul.f32 %v2723_v51, %v1366_v56 }
0x125c   :  { %v1250_v63 = vmul.f32 %v1249_v58, %v3448_v11  ;;  %v1390_v11 = vperm.slane %v1342_v2, 1 }
0x125d   :  { %v1368_v5 = vmul.f32 0.5, %v1367_v59 }
0x125e   :  { %v1252_v37 = vmul.f32 %v1251_v57, %v1250_v63  ;;  %v1392_v25 = vadd.f32 %v1390_v11, %v1389_v20 }
0x125f   :  { %v1369_v6 = vsub.f32 1.5, %v1368_v5 }
0x1260   :  { %v1254_v14 = vadd.f32 %v1253_v62, %v1252_v37  ;;  %v2725_v27 = vpop.eup %2724 }
0x1261   :  { %v1370_v15 = vmul.f32 %v2723_v51, %v1369_v6  ;;  %v1328_v30 = vmul.f32 %v2725_v27, %v1326_v9  ;;  %vm1334_vm1 = vweird.f32 %v2725_v27 }
0x1262   :  { %v2481_v16 = vmul.f32 -1.442695, %v1254_v14  ;;  %vm1335_vm4 = vmor %vm1333_vm15, %vm1334_vm1 }
0x1263   :  { %v1374_v19 = vsel %vm1373_vm12, %v2723_v51, %v1370_v15  ;;  %v1329_v32 = vmul.f32 %v2725_v27, %v1328_v30  ;;  %v2622_v30 = vld [vmem:[#allocation13] sm:$0xff] }
0x1264   :  { %2726 = vpow2.f32 %v2481_v16  ;;  %v1385_v21 = vmul.f32 %v1374_v19, %v3454_v17  ;;  %v2623_v16 = vld [vmem:[#allocation13 + $0x8] sm:$0xff] }
0x1265   :  { %v1330_v35 = vmul.f32 0.5, %v1329_v32 }
0x1266   :  { %v1388_v24 = vmul.f32 %v1387_v10, %v1385_v21 }
0x1267   :  { %v1331_v43 = vsub.f32 1.5, %v1330_v35 }
0x1268   :  { %v1391_v26 = vadd.f32 %v1390_v11, %v1388_v24 }
0x1269   :  { %v1332_v46 = vmul.f32 %v2725_v27, %v1331_v43 }
0x126a   :  { %v2727_v31 = vpop.eup %2726  ;;  %v1430_v28 = vpack.c.bf16 %v1392_v25, %v1391_v26 }
0x126b   :  { %v1258_v29 = vadd.f32 1.0, %v2727_v31  ;;  %v1336_v49 = vsel %vm1335_vm4, %v2725_v27, %v1332_v46 }
0x126c   :  { %2508 = vmatmul.msk.bf16.vlgmr.msrb.gmra.mxu2 %vm256_vm0, %v1430_v28  ;;  %v1337_v51 = vmul.f32 %v1336_v49, %v3461_v22 }
0x126d   :  { %2728 = vrcp.f32 %v1258_v29  ;;  %v1270_v17 = vand.u32 2147483648, %v1258_v29  ;;  %v1268_v40 = vand.u32 2147483647, %v1258_v29  ;;  %vm1264_vm14 = vweird.f32 %v1258_v29 }
0x126e   :  { %v1339_v52 = vmul.f32 %v1338_v50, %v1337_v51 }
0x126f   :  { %v1271_v39 = vor.u32 1.1754944e-38, %v1270_v17  ;;  %vm1269_vm3 = vcmp.eq.f32.partialorder %v1268_v40, 8.507059e+37 }
0x1270   :  { %v1341_v54 = vadd.f32 %v1340_v53, %v1339_v52  ;;  %v1559_v52 = vld [vmem:[#allocation14] sm:$0x3] }
0x1272   :  { %v1397_v55 = vpack.c.bf16 %v1341_v54, %v1341_v54 }
0x1273   :  { %v2729_v33 = vpop.eup %2728 }
0x1274   :  { %v1260_v34 = vmul.f32 %v2729_v33, %v1258_v29  ;;  %vm1265_vm13 = vweird.f32 %v2729_v33 }
0x1275   :  { %vm1266_vm2 = vmor %vm1264_vm14, %vm1265_vm13 }
0x1276   :  { %v1261_v36 = vsub.f32 1.0, %v1260_v34 }
0x1278   :  { %v1262_v38 = vmul.f32 %v2729_v33, %v1261_v36 }
0x127a   :  { %v1263_v44 = vadd.f32 %v2729_v33, %v1262_v38 }
0x127c   :  { %v1267_v42 = vsel %vm1266_vm2, %v2729_v33, %v1263_v44 }
0x127d   :  { %v1272_v47 = vsel %vm1269_vm3, %v1271_v39, %v1267_v42 }
0x127e   :  { %v1274_v48 = vmul.f32 %v1272_v47, %v1254_v14 }
0x1280   :  { %v1280_v45 = vpack.c.bf16 %v1274_v48, %v1274_v48 }
0x1282   :  { %2490 = vmatmul.msk.bf16.vlgmr.msra.gmra.mxu1 %vm256_vm0, %v1280_v45  ;;  %v2625_v45 = vld [vmem:[#allocation16 + $0x8] sm:$0xff] }
0x1283   :  { %1552 = vmatpush.bf16.msra.mxu1 %v2623_v16  ;;  %1632 = vmatpush.bf16.msra.mxu2 %v2625_v45 }
0x1287   :  { %1553 = vmatpush.bf16.msra.mxu1 %v2622_v30 }
0x1292   :  { %2499 = vmatmul.msk.bf16.vlgmr.msrb.gmra.mxu1 %vm256_vm0, %v1397_v55  ;;  %v1582_v55 = vperm.slane %v1559_v52, 0 }
0x12ef   :  { %v1455_v56 = vpop.f32.mrf.mxu2 }
0x12f7   :  { %v1457_v57 = vpop.f32.mrf.mxu2 }
0x12f8   :  { %v1461_v58 = vpack.c.bf16 %v1457_v57, %v1455_v56  ;;  %v1584_v57 = vperm.slane %v1559_v52, 1 }
0x12fa   :  { %v1466_v59 = vsel %vm256_vm0, %v1461_v58, 0 }
0x12fb   :  { %1475 = vmatpush.bf16.xpose.msra.mxu3 %v1466_v59 }
0x12ff   :  { %v1305_v61 = vpop.f32.mrf.mxu1 }
0x1300   :  { %v1306_v62 = vadd.f32 %v1305_v61, %v3431_v60 }
0x1302   :  { %1309 = vst.msk [vmem:[#allocation22] sm:$0xff] %vm256_vm0, %v1306_v62 }
0x1307   :  { %v1307_v63 = vpop.f32.mrf.mxu1 }
0x130f   :  { %v1422_v2 = vpop.f32.mrf.mxu1 }
0x1310   :  { %v1460_v22 = vpack.c.bf16 %v1422_v2, %v1422_v2 }
0x1312   :  { %2509 = vmatmul.msk.bf16.vlgmr.msra.gmra.mxu3 %vm256_vm0, %v1460_v22 }
0x1317   :  { %v1424_v3 = vpop.f32.mrf.mxu1 }
0x1395   :  { %v1477_v5 = vpop.f32.mrf.mxu3 }
0x1396   :  { %v1481_v37 = vsel %vm429_vm11, %v1477_v5, -inf }
0x1397   :  { %1482 = vmax.xlane.f32.xlu0 %v1481_v37 }
0x139d   :  { %v1479_v6 = vpop.f32.mrf.mxu3 }
0x13ab   :  { %1507 = vrot.lane.b32.xlu0 %v1461_v58, %s3133_s13 }
0x140a   :  { %v1483_v9 = vpop.xlane.xlu0 %1482 }
0x140b   :  { %v1484_v10 = vsub.f32 %v1477_v5, %v1483_v9 }
0x140d   :  { %v1485_v13 = vmul.f32 1.442695, %v1484_v10 }
0x140f   :  { %2730 = vpow2.f32 %v1485_v13 }
0x1415   :  { %v2731_v60 = vpop.eup %2730 }
0x1416   :  { %v1487_v14 = vsel %vm429_vm11, %v2731_v60, 0.0 }
0x1417   :  { %1488 = vadd.xlane.f32.xlu2 %v1487_v14 }
0x141d   :  { %v1508_v15 = vpop.permute.xlu0 %1507 }
0x141e   :  { %1520 = vmatpush.bf16.msra.mxu0 %v1508_v15 }
0x148a   :  { %v1489_v18 = vpop.xlane.xlu2 %1488 }
0x148b   :  { %2732 = vrcp.f32 %v1489_v18  ;;  %v1501_v21 = vand.u32 2147483648, %v1489_v18  ;;  %v1499_v24 = vand.u32 2147483647, %v1489_v18  ;;  %vm1495_vm6 = vweird.f32 %v1489_v18 }
0x148d   :  { %v1502_v26 = vor.u32 1.1754944e-38, %v1501_v21  ;;  %vm1500_vm10 = vcmp.eq.f32.partialorder %v1499_v24, 8.507059e+37 }
0x1491   :  { %v2733_v19 = vpop.eup %2732 }
0x1492   :  { %v1491_v11 = vmul.f32 %v2733_v19, %v1489_v18  ;;  %vm1496_vm5 = vweird.f32 %v2733_v19 }
0x1493   :  { %vm1497_vm9 = vmor %vm1495_vm6, %vm1496_vm5 }
0x1494   :  { %v1492_v20 = vsub.f32 1.0, %v1491_v11 }
0x1496   :  { %v1493_v23 = vmul.f32 %v2733_v19, %v1492_v20 }
0x1498   :  { %v1494_v25 = vadd.f32 %v2733_v19, %v1493_v23 }
0x149a   :  { %v1498_v27 = vsel %vm1497_vm9, %v2733_v19, %v1494_v25 }
0x149b   :  { %v1503_v31 = vsel %vm1500_vm10, %v1502_v26, %v1498_v27  ;;  %v2627_v27 = vld [vmem:[#allocation17 + $0x8] sm:$0xff] }
0x149c   :  { %v1504_v28 = vmul.f32 %v2731_v60, %v1503_v31  ;;  %1692 = vmatpush.bf16.msrb.mxu3 %v2627_v27  ;;  %v2626_v31 = vld [vmem:[#allocation17] sm:$0xff] }
0x149e   :  { %v1505_v29 = vpack.c.bf16 %v1504_v28, %v1504_v28 }
0x14a0   :  { %2510 = vmatmul.msk.bf16.vlgmr.msra.gmra.mxu0 %vm429_vm11, %v1505_v29  ;;  %1693 = vmatpush.bf16.msrb.mxu3 %v2626_v31 }
0x151d   :  { %v1522_v32 = vpop.f32.mrf.mxu0 }
0x151e   :  { %v1530_v33 = vpack.c.bf16 %v1522_v32, %v1522_v32 }
0x1520   :  { %2519 = vmatmul.msk.bf16.vlgmr.msra.gmra.mxu1 %vm256_vm0, %v1530_v33 }
0x1525   :  { %v1524_v34 = vpop.f32.mrf.mxu0 }
0x159d   :  { %v1555_v35 = vpop.f32.mrf.mxu1 }
0x159e   :  { %v1556_v36 = vadd.f32 %v1555_v35, %v3437_v4  ;;  %v2624_v4 = vld [vmem:[#allocation16] sm:$0xff] }
0x159f   :  { %1633 = vmatpush.bf16.msra.mxu2 %v2624_v4 }
0x15a0   :  { %v1560_v17 = vsel %vm256_vm0, %v1556_v36, 0.0 }
0x15a1   :  { %1561 = vadd.xlane.f32.xlu2 %v1560_v17 }
0x15a5   :  { %v1557_v38 = vpop.f32.mrf.mxu1 }
0x1614   :  { %v1562_v40 = vpop.xlane.xlu2 %1561 }
0x1615   :  { %v1563_v43 = vmul.f32 %v1562_v40, %v3280_v12 }
0x1617   :  { %v1564_v44 = vsub.f32 %v1556_v36, %v1563_v43 }
0x1619   :  { %v1565_v39 = vmul.f32 %v1564_v44, %v1564_v44 }
0x161b   :  { %v1566_v42 = vsel %vm256_vm0, %v1565_v39, 0.0 }
0x161c   :  { %1567 = vadd.xlane.f32.xlu2 %v1566_v42 }
0x168f   :  { %v1568_v46 = vpop.xlane.xlu2 %1567 }
0x1690   :  { %v1569_v47 = vmul.f32 %v1568_v46, %v3280_v12 }
0x1692   :  { %v1570_v48 = vadd.f32 1e-05, %v1569_v47 }
0x1694   :  { %2734 = vrsqrt.f32 %v1570_v48  ;;  %vm1577_vm12 = vweird.f32 %v1570_v48 }
0x169a   :  { %v2735_v41 = vpop.eup %2734 }
0x169b   :  { %v1572_v49 = vmul.f32 %v2735_v41, %v1570_v48  ;;  %vm1578_vm11 = vweird.f32 %v2735_v41 }
0x169c   :  { %vm1579_vm13 = vmor %vm1577_vm12, %vm1578_vm11 }
0x169d   :  { %v1573_v50 = vmul.f32 %v2735_v41, %v1572_v49 }
0x169f   :  { %v1574_v51 = vmul.f32 0.5, %v1573_v50 }
0x16a1   :  { %v1575_v53 = vsub.f32 1.5, %v1574_v51 }
0x16a3   :  { %v1576_v54 = vmul.f32 %v2735_v41, %v1575_v53 }
0x16a5   :  { %v1580_v56 = vsel %vm1579_vm13, %v2735_v41, %v1576_v54 }
0x16a6   :  { %v1581_v58 = vmul.f32 %v1580_v56, %v1564_v44 }
0x16a8   :  { %v1583_v59 = vmul.f32 %v1582_v55, %v1581_v58 }
0x16aa   :  { %v1585_v61 = vadd.f32 %v1584_v57, %v1583_v59 }
0x16ac   :  { %v2520_v62 = vmul.f32 -1.442695, %v1585_v61 }
0x16ae   :  { %2736 = vpow2.f32 %v2520_v62 }
0x16b4   :  { %v2737_v63 = vpop.eup %2736 }
0x16b5   :  { %v1589_v2 = vadd.f32 1.0, %v2737_v63 }
0x16b7   :  { %2738 = vrcp.f32 %v1589_v2  ;;  %v1601_v37 = vand.u32 2147483648, %v1589_v2  ;;  %v1599_v9 = vand.u32 2147483647, %v1589_v2  ;;  %vm1595_vm15 = vweird.f32 %v1589_v2 }
0x16b9   :  { %v1602_v13 = vor.u32 1.1754944e-38, %v1601_v37  ;;  %vm1600_vm2 = vcmp.eq.f32.partialorder %v1599_v9, 8.507059e+37 }
0x16bd   :  { %v2739_v22 = vpop.eup %2738 }
0x16be   :  { %v1591_v3 = vmul.f32 %v2739_v22, %v1589_v2  ;;  %vm1596_vm14 = vweird.f32 %v2739_v22 }
0x16bf   :  { %vm1597_vm1 = vmor %vm1595_vm15, %vm1596_vm14 }
0x16c0   :  { %v1592_v5 = vsub.f32 1.0, %v1591_v3 }
0x16c2   :  { %v1593_v6 = vmul.f32 %v2739_v22, %v1592_v5 }
0x16c4   :  { %v1594_v10 = vadd.f32 %v2739_v22, %v1593_v6 }
0x16c6   :  { %v1598_v60 = vsel %vm1597_vm1, %v2739_v22, %v1594_v10 }
0x16c7   :  { %v1603_v14 = vsel %vm1600_vm2, %v1602_v13, %v1598_v60 }
0x16c8   :  { %v1605_v15 = vmul.f32 %v1603_v14, %v1585_v61 }
0x16ca   :  { %v1610_v16 = vpack.c.bf16 %v1605_v15, %v1605_v15 }
0x16cc   :  { %2529 = vmatmul.msk.bf16.vlgmr.msra.gmra.mxu2 %vm256_vm0, %v1610_v16 }
0x174f   :  { %v1635_v18 = vpop.f32.mrf.mxu2 }
0x1750   :  { %v3501_v19 = vadd.f32 %v1635_v18, %v1556_v36  ;;  %v1639_v36 = vld [vmem:[%s3635_s9] sm:$0x3] }
0x1751   :  { %v1662_v40 = vperm.slane %v1639_v36, 0  ;;  %v1664_v39 = vperm.slane %v1639_v36, 1 }
0x1752   :  { %v1640_v11 = vsel %vm256_vm0, %v3501_v19, 0.0 }
0x1753   :  { %1641 = vadd.xlane.f32.xlu0 %v1640_v11 }
0x1757   :  { %v1637_v20 = vpop.f32.mrf.mxu2 }
0x17c6   :  { %v1642_v21 = vpop.xlane.xlu0 %1641 }
0x17c7   :  { %v1643_v23 = vmul.f32 %v1642_v21, %v3280_v12 }
0x17c9   :  { %v1644_v24 = vsub.f32 %v3501_v19, %v1643_v23 }
0x17cb   :  { %v1645_v25 = vmul.f32 %v1644_v24, %v1644_v24 }
0x17cd   :  { %v1646_v26 = vsel %vm256_vm0, %v1645_v25, 0.0 }
0x17ce   :  { %1647 = vadd.xlane.f32.xlu2 %v1646_v26 }
0x1841   :  { %v1648_v28 = vpop.xlane.xlu2 %1647 }
0x1842   :  { %v1649_v29 = vmul.f32 %v1648_v28, %v3280_v12 }
0x1844   :  { %v1650_v30 = vadd.f32 1e-05, %v1649_v29 }
0x1846   :  { %2740 = vrsqrt.f32 %v1650_v30  ;;  %vm1657_vm4 = vweird.f32 %v1650_v30 }
0x184c   :  { %v2741_v32 = vpop.eup %2740 }
0x184d   :  { %v1652_v33 = vmul.f32 %v2741_v32, %v1650_v30  ;;  %vm1658_vm3 = vweird.f32 %v2741_v32 }
0x184e   :  { %vm1659_vm5 = vmor %vm1657_vm4, %vm1658_vm3 }
0x184f   :  { %v1653_v34 = vmul.f32 %v2741_v32, %v1652_v33 }
0x1851   :  { %v1654_v35 = vmul.f32 0.5, %v1653_v34 }
0x1853   :  { %v1655_v17 = vsub.f32 1.5, %v1654_v35 }
0x1855   :  { %v1656_v38 = vmul.f32 %v2741_v32, %v1655_v17 }
0x1857   :  { %v1660_v43 = vsel %vm1659_vm5, %v2741_v32, %v1656_v38 }
0x1858   :  { %v1661_v44 = vmul.f32 %v1660_v43, %v1644_v24 }
0x185a   :  { %v1663_v42 = vmul.f32 %v1662_v40, %v1661_v44 }
0x185c   :  { %v1665_v46 = vadd.f32 %v1664_v39, %v1663_v42 }
0x185e   :  { %v1670_v47 = vpack.c.bf16 %v1665_v46, %v1665_v46 }
0x1860   :  { %2538 = vmatmul.msk.bf16.vlgmr.msrb.gmra.mxu3 %vm256_vm0, %v1670_v47 }
0x18e3   :  { %v1695_v48 = vpop.f32.mrf.mxu3 }
0x18e4   :  { %v1705_v45 = vpack.c.bf16 %v1695_v48, %v1695_v48  ;;  %v1699_v50 = vmul.f32 %v3325_v1, %v1695_v48  ;;  %v1700_v51 = vmul.f32 %v3327_v0, %v1695_v48  ;;  %v1701_v53 = vmul.f32 %v3333_v7, %v1695_v48 }
0x18e5   :  { %v1702_v54 = vmul.f32 %v3335_v8, %v1695_v48 }
0x18e6   :  { %1707 = vrot.lane.b32.xlu1 %v1705_v45, %s3133_s13  ;;  %v1703_v52 = vpack.c.bf16 %v1700_v51, %v1699_v50 }
0x18e7   :  { %v1704_v55 = vpack.c.bf16 %v1702_v54, %v1701_v53 }
0x18eb   :  { %v1697_v4 = vpop.f32.mrf.mxu3 }
0x1958   :  { %v1708_v41 = vpop.permute.xlu1 %1707 }
0x1959   :  { %v1716_v49 = vsel %vm256_vm0, %v1708_v41, 0 }
0x195a   :  { %1725 = vmatpush.bf16.xpose.msrb.mxu0 %v1716_v49 }
0x1961   :  { %2539 = vmatmul.msk.bf16.vlgmr.msrb.gmra.mxu0 %vm256_vm0, %v1703_v52 }
0x1971   :  { %2540 = vmatmul.msk.bf16.gmra.mxu0 %vm256_vm0, %v1704_v55 }
0x19de   :  { %v1727_v56 = vpop.f32.mrf.mxu0 }
0x19df   :  { %v1737_v57 = vsel %vm686_vm7, %v1727_v56, -inf }
0x19e0   :  { %1738 = vmax.xlane.f32.xlu2 %v1737_v57 }
0x19e6   :  { %v1729_v58 = vpop.f32.mrf.mxu0 }
0x19e7   :  { %v1740_v59 = vsel %vm686_vm7, %v1729_v58, -inf }
0x19e8   :  { %1741 = vmax.xlane.f32.xlu2 %v1740_v59 }
0x19ee   :  { %v1732_v61 = vpop.f32.mrf.mxu0 }
0x19ef   :  { %v1743_v62 = vsel %vm686_vm7, %v1732_v61, -inf }
0x19f0   :  { %1744 = vmax.xlane.f32.xlu2 %v1743_v62 }
0x19f6   :  { %v1734_v63 = vpop.f32.mrf.mxu0 }
0x19f7   :  { %v1746_v2 = vsel %vm686_vm7, %v1734_v63, -inf }
0x19f8   :  { %1747 = vmax.xlane.f32.xlu1 %v1746_v2 }
0x1a53   :  { %v1739_v22 = vpop.xlane.xlu2 %1738 }
0x1a54   :  { %v1749_v3 = vsub.f32 %v1727_v56, %v1739_v22 }
0x1a56   :  { %v1753_v5 = vmul.f32 1.442695, %v1749_v3 }
0x1a58   :  { %2742 = vpow2.f32 %v1753_v5 }
0x1a5b   :  { %v1742_v37 = vpop.xlane.xlu2 %1741 }
0x1a5c   :  { %v1750_v6 = vsub.f32 %v1729_v58, %v1742_v37 }
0x1a5e   :  { %v3525_v9 = vpop.eup %2742  ;;  %v1755_v10 = vmul.f32 1.442695, %v1750_v6 }
0x1a5f   :  { %v1761_v13 = vsel %vm686_vm7, %v3525_v9, 0.0 }
0x1a60   :  { %2744 = vpow2.f32 %v1755_v10  ;;  %1762 = vadd.xlane.f32.xlu2 %v1761_v13 }
0x1a63   :  { %v1745_v60 = vpop.xlane.xlu2 %1744 }
0x1a64   :  { %v1751_v14 = vsub.f32 %v1732_v61, %v1745_v60 }
0x1a66   :  { %v2745_v15 = vpop.eup %2744  ;;  %v1757_v16 = vmul.f32 1.442695, %v1751_v14 }
0x1a67   :  { %v1764_v18 = vsel %vm686_vm7, %v2745_v15, 0.0 }
0x1a68   :  { %2746 = vpow2.f32 %v1757_v16  ;;  %1765 = vadd.xlane.f32.xlu2 %v1764_v18 }
0x1a6b   :  { %v1748_v11 = vpop.xlane.xlu1 %1747 }
0x1a6c   :  { %v1752_v20 = vsub.f32 %v1734_v63, %v1748_v11 }
0x1a6e   :  { %v3530_v21 = vpop.eup %2746  ;;  %v1759_v23 = vmul.f32 1.442695, %v1752_v20  ;;  %v2629_v20 = vld [vmem:[#allocation19 + $0x8] sm:$0xff] }
0x1a6f   :  { %v1767_v24 = vsel %vm686_vm7, %v3530_v21, 0.0  ;;  %1899 = vmatpush.bf16.msrb.mxu2 %v2629_v20 }
0x1a70   :  { %2748 = vpow2.f32 %v1759_v23  ;;  %1768 = vadd.xlane.f32.xlu0 %v1767_v24  ;;  %v2628_v23 = vld [vmem:[#allocation19] sm:$0xff] }
0x1a73   :  { %1900 = vmatpush.bf16.msrb.mxu2 %v2628_v23 }
0x1a76   :  { %v3534_v25 = vpop.eup %2748 }
0x1a77   :  { %v1770_v26 = vsel %vm686_vm7, %v3534_v25, 0.0 }
0x1a78   :  { %1771 = vadd.xlane.f32.xlu2 %v1770_v26 }
0x1a84   :  { %1835 = vrot.lane.b32.xlu0 %v1705_v45, %s3121_s16 }
0x1ad3   :  { %v1763_v27 = vpop.xlane.xlu2 %1762 }
0x1ad4   :  { %2750 = vrcp.f32 %v1763_v27  ;;  %v1784_v46 = vand.u32 2147483648, %v1763_v27  ;;  %vm1778_vm12 = vweird.f32 %v1763_v27  ;;  %v1782_v47 = vand.u32 2147483647, %v1763_v27 }
0x1ad6   :  { %v1785_v50 = vor.u32 1.1754944e-38, %v1784_v46  ;;  %vm1783_vm15 = vcmp.eq.f32.partialorder %v1782_v47, 8.507059e+37 }
0x1ada   :  { %v2751_v28 = vpop.eup %2750 }
0x1adb   :  { %v1766_v31 = vpop.xlane.xlu2 %1765  ;;  %v1774_v29 = vmul.f32 %v2751_v28, %v1763_v27  ;;  %vm1779_vm9 = vweird.f32 %v2751_v28 }
0x1adc   :  { %2752 = vrcp.f32 %v1766_v31  ;;  %v1799_v43 = vand.u32 2147483648, %v1766_v31  ;;  %vm1793_vm10 = vweird.f32 %v1766_v31  ;;  %v1797_v39 = vand.u32 2147483647, %v1766_v31  ;;  %vm1780_vm13 = vmor %vm1778_vm12, %vm1779_vm9 }
0x1add   :  { %v1775_v33 = vsub.f32 1.0, %v1774_v29 }
0x1ade   :  { %v1800_v45 = vor.u32 1.1754944e-38, %v1799_v43  ;;  %vm1798_vm14 = vcmp.eq.f32.partialorder %v1797_v39, 8.507059e+37 }
0x1adf   :  { %v1776_v17 = vmul.f32 %v2751_v28, %v1775_v33 }
0x1ae1   :  { %v1777_v44 = vadd.f32 %v2751_v28, %v1776_v17 }
0x1ae2   :  { %v2753_v30 = vpop.eup %2752 }
0x1ae3   :  { %v1789_v32 = vmul.f32 %v2753_v30, %v1766_v31  ;;  %v1769_v35 = vpop.xlane.xlu0 %1768  ;;  %vm1794_vm6 = vweird.f32 %v2753_v30  ;;  %v1781_v4 = vsel %vm1780_vm13, %v2751_v28, %v1777_v44 }
0x1ae4   :  { %2754 = vrcp.f32 %v1769_v35  ;;  %vm1795_vm11 = vmor %vm1793_vm10, %vm1794_vm6  ;;  %v1786_v53 = vsel %vm1783_vm15, %v1785_v50, %v1781_v4  ;;  %v1814_v37 = vand.u32 2147483648, %v1769_v35  ;;  %vm1808_vm5 = vweird.f32 %v1769_v35  ;;  %v2630_v50 = vld [vmem:[#allocation20] sm:$0xff] }
0x1ae5   :  { %v1790_v34 = vsub.f32 1.0, %v1789_v32  ;;  %v1787_v58 = vmul.f32 %v3525_v9, %v1786_v53  ;;  %v1812_v6 = vand.u32 2147483647, %v1769_v35 }
0x1ae6   :  { %v1815_v60 = vor.u32 1.1754944e-38, %v1814_v37 }
0x1ae7   :  { %v1791_v36 = vmul.f32 %v2753_v30, %v1790_v34  ;;  %vm1813_vm10 = vcmp.eq.f32.partialorder %v1812_v6, 8.507059e+37 }
0x1ae9   :  { %v1792_v38 = vadd.f32 %v2753_v30, %v1791_v36 }
0x1aea   :  { %v2755_v42 = vpop.eup %2754 }
0x1aeb   :  { %v1772_v40 = vpop.xlane.xlu2 %1771  ;;  %v1796_v48 = vsel %vm1795_vm11, %v2753_v30, %v1792_v38  ;;  %v1804_v41 = vmul.f32 %v2755_v42, %v1769_v35  ;;  %vm1809_vm2 = vweird.f32 %v2755_v42 }
0x1aec   :  { %2756 = vrcp.f32 %v1772_v40  ;;  %v1801_v51 = vsel %vm1798_vm14, %v1800_v45, %v1796_v48  ;;  %v1829_v22 = vand.u32 2147483648, %v1772_v40  ;;  %vm1823_vm3 = vweird.f32 %v1772_v40  ;;  %vm1810_vm6 = vmor %vm1808_vm5, %vm1809_vm2 }
0x1aed   :  { %v1802_v54 = vmul.f32 %v2745_v15, %v1801_v51  ;;  %v1805_v55 = vsub.f32 1.0, %v1804_v41  ;;  %v1827_v5 = vand.u32 2147483647, %v1772_v40 }
0x1aee   :  { %v1830_v10 = vor.u32 1.1754944e-38, %v1829_v22 }
0x1aef   :  { %v1806_v62 = vmul.f32 %v2755_v42, %v1805_v55  ;;  %v1833_v63 = vpack.c.bf16 %v1802_v54, %v1787_v58  ;;  %vm1828_vm9 = vcmp.eq.f32.partialorder %v1827_v5, 8.507059e+37  ;;  %v1916_v54 = vld [vmem:[%s3638_s12] sm:$0x3] }
0x1af1   :  { %v1807_v3 = vadd.f32 %v2755_v42, %v1806_v62 }
0x1af2   :  { %v2757_v49 = vpop.eup %2756 }
0x1af3   :  { %v1819_v52 = vmul.f32 %v2757_v49, %v1772_v40  ;;  %vm1824_vm1 = vweird.f32 %v2757_v49  ;;  %v1811_v13 = vsel %vm1810_vm6, %v2755_v42, %v1807_v3 }
0x1af4   :  { %vm1825_vm4 = vmor %vm1823_vm3, %vm1824_vm1  ;;  %v1816_v15 = vsel %vm1813_vm10, %v1815_v60, %v1811_v13 }
0x1af5   :  { %v1820_v56 = vsub.f32 1.0, %v1819_v52  ;;  %v1817_v18 = vmul.f32 %v3530_v21, %v1816_v15 }
0x1af6   :  { %v1836_v57 = vpop.permute.xlu0 %1835 }
0x1af7   :  { %v1821_v59 = vmul.f32 %v2757_v49, %v1820_v56  ;;  %v1844_v61 = vsel %vm793_vm8, %v1836_v57, 0  ;;  %v1939_v57 = vperm.slane %v1916_v54, 0 }
0x1af8   :  { %1853 = vmatpush.bf16.msrb.mxu1 %v1844_v61 }
0x1af9   :  { %v1822_v2 = vadd.f32 %v2757_v49, %v1821_v59  ;;  %v1941_v59 = vperm.slane %v1916_v54, 1 }
0x1afb   :  { %2541 = vmatmul.msk.bf16.vlgmr.msrb.gmra.mxu1 %vm686_vm7, %v1833_v63  ;;  %v1826_v9 = vsel %vm1825_vm4, %v2757_v49, %v1822_v2  ;;  %v2631_v49 = vld [vmem:[#allocation20 + $0x8] sm:$0xff] }
0x1afc   :  { %v1831_v14 = vsel %vm1828_vm9, %v1830_v10, %v1826_v9  ;;  %1989 = vmatpush.bf16.msra.mxu3 %v2631_v49 }
0x1afd   :  { %v1832_v16 = vmul.f32 %v3534_v25, %v1831_v14 }
0x1aff   :  { %v1834_v11 = vpack.c.bf16 %v1832_v16, %v1817_v18 }
0x1b00   :  { %1990 = vmatpush.bf16.msra.mxu3 %v2630_v50 }
0x1b0b   :  { %2542 = vmatmul.msk.bf16.gmra.mxu1 %vm686_vm7, %v1834_v11 }
0x1b78   :  { %v1855_v24 = vpop.f32.mrf.mxu1 }
0x1b79   :  { %v1865_v27 = vmul.f32 %v3325_v1, %v1855_v24 }
0x1b80   :  { %v1857_v26 = vpop.f32.mrf.mxu1 }
0x1b81   :  { %v1866_v31 = vmul.f32 %v3327_v0, %v1857_v26 }
0x1b83   :  { %v1873_v28 = vpack.c.bf16 %v1866_v31, %v1865_v27 }
0x1b85   :  { %2551 = vmatmul.msk.bf16.vlgmr.msrb.gmra.mxu2 %vm256_vm0, %v1873_v28 }
0x1b88   :  { %v1860_v29 = vpop.f32.mrf.mxu1 }
0x1b89   :  { %v1867_v21 = vmul.f32 %v3333_v7, %v1860_v29 }
0x1b90   :  { %v1862_v25 = vpop.f32.mrf.mxu1 }
0x1b91   :  { %v1868_v30 = vmul.f32 %v3335_v8, %v1862_v25 }
0x1b93   :  { %v1874_v32 = vpack.c.bf16 %v1868_v30, %v1867_v21  ;;  %v2633_v21 = vld [vmem:[#allocation17 + $0x18] sm:$0xff]  ;;  %v2632_v30 = vld [vmem:[#allocation17 + $0x10] sm:$0xff] }
0x1b94   :  { %2049 = vmatpush.bf16.msrb.mxu3 %v2633_v21 }
0x1b95   :  { %2552 = vmatmul.msk.bf16.gmra.mxu2 %vm256_vm0, %v1874_v32 }
0x1b98   :  { %2050 = vmatpush.bf16.msrb.mxu3 %v2632_v30 }
0x1c08   :  { %v1902_v33 = vpop.f32.mrf.mxu2 }
0x1c10   :  { %v1904_v34 = vpop.f32.mrf.mxu2 }
0x1c11   :  { %v1912_v36 = vadd.f32 %v1904_v34, %v1902_v33 }
0x1c18   :  { %v1907_v35 = vpop.f32.mrf.mxu2 }
0x1c19   :  { %v1913_v17 = vadd.f32 %v1912_v36, %v1907_v35 }
0x1c20   :  { %v1909_v38 = vpop.f32.mrf.mxu2 }
0x1c21   :  { %v1914_v40 = vadd.f32 %v1913_v17, %v1909_v38 }
0x1c23   :  { %v1915_v43 = vadd.f32 %v1914_v40, %v3501_v19  ;;  %v2563_v40 = vld [vmem:[%s3635_s9 + $0x2] sm:$0x3] }
0x1c25   :  { %v1917_v44 = vsel %vm256_vm0, %v1915_v43, 0.0 }
0x1c26   :  { %1918 = vadd.xlane.f32.xlu2 %v1917_v44 }
0x1c99   :  { %v1919_v39 = vpop.xlane.xlu2 %1918 }
0x1c9a   :  { %v1920_v42 = vmul.f32 %v1919_v39, %v3280_v12  ;;  %v2019_v39 = vperm.slane %v2563_v40, 0 }
0x1c9c   :  { %v1921_v46 = vsub.f32 %v1915_v43, %v1920_v42 }
0x1c9e   :  { %v1922_v47 = vmul.f32 %v1921_v46, %v1921_v46 }
0x1ca0   :  { %v1923_v48 = vsel %vm256_vm0, %v1922_v47, 0.0  ;;  %v2021_v47 = vperm.slane %v2563_v40, 1 }
0x1ca1   :  { %1924 = vadd.xlane.f32.xlu2 %v1923_v48 }
0x1d14   :  { %v1925_v45 = vpop.xlane.xlu2 %1924 }
0x1d15   :  { %v1926_v4 = vmul.f32 %v1925_v45, %v3280_v12 }
0x1d17   :  { %v1927_v41 = vadd.f32 1e-05, %v1926_v4 }
0x1d19   :  { %2758 = vrsqrt.f32 %v1927_v41  ;;  %vm1934_vm12 = vweird.f32 %v1927_v41 }
0x1d1f   :  { %v2759_v19 = vpop.eup %2758 }
0x1d20   :  { %v1929_v51 = vmul.f32 %v2759_v19, %v1927_v41  ;;  %vm1935_vm11 = vweird.f32 %v2759_v19 }
0x1d21   :  { %vm1936_vm13 = vmor %vm1934_vm12, %vm1935_vm11 }
0x1d22   :  { %v1930_v52 = vmul.f32 %v2759_v19, %v1929_v51 }
0x1d24   :  { %v1931_v53 = vmul.f32 0.5, %v1930_v52 }
0x1d26   :  { %v1932_v55 = vsub.f32 1.5, %v1931_v53 }
0x1d28   :  { %v1933_v56 = vmul.f32 %v2759_v19, %v1932_v55 }
0x1d2a   :  { %v1937_v58 = vsel %vm1936_vm13, %v2759_v19, %v1933_v56 }
0x1d2b   :  { %v1938_v61 = vmul.f32 %v1937_v58, %v1921_v46 }
0x1d2d   :  { %v1940_v62 = vmul.f32 %v1939_v57, %v1938_v61 }
0x1d2f   :  { %v1942_v63 = vadd.f32 %v1941_v59, %v1940_v62 }
0x1d31   :  { %v2553_v2 = vmul.f32 -1.442695, %v1942_v63 }
0x1d33   :  { %2760 = vpow2.f32 %v2553_v2 }
0x1d39   :  { %v2761_v22 = vpop.eup %2760 }
0x1d3a   :  { %v1946_v3 = vadd.f32 1.0, %v2761_v22 }
0x1d3c   :  { %2762 = vrcp.f32 %v1946_v3  ;;  %v1958_v9 = vand.u32 2147483648, %v1946_v3  ;;  %v1956_v13 = vand.u32 2147483647, %v1946_v3  ;;  %vm1952_vm15 = vweird.f32 %v1946_v3 }
0x1d3e   :  { %v1959_v14 = vor.u32 1.1754944e-38, %v1958_v9  ;;  %vm1957_vm2 = vcmp.eq.f32.partialorder %v1956_v13, 8.507059e+37 }
0x1d42   :  { %v2763_v5 = vpop.eup %2762 }
0x1d43   :  { %v1948_v37 = vmul.f32 %v2763_v5, %v1946_v3  ;;  %vm1953_vm14 = vweird.f32 %v2763_v5 }
0x1d44   :  { %vm1954_vm1 = vmor %vm1952_vm15, %vm1953_vm14 }
0x1d45   :  { %v1949_v6 = vsub.f32 1.0, %v1948_v37 }
0x1d47   :  { %v1950_v10 = vmul.f32 %v2763_v5, %v1949_v6 }
0x1d49   :  { %v1951_v60 = vadd.f32 %v2763_v5, %v1950_v10 }
0x1d4b   :  { %v1955_v15 = vsel %vm1954_vm1, %v2763_v5, %v1951_v60 }
0x1d4c   :  { %v1960_v16 = vsel %vm1957_vm2, %v1959_v14, %v1955_v15 }
0x1d4d   :  { %v1962_v18 = vmul.f32 %v1960_v16, %v1942_v63 }
0x1d4f   :  { %v1967_v11 = vpack.c.bf16 %v1962_v18, %v1962_v18 }
0x1d51   :  { %2562 = vmatmul.msk.bf16.vlgmr.msra.gmra.mxu3 %vm256_vm0, %v1967_v11 }
0x1dd4   :  { %v1992_v20 = vpop.f32.mrf.mxu3 }
0x1dd5   :  { %v3560_v23 = vadd.f32 %v1992_v20, %v1915_v43 }
0x1dd7   :  { %v1997_v24 = vsel %vm256_vm0, %v3560_v23, 0.0 }
0x1dd8   :  { %1998 = vadd.xlane.f32.xlu1 %v1997_v24 }
0x1ddc   :  { %v1994_v26 = vpop.f32.mrf.mxu3 }
0x1e4b   :  { %v1999_v27 = vpop.xlane.xlu1 %1998 }
0x1e4c   :  { %v2000_v31 = vmul.f32 %v1999_v27, %v3280_v12 }
0x1e4e   :  { %v2001_v28 = vsub.f32 %v3560_v23, %v2000_v31 }
0x1e50   :  { %v2002_v29 = vmul.f32 %v2001_v28, %v2001_v28 }
0x1e52   :  { %v2003_v25 = vsel %vm256_vm0, %v2002_v29, 0.0 }
0x1e53   :  { %2004 = vadd.xlane.f32.xlu0 %v2003_v25 }
0x1ec6   :  { %v2005_v32 = vpop.xlane.xlu0 %2004 }
0x1ec7   :  { %v2006_v33 = vmul.f32 %v2005_v32, %v3280_v12 }
0x1ec9   :  { %v2007_v34 = vadd.f32 1e-05, %v2006_v33 }
0x1ecb   :  { %2764 = vrsqrt.f32 %v2007_v34  ;;  %vm2014_vm4 = vweird.f32 %v2007_v34 }
0x1ed1   :  { %v2765_v35 = vpop.eup %2764 }
0x1ed2   :  { %v2009_v36 = vmul.f32 %v2765_v35, %v2007_v34  ;;  %vm2015_vm3 = vweird.f32 %v2765_v35 }
0x1ed3   :  { %vm2016_vm5 = vmor %vm2014_vm4, %vm2015_vm3 }
0x1ed4   :  { %v2010_v17 = vmul.f32 %v2765_v35, %v2009_v36 }
0x1ed6   :  { %v2011_v38 = vmul.f32 0.5, %v2010_v17 }
0x1ed8   :  { %v2012_v43 = vsub.f32 1.5, %v2011_v38 }
0x1eda   :  { %v2013_v44 = vmul.f32 %v2765_v35, %v2012_v43 }
0x1edc   :  { %v2017_v42 = vsel %vm2016_vm5, %v2765_v35, %v2013_v44 }
0x1edd   :  { %v2018_v46 = vmul.f32 %v2017_v42, %v2001_v28 }
0x1edf   :  { %v2020_v48 = vmul.f32 %v2019_v39, %v2018_v46 }
0x1ee1   :  { %v2022_v45 = vadd.f32 %v2021_v47, %v2020_v48 }
0x1ee3   :  { %v2027_v4 = vpack.c.bf16 %v2022_v45, %v2022_v45 }
0x1ee5   :  { %2572 = vmatmul.msk.bf16.vlgmr.msrb.gmra.mxu3 %vm256_vm0, %v2027_v4 }
0x1f68   :  { %v2052_v41 = vpop.f32.mrf.mxu3 }
0x1f69   :  { %v2062_v49 = vpack.c.bf16 %v2052_v41, %v2052_v41  ;;  %v2056_v52 = vmul.f32 %v3325_v1, %v2052_v41  ;;  %v2057_v53 = vmul.f32 %v3327_v0, %v2052_v41  ;;  %v2058_v55 = vmul.f32 %v3333_v7, %v2052_v41 }
0x1f6a   :  { %v2059_v56 = vmul.f32 %v3335_v8, %v2052_v41 }
0x1f6b   :  { %2064 = vrot.lane.b32.xlu2 %v2062_v49, %s3133_s13  ;;  %v2060_v54 = vpack.c.bf16 %v2057_v53, %v2056_v52 }
0x1f6c   :  { %v2061_v57 = vpack.c.bf16 %v2059_v56, %v2058_v55 }
0x1f70   :  { %v2054_v50 = vpop.f32.mrf.mxu3 }
0x1fc5   :  { %v2065_v19 = vpop.permute.xlu2 %2064 }
0x1fc6   :  { %v2073_v51 = vsel %vm256_vm0, %v2065_v19, 0 }
0x1fc7   :  { %2082 = vmatpush.bf16.xpose.msra.mxu0 %v2073_v51 }
0x1fce   :  { %2573 = vmatmul.msk.bf16.vlgmr.msra.gmra.mxu0 %vm256_vm0, %v2060_v54 }
0x1fde   :  { %2574 = vmatmul.msk.bf16.gmra.mxu0 %vm256_vm0, %v2061_v57 }
0x204b   :  { %v2084_v58 = vpop.f32.mrf.mxu0 }
0x204c   :  { %v2094_v59 = vsel %vm686_vm7, %v2084_v58, -inf }
0x204d   :  { %2095 = vmax.xlane.f32.xlu1 %v2094_v59 }
0x2053   :  { %v2086_v61 = vpop.f32.mrf.mxu0 }
0x2054   :  { %v2097_v62 = vsel %vm686_vm7, %v2086_v61, -inf }
0x2055   :  { %2098 = vmax.xlane.f32.xlu1 %v2097_v62 }
0x205b   :  { %v2089_v63 = vpop.f32.mrf.mxu0 }
0x205c   :  { %v2100_v2 = vsel %vm686_vm7, %v2089_v63, -inf }
0x205d   :  { %2101 = vmax.xlane.f32.xlu1 %v2100_v2 }
0x2063   :  { %v2091_v22 = vpop.f32.mrf.mxu0 }
0x2064   :  { %v2103_v3 = vsel %vm686_vm7, %v2091_v22, -inf }
0x2065   :  { %2104 = vmax.xlane.f32.xlu2 %v2103_v3 }
0x20c0   :  { %v2096_v5 = vpop.xlane.xlu1 %2095 }
0x20c1   :  { %v2106_v37 = vsub.f32 %v2084_v58, %v2096_v5 }
0x20c3   :  { %v2110_v6 = vmul.f32 1.442695, %v2106_v37 }
0x20c5   :  { %2766 = vpow2.f32 %v2110_v6 }
0x20c8   :  { %v2099_v9 = vpop.xlane.xlu1 %2098 }
0x20c9   :  { %v2107_v10 = vsub.f32 %v2086_v61, %v2099_v9 }
0x20cb   :  { %v3584_v13 = vpop.eup %2766  ;;  %v2112_v60 = vmul.f32 1.442695, %v2107_v10 }
0x20cc   :  { %v2118_v14 = vsel %vm686_vm7, %v3584_v13, 0.0 }
0x20cd   :  { %2768 = vpow2.f32 %v2112_v60  ;;  %2119 = vadd.xlane.f32.xlu1 %v2118_v14 }
0x20d0   :  { %v2102_v15 = vpop.xlane.xlu1 %2101 }
0x20d1   :  { %v2108_v16 = vsub.f32 %v2089_v63, %v2102_v15 }
0x20d3   :  { %v2769_v18 = vpop.eup %2768  ;;  %v2114_v11 = vmul.f32 1.442695, %v2108_v16 }
0x20d4   :  { %v2121_v20 = vsel %vm686_vm7, %v2769_v18, 0.0 }
0x20d5   :  { %2770 = vpow2.f32 %v2114_v11  ;;  %2122 = vadd.xlane.f32.xlu1 %v2121_v20 }
0x20d8   :  { %v2105_v24 = vpop.xlane.xlu2 %2104 }
0x20d9   :  { %v2109_v26 = vsub.f32 %v2091_v22, %v2105_v24 }
0x20db   :  { %v3589_v27 = vpop.eup %2770  ;;  %v2116_v31 = vmul.f32 1.442695, %v2109_v26  ;;  %v2635_v26 = vld [vmem:[#allocation19 + $0x18] sm:$0xff] }
0x20dc   :  { %v2124_v28 = vsel %vm686_vm7, %v3589_v27, 0.0  ;;  %2256 = vmatpush.bf16.msra.mxu2 %v2635_v26 }
0x20dd   :  { %2772 = vpow2.f32 %v2116_v31  ;;  %2125 = vadd.xlane.f32.xlu0 %v2124_v28  ;;  %v2634_v31 = vld [vmem:[#allocation19 + $0x10] sm:$0xff] }
0x20e0   :  { %2257 = vmatpush.bf16.msra.mxu2 %v2634_v31 }
0x20e3   :  { %v3593_v29 = vpop.eup %2772 }
0x20e4   :  { %v2127_v25 = vsel %vm686_vm7, %v3593_v29, 0.0 }
0x20e5   :  { %2128 = vadd.xlane.f32.xlu1 %v2127_v25 }
0x20f1   :  { %2192 = vrot.lane.b32.xlu0 %v2062_v49, %s3121_s16 }
0x2140   :  { %v2120_v21 = vpop.xlane.xlu1 %2119 }
0x2141   :  { %2774 = vrcp.f32 %v2120_v21  ;;  %v2141_v45 = vand.u32 2147483648, %v2120_v21  ;;  %vm2135_vm12 = vweird.f32 %v2120_v21  ;;  %v2139_v4 = vand.u32 2147483647, %v2120_v21 }
0x2143   :  { %v2142_v52 = vor.u32 1.1754944e-38, %v2141_v45  ;;  %vm2140_vm15 = vcmp.eq.f32.partialorder %v2139_v4, 8.507059e+37 }
0x2147   :  { %v2775_v32 = vpop.eup %2774 }
0x2148   :  { %v2123_v30 = vpop.xlane.xlu1 %2122  ;;  %v2131_v33 = vmul.f32 %v2775_v32, %v2120_v21  ;;  %vm2136_vm9 = vweird.f32 %v2775_v32 }
0x2149   :  { %2776 = vrcp.f32 %v2123_v30  ;;  %v2156_v42 = vand.u32 2147483648, %v2123_v30  ;;  %vm2150_vm10 = vweird.f32 %v2123_v30  ;;  %v2154_v47 = vand.u32 2147483647, %v2123_v30  ;;  %vm2137_vm13 = vmor %vm2135_vm12, %vm2136_vm9 }
0x214a   :  { %v2132_v36 = vsub.f32 1.0, %v2131_v33 }
0x214b   :  { %v2157_v49 = vor.u32 1.1754944e-38, %v2156_v42  ;;  %vm2155_vm14 = vcmp.eq.f32.partialorder %v2154_v47, 8.507059e+37 }
0x214c   :  { %v2133_v43 = vmul.f32 %v2775_v32, %v2132_v36 }
0x214e   :  { %v2134_v46 = vadd.f32 %v2775_v32, %v2133_v43 }
0x214f   :  { %v2777_v34 = vpop.eup %2776 }
0x2150   :  { %v2146_v35 = vmul.f32 %v2777_v34, %v2123_v30  ;;  %v2126_v38 = vpop.xlane.xlu0 %2125  ;;  %vm2151_vm6 = vweird.f32 %v2777_v34  ;;  %v2138_v50 = vsel %vm2137_vm13, %v2775_v32, %v2134_v46 }
0x2151   :  { %2778 = vrcp.f32 %v2126_v38  ;;  %vm2152_vm11 = vmor %vm2150_vm10, %vm2151_vm6  ;;  %v2143_v55 = vsel %vm2140_vm15, %v2142_v52, %v2138_v50  ;;  %v2171_v9 = vand.u32 2147483648, %v2126_v38  ;;  %vm2165_vm5 = vweird.f32 %v2126_v38  ;;  %v2587_v52 = vld [vmem:[%s3638_s12 + $0x2] sm:$0x3]  ;;  %s3135_s12 = smov [#allocation22]  }
0x2152   :  { %v2147_v17 = vsub.f32 1.0, %v2146_v35  ;;  %v2144_v61 = vmul.f32 %v3584_v13, %v2143_v55  ;;  %v2169_v10 = vand.u32 2147483647, %v2126_v38  ;;  %v2296_v55 = vperm.slane %v2587_v52, 0  ;;  %s2359_s27 = sshll.u32 %s3135_s12, 4  ;;  %s2360_s27 = int_to_ptr.vmem [resolvable:$true] %s2359_s27 }
0x2153   :  { %v2172_v15 = vor.u32 1.1754944e-38, %v2171_v9 }
0x2154   :  { %v2148_v40 = vmul.f32 %v2777_v34, %v2147_v17  ;;  %vm2170_vm9 = vcmp.eq.f32.partialorder %v2169_v10, 8.507059e+37 }
0x2156   :  { %v2149_v44 = vadd.f32 %v2777_v34, %v2148_v40 }
0x2157   :  { %v2779_v48 = vpop.eup %2778 }
0x2158   :  { %v2129_v39 = vpop.xlane.xlu1 %2128  ;;  %v2153_v41 = vsel %vm2152_vm11, %v2777_v34, %v2149_v44  ;;  %v2161_v19 = vmul.f32 %v2779_v48, %v2126_v38  ;;  %vm2166_vm2 = vweird.f32 %v2779_v48 }
0x2159   :  { %2780 = vrcp.f32 %v2129_v39  ;;  %v2158_v53 = vsel %vm2155_vm14, %v2157_v49, %v2153_v41  ;;  %v2186_v5 = vand.u32 2147483648, %v2129_v39  ;;  %vm2180_vm3 = vweird.f32 %v2129_v39  ;;  %vm2167_vm6 = vmor %vm2165_vm5, %vm2166_vm2  ;;  %v2637_v41 = vld [vmem:[#allocation20 + $0x18] sm:$0xff]  ;;  %v2636_v49 = vld [vmem:[#allocation20 + $0x10] sm:$0xff] }
0x215a   :  { %v2159_v56 = vmul.f32 %v2769_v18, %v2158_v53  ;;  %v2162_v57 = vsub.f32 1.0, %v2161_v19  ;;  %v2184_v6 = vand.u32 2147483647, %v2129_v39  ;;  %2346 = vmatpush.bf16.msra.mxu3 %v2637_v41 }
0x215b   :  { %v2187_v60 = vor.u32 1.1754944e-38, %v2186_v5 }
0x215c   :  { %v2163_v2 = vmul.f32 %v2779_v48, %v2162_v57  ;;  %v2190_v22 = vpack.c.bf16 %v2159_v56, %v2144_v61  ;;  %v2298_v56 = vperm.slane %v2587_v52, 1 }
0x215e   :  { %v2164_v37 = vadd.f32 %v2779_v48, %v2163_v2  ;;  %2347 = vmatpush.bf16.msra.mxu3 %v2636_v49 }
0x215f   :  { %v2781_v51 = vpop.eup %2780 }
0x2160   :  { %v2176_v54 = vmul.f32 %v2781_v51, %v2129_v39  ;;  %vm2181_vm1 = vweird.f32 %v2781_v51  ;;  %v2168_v14 = vsel %vm2167_vm6, %v2779_v48, %v2164_v37 }
0x2161   :  { %vm2182_vm4 = vmor %vm2180_vm3, %vm2181_vm1  ;;  %v2173_v18 = vsel %vm2170_vm9, %v2172_v15, %v2168_v14 }
0x2162   :  { %v2177_v58 = vsub.f32 1.0, %v2176_v54  ;;  %v2174_v20 = vmul.f32 %v3589_v27, %v2173_v18 }
0x2163   :  { %v2193_v59 = vpop.permute.xlu0 %2192 }
0x2164   :  { %v2178_v62 = vmul.f32 %v2781_v51, %v2177_v58  ;;  %v2201_v63 = vsel %vm793_vm8, %v2193_v59, 0  ;;  %vm2185_vm8 = vcmp.eq.f32.partialorder %v2184_v6, 8.507059e+37 }
0x2165   :  { %2210 = vmatpush.bf16.msra.mxu1 %v2201_v63 }
0x2166   :  { %v2179_v3 = vadd.f32 %v2781_v51, %v2178_v62 }
0x2168   :  { %2575 = vmatmul.msk.bf16.vlgmr.msra.gmra.mxu1 %vm686_vm7, %v2190_v22  ;;  %v2183_v13 = vsel %vm2182_vm4, %v2781_v51, %v2179_v3 }
0x2169   :  { %v2188_v16 = vsel %vm2185_vm8, %v2187_v60, %v2183_v13 }
0x216a   :  { %v2189_v11 = vmul.f32 %v3593_v29, %v2188_v16 }
0x216c   :  { %v2191_v24 = vpack.c.bf16 %v2189_v11, %v2174_v20 }
0x2178   :  { %2576 = vmatmul.msk.bf16.gmra.mxu1 %vm686_vm7, %v2191_v24 }
0x21e5   :  { %v2212_v28 = vpop.f32.mrf.mxu1 }
0x21e6   :  { %v2222_v21 = vmul.f32 %v3325_v1, %v2212_v28 }
0x21ed   :  { %v2214_v25 = vpop.f32.mrf.mxu1 }
0x21ee   :  { %v2223_v30 = vmul.f32 %v3327_v0, %v2214_v25 }
0x21f0   :  { %v2230_v32 = vpack.c.bf16 %v2223_v30, %v2222_v21 }
0x21f2   :  { %2585 = vmatmul.msk.bf16.vlgmr.msra.gmra.mxu2 %vm256_vm0, %v2230_v32 }
0x21f5   :  { %v2217_v33 = vpop.f32.mrf.mxu1 }
0x21f6   :  { %v2224_v27 = vmul.f32 %v3333_v7, %v2217_v33 }
0x21fd   :  { %v2219_v29 = vpop.f32.mrf.mxu1 }
0x21fe   :  { %v2225_v34 = vmul.f32 %v3335_v8, %v2219_v29 }
0x2200   :  { %v2231_v35 = vpack.c.bf16 %v2225_v34, %v2224_v27 }
0x2202   :  { %2586 = vmatmul.msk.bf16.gmra.mxu2 %vm256_vm0, %v2231_v35 }
0x2275   :  { %v2259_v36 = vpop.f32.mrf.mxu2 }
0x227d   :  { %v2261_v17 = vpop.f32.mrf.mxu2 }
0x227e   :  { %v2269_v40 = vadd.f32 %v2261_v17, %v2259_v36 }
0x2285   :  { %v2264_v38 = vpop.f32.mrf.mxu2 }
0x2286   :  { %v2270_v43 = vadd.f32 %v2269_v40, %v2264_v38 }
0x228d   :  { %v2266_v1 = vpop.f32.mrf.mxu2 }
0x228e   :  { %v2271_v44 = vadd.f32 %v2270_v43, %v2266_v1 }
0x2290   :  { %v2272_v0 = vadd.f32 %v2271_v44, %v3560_v23 }
0x2292   :  { %v2274_v39 = vsel %vm256_vm0, %v2272_v0, 0.0 }
0x2293   :  { %2275 = vadd.xlane.f32.xlu1 %v2274_v39 }
0x2306   :  { %v2276_v42 = vpop.xlane.xlu1 %2275 }
0x2307   :  { %v2277_v7 = vmul.f32 %v2276_v42, %v3280_v12 }
0x2309   :  { %v2278_v46 = vsub.f32 %v2272_v0, %v2277_v7 }
0x230b   :  { %v2279_v8 = vmul.f32 %v2278_v46, %v2278_v46 }
0x230d   :  { %v2280_v47 = vsel %vm256_vm0, %v2279_v8, 0.0 }
0x230e   :  { %2281 = vadd.xlane.f32.xlu1 %v2280_v47 }
0x2381   :  { %v2282_v48 = vpop.xlane.xlu1 %2281 }
0x2382   :  { %v2283_v45 = vmul.f32 %v2282_v48, %v3280_v12 }
0x2384   :  { %v2284_v4 = vadd.f32 1e-05, %v2283_v45 }
0x2386   :  { %2782 = vrsqrt.f32 %v2284_v4  ;;  %vm2291_vm10 = vweird.f32 %v2284_v4 }
0x238c   :  { %v2783_v23 = vpop.eup %2782 }
0x238d   :  { %v2286_v50 = vmul.f32 %v2783_v23, %v2284_v4  ;;  %vm2292_vm7 = vweird.f32 %v2783_v23 }
0x238e   :  { %vm2293_vm11 = vmor %vm2291_vm10, %vm2292_vm7 }
0x238f   :  { %v2287_v19 = vmul.f32 %v2783_v23, %v2286_v50 }
0x2391   :  { %v2288_v51 = vmul.f32 0.5, %v2287_v19 }
0x2393   :  { %v2289_v53 = vsub.f32 1.5, %v2288_v51 }
0x2395   :  { %v2290_v54 = vmul.f32 %v2783_v23, %v2289_v53 }
0x2397   :  { %v2294_v12 = vsel %vm2293_vm11, %v2783_v23, %v2290_v54 }
0x2398   :  { %v2295_v57 = vmul.f32 %v2294_v12, %v2278_v46 }
0x239a   :  { %v2297_v58 = vmul.f32 %v2296_v55, %v2295_v57 }
0x239c   :  { %v2299_v59 = vadd.f32 %v2298_v56, %v2297_v58 }
0x239e   :  { %v2588_v61 = vmul.f32 -1.442695, %v2299_v59 }
0x23a0   :  { %2784 = vpow2.f32 %v2588_v61 }
0x23a6   :  { %v2785_v62 = vpop.eup %2784 }
0x23a7   :  { %v2303_v63 = vadd.f32 1.0, %v2785_v62 }
0x23a9   :  { %2786 = vrcp.f32 %v2303_v63  ;;  %v2315_v5 = vand.u32 2147483648, %v2303_v63  ;;  %v2313_v6 = vand.u32 2147483647, %v2303_v63  ;;  %vm2309_vm13 = vweird.f32 %v2303_v63 }
0x23ab   :  { %v2316_v10 = vor.u32 1.1754944e-38, %v2315_v5  ;;  %vm2314_vm15 = vcmp.eq.f32.partialorder %v2313_v6, 8.507059e+37 }
0x23af   :  { %v2787_v2 = vpop.eup %2786 }
0x23b0   :  { %v2305_v22 = vmul.f32 %v2787_v2, %v2303_v63  ;;  %vm2310_vm12 = vweird.f32 %v2787_v2 }
0x23b1   :  { %vm2311_vm14 = vmor %vm2309_vm13, %vm2310_vm12 }
0x23b2   :  { %v2306_v3 = vsub.f32 1.0, %v2305_v22 }
0x23b4   :  { %v2307_v37 = vmul.f32 %v2787_v2, %v2306_v3 }
0x23b6   :  { %v2308_v9 = vadd.f32 %v2787_v2, %v2307_v37 }
0x23b8   :  { %v2312_v13 = vsel %vm2311_vm14, %v2787_v2, %v2308_v9 }
0x23b9   :  { %v2317_v60 = vsel %vm2314_vm15, %v2316_v10, %v2312_v13 }
0x23ba   :  { %v2319_v14 = vmul.f32 %v2317_v60, %v2299_v59 }
0x23bc   :  { %v2324_v15 = vpack.c.bf16 %v2319_v14, %v2319_v14 }
0x23be   :  { %2597 = vmatmul.msk.bf16.vlgmr.msra.gmra.mxu3 %vm256_vm0, %v2324_v15 }
0x2441   :  { %v2349_v16 = vpop.f32.mrf.mxu3 }
0x2442   :  { %v2350_v18 = vadd.f32 %v2349_v16, %v2272_v0 }
0x2444   :  { %2354 = vst.msk [vmem:[#allocation22 + $0x8] sm:$0xff] %vm256_vm0, %v2350_v18 }
0x2445   :  { %2367 = dma.vmem_to_hbm [thread:$0]  %s2360_s27, 256, %s2362_s8, [#allocation4], %s3117_s21, %s3117_s21, %s3118_s22  }
0x2449   :  { %v2351_v11 = vpop.f32.mrf.mxu3 }
0x244a   :  { %3114 = dma.done.wait [#allocation4], 256  }
0x244b   :  { %3115 = vsyncadd [#allocation4], 4294967040 }
0x244c   :  { %2372 = vsyncpa [#allocation3], 1 }
0x244d   :  { %2373 = vsyncpa [#allocation6], 1 }
0x244e   :  { %2374 = vsyncpa [#allocation9], 1 }
0x244f   :  { %2375 = vsyncpa [#allocation12], 1 }
0x2450   :  { %2376 = vsyncpa [#allocation15], 1 }
0x2451   :  { %2377 = vsyncpa [#allocation18], 1 }
0x2452   :  { %2378 = vsyncpa [#allocation21], 1 }
0x2453   :  { %2379 = vsyncpa [#allocation4], 1 }

</bundles_post_ra>
